<compile_context>
chip_gen: v5e
topology: v5e:2x2
jax: 0.10.0
libtpu: 0.0.40
codegen_flags: <defaults>
</compile_context>

<pallas_src>
import jax
import jax.numpy as jnp
from jax.experimental import pallas as pl
from jax.experimental.pallas import tpu as pltpu


# ---------------------------------------------------------------------------
# Pallas kernel
# ---------------------------------------------------------------------------
def encoder_kernel(ref_in_ref, inst_h_ref, eps_ref,
                   w_emb_ref, b_emb_ref,
                   w_ih12_ref, b_ih12_ref,
                   w_hh1_ref, b_hh1_ref,
                   w_attn_ref, b_attn_ref,
                   w_ih2c_ref, w_hh2_ref, b_hh2_ref,
                   w_head_ref, b_head_ref,
                   z_ref, mu_ref, logvar_ref):
    ri = ref_in_ref[...]                         # (L, bblk, I)  time-major gathered rows
    L, bblk, I = ri.shape
    H = inst_h_ref.shape[-1]
    SS = mu_ref.shape[-1]
    H3 = 3 * H
    cdt = w_hh1_ref.dtype                        # MXU operand dtype (f32 or bf16)

    # instance_hidden promoted to f32 once (VPU elementwise math stays f32).
    inst_h = inst_h_ref[...].astype(jnp.float32)  # (bblk, S, H)

    # ---- hoisted batched matmuls (no loop-carried dependence) --------------
    # embedding + fused [pointer-GRU | decoder-GRU-reference-half] input projections.
    ri2 = ri.reshape(L * bblk, I)
    ref_h2 = (jnp.dot(ri2, w_emb_ref[...], preferred_element_type=jnp.float32)
              + b_emb_ref[...])                                          # (L*bblk, H)
    gi_all = (jnp.dot(ref_h2.astype(cdt), w_ih12_ref[...],
                      preferred_element_type=jnp.float32)
              + b_ih12_ref[...])                                         # (L*bblk, 6H)
    gi1_all = gi_all[:, :H3].reshape(L, bblk, H3)    # pointer-GRU input gates (time-major)
    gi2r_all = gi_all[:, H3:].reshape(L, bblk, H3)   # decoder-GRU reference half (time-major)

    h1 = jnp.zeros((bblk, H), jnp.float32)           # last_hh   (pointer rnn)
    h2 = jnp.zeros((bblk, H), jnp.float32)           # last_hh_2 (gru_decoder)

    def gru_cell(gi, h, w_hh_ref, b_hh_ref):
        """PyTorch-semantics GRU cell. gi = x @ W_ih^T + b_ih (hoisted)."""
        gh = (jnp.dot(h.astype(cdt), w_hh_ref[...],
                      preferred_element_type=jnp.float32) + b_hh_ref[...])
        i_r, i_z, i_n = gi[:, :H], gi[:, H:2 * H], gi[:, 2 * H:]
        h_r, h_z, h_n = gh[:, :H], gh[:, H:2 * H], gh[:, 2 * H:]
        r = jax.nn.sigmoid(i_r + h_r)
        z = jax.nn.sigmoid(i_z + h_z)
        n = jnp.tanh(i_n + r * h_n)
        return (1.0 - z) * n + z * h

    # Static Python loop == full unroll (L is small & static). Weights are read from VMEM at
    # their use site; only the hidden-state matmuls, attention, and context matmul remain.
    for j in range(1, L):
        # --- self.rnn(reference_hidden[j-1], last_hh): single GRU step ---
        h1 = gru_cell(gi1_all[j - 1], h1, w_hh1_ref, b_hh1_ref)

        # --- encoder_attn(instance_hidden, rnn_out) + context, on the VPU/XLU (no M=1 MXU) ---
        dec = (jnp.dot(h1.astype(cdt), w_attn_ref[...],
                       preferred_element_type=jnp.float32) + b_attn_ref[...])   # (bblk, H)
        scores = jnp.sum(dec[:, None, :] * inst_h, axis=-1)                     # (bblk, S)
        scores = scores - jnp.max(scores, axis=-1, keepdims=True)
        e = jnp.exp(scores)
        attn = e / jnp.sum(e, axis=-1, keepdims=True)                           # exact recip
        context = jnp.sum(attn[:, :, None] * inst_h, axis=1)                    # (bblk, H)

        # --- gru_decoder(cat(reference_hidden[j], context), last_hh_2) ---
        gi2 = gi2r_all[j] + jnp.dot(context.astype(cdt), w_ih2c_ref[...],
                                    preferred_element_type=jnp.float32)
        h2 = gru_cell(gi2, h2, w_hh2_ref, b_hh2_ref)

    # --- fused VAE head: one (H, 2*SS) matmul, reparameterise, three plain 2-D stores ---
    head = (jnp.dot(h2.astype(cdt), w_head_ref[...],
                    preferred_element_type=jnp.float32) + b_head_ref[...])
    mu = head[:, :SS]
    logvar = head[:, SS:]
    z = mu + eps_ref[...] * jnp.exp(0.5 * logvar)
    z_ref[...] = z
    mu_ref[...] = mu
    logvar_ref[...] = logvar


# ---------------------------------------------------------------------------
# Wrapper
# ---------------------------------------------------------------------------
def encoder_forward(params, instance, instance_hidden, solution, eps, *,
                    batch_blocks=None, use_bf16=False):
    B, S, I = instance.shape
    H = instance_hidden.shape[-1]
    SS = params["w1"].shape[-1]
    L = solution.shape[1]

    # Pre-gather the reference rows once in the wrapper, time-major: (L, B, I).
    ref_in = jnp.take_along_axis(instance, solution[:, :, None].astype(jnp.int32), axis=1)
    ref_in = jnp.transpose(ref_in, (1, 0, 2))

    # Hoisted weight preprocessing (done once, outside the kernel).
    w_ih12 = jnp.concatenate([params["w_ih1"], params["w_ih2"][:H, :]], axis=-1)  # (H, 6H)
    b_ih12 = jnp.concatenate([params["b_ih1"], params["b_ih2"]], axis=-1)          # (1, 6H)
    w_ih2c = params["w_ih2"][H:, :]                                                # (H, 3H)
    w_head = jnp.concatenate([params["w1"], params["w2"]], axis=-1)                # (H, 2SS)
    b_head = jnp.concatenate([params["b1"], params["b2"]], axis=-1)                # (1, 2SS)

    # Optional bf16 storage/MXU path; biases, eps and all elementwise math stay f32.
    cdt = jnp.bfloat16 if use_bf16 else jnp.float32
    ref_in = ref_in.astype(cdt)
    inst_h = instance_hidden.astype(cdt)
    w_emb = params["w_emb"].astype(cdt)
    w_ih12 = w_ih12.astype(cdt)
    w_hh1 = params["w_hh1"].astype(cdt)
    w_attn = params["w_attn"].astype(cdt)
    w_ih2c = w_ih2c.astype(cdt)
    w_hh2 = params["w_hh2"].astype(cdt)
    w_head = w_head.astype(cdt)

    # Megacore gate: a single block by default (v5e/v6e: 1 TensorCore, a grid split is pure
    # overhead). Split 2-way for v7x megacore only when each block keeps every sublane busy.
    if batch_blocks is None:
        half = B // 2
        batch_blocks = 2 if (B % 2 == 0 and half >= 8 and half % 8 == 0) else 1
    assert B % batch_blocks == 0
    bblk = B // batch_blocks

    bmap3 = lambda b: (b, 0, 0)   # batch-leading 3-D arrays
    tmap3 = lambda b: (0, b, 0)   # time-major (L, B, I)
    bmap2 = lambda b: (b, 0)      # batch-leading 2-D arrays
    wmap2 = lambda b: (0, 0)      # resident weights / biases (constant block index)

    ins = [ref_in, inst_h, eps,
           w_emb, params["b_emb"],
           w_ih12, b_ih12,
           w_hh1, params["b_hh1"],
           w_attn, params["b_attn"],
           w_ih2c, w_hh2, params["b_hh2"],
           w_head, b_head]

    in_specs = [pl.BlockSpec((L, bblk, I), tmap3),
                pl.BlockSpec((bblk, S, H), bmap3),
                pl.BlockSpec((bblk, SS), bmap2)]
    in_specs += [pl.BlockSpec(w.shape, wmap2) for w in ins[3:]]

    out_shape = (jax.ShapeDtypeStruct((B, SS), jnp.float32),
                 jax.ShapeDtypeStruct((B, SS), jnp.float32),
                 jax.ShapeDtypeStruct((B, SS), jnp.float32))
    out_specs = [pl.BlockSpec((bblk, SS), bmap2)] * 3

    # 32 MiB is safe on all of v5e/v6e/v7x at these sizes; when scaling bblk on v7x keep
    # 2*(bblk*S*H*itemsize) double-buffered blocks + resident weights under ~48 MiB.
    z, mu, logvar = pl.pallas_call(
        encoder_kernel,
        out_shape=out_shape,
        grid=(batch_blocks,),
        in_specs=in_specs,
        out_specs=out_specs,
        compiler_params=pltpu.CompilerParams(
            dimension_semantics=("parallel",),
            vmem_limit_bytes=32 * 1024 * 1024),
    )(*ins)
    return z, mu, logvar


# ---------------------------------------------------------------------------
# Deterministic parameter init (shapes from the module's __init__)
# ---------------------------------------------------------------------------
def init_params(key, I, H, SS):
    ks = jax.random.split(key, 16)
    def nrm(k, shape):
        return jax.random.normal(k, shape, jnp.float32) * 0.1
    return dict(
        # reference_embedding: Linear(I, H)
        w_emb=nrm(ks[0], (I, H)),  b_emb=nrm(ks[1], (1, H)),
        # rnn: GRU(H, H)
        w_ih1=nrm(ks[2], (H, 3 * H)), w_hh1=nrm(ks[3], (H, 3 * H)),
        b_ih1=nrm(ks[4], (1, 3 * H)), b_hh1=nrm(ks[5], (1, 3 * H)),
        # encoder_attn: Linear(H, H) projection of the decoder state
        w_attn=nrm(ks[6], (H, H)), b_attn=nrm(ks[7], (1, H)),
        # gru_decoder: GRU(2H, H)
        w_ih2=nrm(ks[8], (2 * H, 3 * H)), w_hh2=nrm(ks[9], (H, 3 * H)),
        b_ih2=nrm(ks[10], (1, 3 * H)),    b_hh2=nrm(ks[11], (1, 3 * H)),
        # fc1 / fc2: Linear(H, SS)
        w1=nrm(ks[12], (H, SS)), b1=nrm(ks[13], (1, SS)),
        w2=nrm(ks[14], (H, SS)), b2=nrm(ks[15], (1, SS)),
    )


# ---------------------------------------------------------------------------
# Pure-JAX reference (mirrors the PyTorch forward) for a correctness check
# ---------------------------------------------------------------------------
def encoder_reference(params, instance, instance_hidden, solution, eps):
    B, S, I = instance.shape
    H = instance_hidden.shape[-1]
    L = solution.shape[1]

    def gru_cell(x, h, w_ih, w_hh, b_ih, b_hh):
        gi = x @ w_ih + b_ih
        gh = h @ w_hh + b_hh
        i_r, i_z, i_n = jnp.split(gi, 3, axis=-1)
        h_r, h_z, h_n = jnp.split(gh, 3, axis=-1)
        r = jax.nn.sigmoid(i_r + h_r)
        z = jax.nn.sigmoid(i_z + h_z)
        n = jnp.tanh(i_n + r * h_n)
        return (1 - z) * n + z * h

    def embed(ptr):
        ref_in = instance[jnp.arange(B), ptr, :]                  # torch.gather equivalent
        return ref_in @ params["w_emb"] + params["b_emb"]

    ref_h = embed(solution[:, 0])
    h1 = jnp.zeros((B, H), jnp.float32)
    h2 = jnp.zeros((B, H), jnp.float32)
    for j in range(1, L):
        h1 = gru_cell(ref_h, h1, params["w_ih1"], params["w_hh1"],
                      params["b_ih1"], params["b_hh1"])
        dec = h1 @ params["w_attn"] + params["b_attn"]
        scores = jnp.einsum("bsh,bh->bs", instance_hidden, dec)
        attn = jax.nn.softmax(scores, axis=-1)
        context = jnp.einsum("bs,bsh->bh", attn, instance_hidden)
        ref_h = embed(solution[:, j])
        rnn_in = jnp.concatenate([ref_h, context], axis=-1)
        h2 = gru_cell(rnn_in, h2, params["w_ih2"], params["w_hh2"],
                      params["b_ih2"], params["b_hh2"])
    mu = h2 @ params["w1"] + params["b1"]
    logvar = h2 @ params["w2"] + params["b2"]
    return mu + eps * jnp.exp(0.5 * logvar), mu, logvar


if __name__ == "__main__":
    B, S, I, H, SS, L = 2, 8, 4, 32, 16, 8

    key = jax.random.PRNGKey(0)
    k_inst, k_hid, k_sol, k_eps, k_par = jax.random.split(key, 5)
    instance = jax.random.normal(k_inst, (B, S, I), jnp.float32)
    instance_hidden = jax.random.normal(k_hid, (B, S, H), jnp.float32)
    solution = jax.random.randint(k_sol, (B, L), 0, S, dtype=jnp.int32)
    # TODO(synk): torch.randn_like inside reparameterise has no in-kernel torch-RNG
    # equivalent; eps is drawn with jax.random here and passed into the kernel.
    eps = jax.random.normal(k_eps, (B, SS), jnp.float32)
    params = init_params(k_par, I, H, SS)

    # --- f32 path, single batch block (default for small B / v5e / v6e) ---
    z, mu, logvar = jax.block_until_ready(
        encoder_forward(params, instance, instance_hidden, solution, eps))
    z_r, mu_r, lv_r = encoder_reference(params, instance, instance_hidden, solution, eps)
    assert jnp.allclose(mu, mu_r, atol=2e-3, rtol=2e-3)
    assert jnp.allclose(logvar, lv_r, atol=2e-3, rtol=2e-3)
    assert jnp.allclose(z, z_r, atol=2e-3, rtol=2e-3)

    # --- larger batch exercises the gated 2-way megacore split (bblk >= 8) ---
    B2 = 16
    k2 = jax.random.split(jax.random.PRNGKey(1), 4)
    instance2 = jax.random.normal(k2[0], (B2, S, I), jnp.float32)
    hidden2 = jax.random.normal(k2[1], (B2, S, H), jnp.float32)
    solution2 = jax.random.randint(k2[2], (B2, L), 0, S, dtype=jnp.int32)
    eps2 = jax.random.normal(k2[3], (B2, SS), jnp.float32)
    z2, mu2, lv2 = jax.block_until_ready(
        encoder_forward(params, instance2, hidden2, solution2, eps2))
    z2_r, mu2_r, lv2_r = encoder_reference(params, instance2, hidden2, solution2, eps2)
    assert jnp.allclose(mu2, mu2_r, atol=2e-3, rtol=2e-3)
    assert jnp.allclose(lv2, lv2_r, atol=2e-3, rtol=2e-3)
    assert jnp.allclose(z2, z2_r, atol=2e-3, rtol=2e-3)

    # --- bf16 storage/MXU path (elementwise math stays f32) ---
    zb, mub, lvb = jax.block_until_ready(
        encoder_forward(params, instance, instance_hidden, solution, eps, use_bf16=True))
    assert bool(jnp.all(jnp.isfinite(zb))) and bool(jnp.all(jnp.isfinite(mub)))
    assert jnp.allclose(mub, mu_r, atol=5e-2, rtol=5e-2)
    assert jnp.allclose(lvb, lv_r, atol=5e-2, rtol=5e-2)

    print("KERNEL_OK")
</pallas_src>

<mosaic_0001>
module attributes {stable_mosaic.version = 11 : i64} {
  func.func @encoder_kernel(%arg0: i32, %arg1: memref<8x2x4xf32, #tpu.memory_space<vmem>>, %arg2: memref<2x8x32xf32, #tpu.memory_space<vmem>>, %arg3: memref<2x16xf32, #tpu.memory_space<vmem>>, %arg4: memref<4x32xf32, #tpu.memory_space<vmem>>, %arg5: memref<1x32xf32, #tpu.memory_space<vmem>>, %arg6: memref<32x192xf32, #tpu.memory_space<vmem>>, %arg7: memref<1x192xf32, #tpu.memory_space<vmem>>, %arg8: memref<32x96xf32, #tpu.memory_space<vmem>>, %arg9: memref<1x96xf32, #tpu.memory_space<vmem>>, %arg10: memref<32x32xf32, #tpu.memory_space<vmem>>, %arg11: memref<1x32xf32, #tpu.memory_space<vmem>>, %arg12: memref<32x96xf32, #tpu.memory_space<vmem>>, %arg13: memref<32x96xf32, #tpu.memory_space<vmem>>, %arg14: memref<1x96xf32, #tpu.memory_space<vmem>>, %arg15: memref<32x32xf32, #tpu.memory_space<vmem>>, %arg16: memref<1x32xf32, #tpu.memory_space<vmem>>, %arg17: memref<2x16xf32, #tpu.memory_space<vmem>>, %arg18: memref<2x16xf32, #tpu.memory_space<vmem>>, %arg19: memref<2x16xf32, #tpu.memory_space<vmem>>) attributes {dimension_semantics = [#tpu.dimension_semantics<parallel>], iteration_bounds = array<i64: 1>, scalar_prefetch = 0 : i64, scratch_operands = 0 : i64, tpu.core_type = #tpu.core_type<tc>, window_params = [{transform_indices = @transform_0, window_bounds = array<i64: 8, 2, 4>}, {transform_indices = @transform_1, window_bounds = array<i64: 2, 8, 32>}, {transform_indices = @transform_2, window_bounds = array<i64: 2, 16>}, {pipeline_mode = #tpu.pipeline_mode<synchronous>, transform_indices = @transform_3, window_bounds = array<i64: 4, 32>}, {pipeline_mode = #tpu.pipeline_mode<synchronous>, transform_indices = @transform_4, window_bounds = array<i64: 1, 32>}, {pipeline_mode = #tpu.pipeline_mode<synchronous>, transform_indices = @transform_5, window_bounds = array<i64: 32, 192>}, {pipeline_mode = #tpu.pipeline_mode<synchronous>, transform_indices = @transform_6, window_bounds = array<i64: 1, 192>}, {pipeline_mode = #tpu.pipeline_mode<synchronous>, transform_indices = @transform_7, window_bounds = array<i64: 32, 96>}, {pipeline_mode = #tpu.pipeline_mode<synchronous>, transform_indices = @transform_8, window_bounds = array<i64: 1, 96>}, {pipeline_mode = #tpu.pipeline_mode<synchronous>, transform_indices = @transform_9, window_bounds = array<i64: 32, 32>}, {pipeline_mode = #tpu.pipeline_mode<synchronous>, transform_indices = @transform_10, window_bounds = array<i64: 1, 32>}, {pipeline_mode = #tpu.pipeline_mode<synchronous>, transform_indices = @transform_11, window_bounds = array<i64: 32, 96>}, {pipeline_mode = #tpu.pipeline_mode<synchronous>, transform_indices = @transform_12, window_bounds = array<i64: 32, 96>}, {pipeline_mode = #tpu.pipeline_mode<synchronous>, transform_indices = @transform_13, window_bounds = array<i64: 1, 96>}, {pipeline_mode = #tpu.pipeline_mode<synchronous>, transform_indices = @transform_14, window_bounds = array<i64: 32, 32>}, {pipeline_mode = #tpu.pipeline_mode<synchronous>, transform_indices = @transform_15, window_bounds = array<i64: 1, 32>}, {transform_indices = @transform_16, window_bounds = array<i64: 2, 16>}, {transform_indices = @transform_17, window_bounds = array<i64: 2, 16>}, {transform_indices = @transform_18, window_bounds = array<i64: 2, 16>}]} {
    %c0 = arith.constant 0 : index
    %c0_0 = arith.constant 0 : index
    %c0_1 = arith.constant 0 : index
    %0 = vector.load %arg1[%c0, %c0_0, %c0_1] : memref<8x2x4xf32, #tpu.memory_space<vmem>>, vector<8x2x4xf32>
    %c0_2 = arith.constant 0 : index
    %c0_3 = arith.constant 0 : index
    %c0_4 = arith.constant 0 : index
    %1 = vector.load %arg2[%c0_2, %c0_3, %c0_4] : memref<2x8x32xf32, #tpu.memory_space<vmem>>, vector<2x8x32xf32>
    %2 = vector.shape_cast %0 : vector<8x2x4xf32> to vector<16x4xf32>
    %c0_5 = arith.constant 0 : index
    %c0_6 = arith.constant 0 : index
    %3 = vector.load %arg4[%c0_5, %c0_6] : memref<4x32xf32, #tpu.memory_space<vmem>>, vector<4x32xf32>
    %cst = arith.constant dense<0.000000e+00> : vector<16x32xf32>
    %4 = tpu.matmul %2, %3, %cst {dimension_numbers = #tpu.dot_dimension_numbers<[1], [0], [0], [1], [0, 0, 1, 1], [], []>} : vector<16x4xf32>, vector<4x32xf32>, vector<16x32xf32> -> vector<16x32xf32>
    %c0_7 = arith.constant 0 : index
    %c0_8 = arith.constant 0 : index
    %5 = vector.load %arg5[%c0_7, %c0_8] : memref<1x32xf32, #tpu.memory_space<vmem>>, vector<1x32xf32>
    %6 = vector.broadcast %5 : vector<1x32xf32> to vector<16x32xf32>
    %7 = arith.addf %4, %6 : vector<16x32xf32>
    %c0_9 = arith.constant 0 : index
    %c0_10 = arith.constant 0 : index
    %8 = vector.load %arg6[%c0_9, %c0_10] : memref<32x192xf32, #tpu.memory_space<vmem>>, vector<32x192xf32>
    %cst_11 = arith.constant dense<0.000000e+00> : vector<16x192xf32>
    %9 = tpu.matmul %7, %8, %cst_11 {dimension_numbers = #tpu.dot_dimension_numbers<[1], [0], [0], [1], [0, 0, 1, 1], [], []>} : vector<16x32xf32>, vector<32x192xf32>, vector<16x192xf32> -> vector<16x192xf32>
    %c0_12 = arith.constant 0 : index
    %c0_13 = arith.constant 0 : index
    %10 = vector.load %arg7[%c0_12, %c0_13] : memref<1x192xf32, #tpu.memory_space<vmem>>, vector<1x192xf32>
    %11 = vector.broadcast %10 : vector<1x192xf32> to vector<16x192xf32>
    %12 = arith.addf %9, %11 : vector<16x192xf32>
    %13 = vector.extract_strided_slice %12 {offsets = [0, 0], sizes = [16, 96], strides = [1, 1]} : vector<16x192xf32> to vector<16x96xf32>
    %14 = vector.shape_cast %13 : vector<16x96xf32> to vector<8x2x96xf32>
    %15 = vector.extract_strided_slice %12 {offsets = [0, 96], sizes = [16, 96], strides = [1, 1]} : vector<16x192xf32> to vector<16x96xf32>
    %16 = vector.shape_cast %15 : vector<16x96xf32> to vector<8x2x96xf32>
    %cst_14 = arith.constant 0.000000e+00 : f32
    %17 = vector.broadcast %cst_14 : f32 to vector<2x32xf32>
    %cst_15 = arith.constant 0.000000e+00 : f32
    %18 = vector.broadcast %cst_15 : f32 to vector<2x32xf32>
    %19 = vector.extract_strided_slice %14 {offsets = [0, 0, 0], sizes = [1, 2, 96], strides = [1, 1, 1]} : vector<8x2x96xf32> to vector<1x2x96xf32>
    %20 = vector.shape_cast %19 : vector<1x2x96xf32> to vector<2x96xf32>
    %c0_16 = arith.constant 0 : index
    %c0_17 = arith.constant 0 : index
    %21 = vector.load %arg8[%c0_16, %c0_17] : memref<32x96xf32, #tpu.memory_space<vmem>>, vector<32x96xf32>
    %cst_18 = arith.constant dense<0.000000e+00> : vector<2x96xf32>
    %22 = tpu.matmul %17, %21, %cst_18 {dimension_numbers = #tpu.dot_dimension_numbers<[1], [0], [0], [1], [0, 0, 1, 1], [], []>} : vector<2x32xf32>, vector<32x96xf32>, vector<2x96xf32> -> vector<2x96xf32>
    %c0_19 = arith.constant 0 : index
    %c0_20 = arith.constant 0 : index
    %23 = vector.load %arg9[%c0_19, %c0_20] : memref<1x96xf32, #tpu.memory_space<vmem>>, vector<1x96xf32>
    %24 = vector.broadcast %23 : vector<1x96xf32> to vector<2x96xf32>
    %25 = arith.addf %22, %24 : vector<2x96xf32>
    %26 = vector.extract_strided_slice %20 {offsets = [0, 0], sizes = [2, 32], strides = [1, 1]} : vector<2x96xf32> to vector<2x32xf32>
    %27 = vector.extract_strided_slice %20 {offsets = [0, 32], sizes = [2, 32], strides = [1, 1]} : vector<2x96xf32> to vector<2x32xf32>
    %28 = vector.extract_strided_slice %20 {offsets = [0, 64], sizes = [2, 32], strides = [1, 1]} : vector<2x96xf32> to vector<2x32xf32>
    %29 = vector.extract_strided_slice %25 {offsets = [0, 0], sizes = [2, 32], strides = [1, 1]} : vector<2x96xf32> to vector<2x32xf32>
    %30 = vector.extract_strided_slice %25 {offsets = [0, 32], sizes = [2, 32], strides = [1, 1]} : vector<2x96xf32> to vector<2x32xf32>
    %31 = vector.extract_strided_slice %25 {offsets = [0, 64], sizes = [2, 32], strides = [1, 1]} : vector<2x96xf32> to vector<2x32xf32>
    %32 = arith.addf %26, %29 : vector<2x32xf32>
    %33 = arith.negf %32 : vector<2x32xf32>
    %34 = math.exp %33 : vector<2x32xf32>
    %cst_21 = arith.constant 1.000000e+00 : f32
    %35 = vector.broadcast %cst_21 : f32 to vector<2x32xf32>
    %36 = arith.addf %35, %34 : vector<2x32xf32>
    %37 = arith.divf %35, %36 : vector<2x32xf32>
    %38 = arith.addf %27, %30 : vector<2x32xf32>
    %39 = arith.negf %38 : vector<2x32xf32>
    %40 = math.exp %39 : vector<2x32xf32>
    %cst_22 = arith.constant 1.000000e+00 : f32
    %41 = vector.broadcast %cst_22 : f32 to vector<2x32xf32>
    %42 = arith.addf %41, %40 : vector<2x32xf32>
    %43 = arith.divf %41, %42 : vector<2x32xf32>
    %44 = arith.mulf %37, %31 : vector<2x32xf32>
    %45 = arith.addf %28, %44 : vector<2x32xf32>
    %46 = math.tanh %45 : vector<2x32xf32>
    %cst_23 = arith.constant 1.000000e+00 : f32
    %47 = vector.broadcast %cst_23 : f32 to vector<2x32xf32>
    %48 = arith.subf %47, %43 : vector<2x32xf32>
    %49 = arith.mulf %48, %46 : vector<2x32xf32>
    %50 = arith.mulf %43, %17 : vector<2x32xf32>
    %51 = arith.addf %49, %50 : vector<2x32xf32>
    %c0_24 = arith.constant 0 : index
    %c0_25 = arith.constant 0 : index
    %52 = vector.load %arg10[%c0_24, %c0_25] : memref<32x32xf32, #tpu.memory_space<vmem>>, vector<32x32xf32>
    %cst_26 = arith.constant dense<0.000000e+00> : vector<2x32xf32>
    %53 = tpu.matmul %51, %52, %cst_26 {dimension_numbers = #tpu.dot_dimension_numbers<[1], [0], [0], [1], [0, 0, 1, 1], [], []>} : vector<2x32xf32>, vector<32x32xf32>, vector<2x32xf32> -> vector<2x32xf32>
    %c0_27 = arith.constant 0 : index
    %c0_28 = arith.constant 0 : index
    %54 = vector.load %arg11[%c0_27, %c0_28] : memref<1x32xf32, #tpu.memory_space<vmem>>, vector<1x32xf32>
    %55 = vector.broadcast %54 : vector<1x32xf32> to vector<2x32xf32>
    %56 = arith.addf %53, %55 : vector<2x32xf32>
    %57 = vector.shape_cast %56 : vector<2x32xf32> to vector<2x1x32xf32>
    %58 = vector.broadcast %57 : vector<2x1x32xf32> to vector<2x8x32xf32>
    %59 = arith.mulf %58, %1 : vector<2x8x32xf32>
    %cst_29 = arith.constant dense<0.000000e+00> : vector<2x8xf32>
    %60 = vector.multi_reduction <add>, %59, %cst_29 [2] : vector<2x8x32xf32> to vector<2x8xf32>
    %cst_30 = arith.constant dense<0xFF800000> : vector<2xf32>
    %61 = vector.multi_reduction <maximumf>, %60, %cst_30 [1] : vector<2x8xf32> to vector<2xf32>
    %62 = vector.shape_cast %61 : vector<2xf32> to vector<2x1xf32>
    %63 = vector.broadcast %62 : vector<2x1xf32> to vector<2x8xf32>
    %64 = arith.subf %60, %63 : vector<2x8xf32>
    %65 = math.exp %64 : vector<2x8xf32>
    %cst_31 = arith.constant dense<0.000000e+00> : vector<2xf32>
    %66 = vector.multi_reduction <add>, %65, %cst_31 [1] : vector<2x8xf32> to vector<2xf32>
    %67 = vector.shape_cast %66 : vector<2xf32> to vector<2x1xf32>
    %68 = vector.broadcast %67 : vector<2x1xf32> to vector<2x8xf32>
    %69 = arith.divf %65, %68 : vector<2x8xf32>
    %70 = vector.shape_cast %69 : vector<2x8xf32> to vector<2x8x1xf32>
    %71 = vector.broadcast %70 : vector<2x8x1xf32> to vector<2x8x32xf32>
    %72 = arith.mulf %71, %1 : vector<2x8x32xf32>
    %cst_32 = arith.constant dense<0.000000e+00> : vector<2x32xf32>
    %73 = vector.multi_reduction <add>, %72, %cst_32 [1] : vector<2x8x32xf32> to vector<2x32xf32>
    %74 = vector.extract_strided_slice %16 {offsets = [1, 0, 0], sizes = [1, 2, 96], strides = [1, 1, 1]} : vector<8x2x96xf32> to vector<1x2x96xf32>
    %75 = vector.shape_cast %74 : vector<1x2x96xf32> to vector<2x96xf32>
    %c0_33 = arith.constant 0 : index
    %c0_34 = arith.constant 0 : index
    %76 = vector.load %arg12[%c0_33, %c0_34] : memref<32x96xf32, #tpu.memory_space<vmem>>, vector<32x96xf32>
    %cst_35 = arith.constant dense<0.000000e+00> : vector<2x96xf32>
    %77 = tpu.matmul %73, %76, %cst_35 {dimension_numbers = #tpu.dot_dimension_numbers<[1], [0], [0], [1], [0, 0, 1, 1], [], []>} : vector<2x32xf32>, vector<32x96xf32>, vector<2x96xf32> -> vector<2x96xf32>
    %78 = arith.addf %75, %77 : vector<2x96xf32>
    %c0_36 = arith.constant 0 : index
    %c0_37 = arith.constant 0 : index
    %79 = vector.load %arg13[%c0_36, %c0_37] : memref<32x96xf32, #tpu.memory_space<vmem>>, vector<32x96xf32>
    %cst_38 = arith.constant dense<0.000000e+00> : vector<2x96xf32>
    %80 = tpu.matmul %18, %79, %cst_38 {dimension_numbers = #tpu.dot_dimension_numbers<[1], [0], [0], [1], [0, 0, 1, 1], [], []>} : vector<2x32xf32>, vector<32x96xf32>, vector<2x96xf32> -> vector<2x96xf32>
    %c0_39 = arith.constant 0 : index
    %c0_40 = arith.constant 0 : index
    %81 = vector.load %arg14[%c0_39, %c0_40] : memref<1x96xf32, #tpu.memory_space<vmem>>, vector<1x96xf32>
    %82 = vector.broadcast %81 : vector<1x96xf32> to vector<2x96xf32>
    %83 = arith.addf %80, %82 : vector<2x96xf32>
    %84 = vector.extract_strided_slice %78 {offsets = [0, 0], sizes = [2, 32], strides = [1, 1]} : vector<2x96xf32> to vector<2x32xf32>
    %85 = vector.extract_strided_slice %78 {offsets = [0, 32], sizes = [2, 32], strides = [1, 1]} : vector<2x96xf32> to vector<2x32xf32>
    %86 = vector.extract_strided_slice %78 {offsets = [0, 64], sizes = [2, 32], strides = [1, 1]} : vector<2x96xf32> to vector<2x32xf32>
    %87 = vector.extract_strided_slice %83 {offsets = [0, 0], sizes = [2, 32], strides = [1, 1]} : vector<2x96xf32> to vector<2x32xf32>
    %88 = vector.extract_strided_slice %83 {offsets = [0, 32], sizes = [2, 32], strides = [1, 1]} : vector<2x96xf32> to vector<2x32xf32>
    %89 = vector.extract_strided_slice %83 {offsets = [0, 64], sizes = [2, 32], strides = [1, 1]} : vector<2x96xf32> to vector<2x32xf32>
    %90 = arith.addf %84, %87 : vector<2x32xf32>
    %91 = arith.negf %90 : vector<2x32xf32>
    %92 = math.exp %91 : vector<2x32xf32>
    %cst_41 = arith.constant 1.000000e+00 : f32
    %93 = vector.broadcast %cst_41 : f32 to vector<2x32xf32>
    %94 = arith.addf %93, %92 : vector<2x32xf32>
    %95 = arith.divf %93, %94 : vector<2x32xf32>
    %96 = arith.addf %85, %88 : vector<2x32xf32>
    %97 = arith.negf %96 : vector<2x32xf32>
    %98 = math.exp %97 : vector<2x32xf32>
    %cst_42 = arith.constant 1.000000e+00 : f32
    %99 = vector.broadcast %cst_42 : f32 to vector<2x32xf32>
    %100 = arith.addf %99, %98 : vector<2x32xf32>
    %101 = arith.divf %99, %100 : vector<2x32xf32>
    %102 = arith.mulf %95, %89 : vector<2x32xf32>
    %103 = arith.addf %86, %102 : vector<2x32xf32>
    %104 = math.tanh %103 : vector<2x32xf32>
    %cst_43 = arith.constant 1.000000e+00 : f32
    %105 = vector.broadcast %cst_43 : f32 to vector<2x32xf32>
    %106 = arith.subf %105, %101 : vector<2x32xf32>
    %107 = arith.mulf %106, %104 : vector<2x32xf32>
    %108 = arith.mulf %101, %18 : vector<2x32xf32>
    %109 = arith.addf %107, %108 : vector<2x32xf32>
    %110 = vector.extract_strided_slice %14 {offsets = [1, 0, 0], sizes = [1, 2, 96], strides = [1, 1, 1]} : vector<8x2x96xf32> to vector<1x2x96xf32>
    %111 = vector.shape_cast %110 : vector<1x2x96xf32> to vector<2x96xf32>
    %c0_44 = arith.constant 0 : index
    %c0_45 = arith.constant 0 : index
    %112 = vector.load %arg8[%c0_44, %c0_45] : memref<32x96xf32, #tpu.memory_space<vmem>>, vector<32x96xf32>
    %cst_46 = arith.constant dense<0.000000e+00> : vector<2x96xf32>
    %113 = tpu.matmul %51, %112, %cst_46 {dimension_numbers = #tpu.dot_dimension_numbers<[1], [0], [0], [1], [0, 0, 1, 1], [], []>} : vector<2x32xf32>, vector<32x96xf32>, vector<2x96xf32> -> vector<2x96xf32>
    %c0_47 = arith.constant 0 : index
    %c0_48 = arith.constant 0 : index
    %114 = vector.load %arg9[%c0_47, %c0_48] : memref<1x96xf32, #tpu.memory_space<vmem>>, vector<1x96xf32>
    %115 = vector.broadcast %114 : vector<1x96xf32> to vector<2x96xf32>
    %116 = arith.addf %113, %115 : vector<2x96xf32>
    %117 = vector.extract_strided_slice %111 {offsets = [0, 0], sizes = [2, 32], strides = [1, 1]} : vector<2x96xf32> to vector<2x32xf32>
    %118 = vector.extract_strided_slice %111 {offsets = [0, 32], sizes = [2, 32], strides = [1, 1]} : vector<2x96xf32> to vector<2x32xf32>
    %119 = vector.extract_strided_slice %111 {offsets = [0, 64], sizes = [2, 32], strides = [1, 1]} : vector<2x96xf32> to vector<2x32xf32>
    %120 = vector.extract_strided_slice %116 {offsets = [0, 0], sizes = [2, 32], strides = [1, 1]} : vector<2x96xf32> to vector<2x32xf32>
    %121 = vector.extract_strided_slice %116 {offsets = [0, 32], sizes = [2, 32], strides = [1, 1]} : vector<2x96xf32> to vector<2x32xf32>
    %122 = vector.extract_strided_slice %116 {offsets = [0, 64], sizes = [2, 32], strides = [1, 1]} : vector<2x96xf32> to vector<2x32xf32>
    %123 = arith.addf %117, %120 : vector<2x32xf32>
    %124 = arith.negf %123 : vector<2x32xf32>
    %125 = math.exp %124 : vector<2x32xf32>
    %cst_49 = arith.constant 1.000000e+00 : f32
    %126 = vector.broadcast %cst_49 : f32 to vector<2x32xf32>
    %127 = arith.addf %126, %125 : vector<2x32xf32>
    %128 = arith.divf %126, %127 : vector<2x32xf32>
    %129 = arith.addf %118, %121 : vector<2x32xf32>
    %130 = arith.negf %129 : vector<2x32xf32>
    %131 = math.exp %130 : vector<2x32xf32>
    %cst_50 = arith.constant 1.000000e+00 : f32
    %132 = vector.broadcast %cst_50 : f32 to vector<2x32xf32>
    %133 = arith.addf %132, %131 : vector<2x32xf32>
    %134 = arith.divf %132, %133 : vector<2x32xf32>
    %135 = arith.mulf %128, %122 : vector<2x32xf32>
    %136 = arith.addf %119, %135 : vector<2x32xf32>
    %137 = math.tanh %136 : vector<2x32xf32>
    %cst_51 = arith.constant 1.000000e+00 : f32
    %138 = vector.broadcast %cst_51 : f32 to vector<2x32xf32>
    %139 = arith.subf %138, %134 : vector<2x32xf32>
    %140 = arith.mulf %139, %137 : vector<2x32xf32>
    %141 = arith.mulf %134, %51 : vector<2x32xf32>
    %142 = arith.addf %140, %141 : vector<2x32xf32>
    %c0_52 = arith.constant 0 : index
    %c0_53 = arith.constant 0 : index
    %143 = vector.load %arg10[%c0_52, %c0_53] : memref<32x32xf32, #tpu.memory_space<vmem>>, vector<32x32xf32>
    %cst_54 = arith.constant dense<0.000000e+00> : vector<2x32xf32>
    %144 = tpu.matmul %142, %143, %cst_54 {dimension_numbers = #tpu.dot_dimension_numbers<[1], [0], [0], [1], [0, 0, 1, 1], [], []>} : vector<2x32xf32>, vector<32x32xf32>, vector<2x32xf32> -> vector<2x32xf32>
    %c0_55 = arith.constant 0 : index
    %c0_56 = arith.constant 0 : index
    %145 = vector.load %arg11[%c0_55, %c0_56] : memref<1x32xf32, #tpu.memory_space<vmem>>, vector<1x32xf32>
    %146 = vector.broadcast %145 : vector<1x32xf32> to vector<2x32xf32>
    %147 = arith.addf %144, %146 : vector<2x32xf32>
    %148 = vector.shape_cast %147 : vector<2x32xf32> to vector<2x1x32xf32>
    %149 = vector.broadcast %148 : vector<2x1x32xf32> to vector<2x8x32xf32>
    %150 = arith.mulf %149, %1 : vector<2x8x32xf32>
    %cst_57 = arith.constant dense<0.000000e+00> : vector<2x8xf32>
    %151 = vector.multi_reduction <add>, %150, %cst_57 [2] : vector<2x8x32xf32> to vector<2x8xf32>
    %cst_58 = arith.constant dense<0xFF800000> : vector<2xf32>
    %152 = vector.multi_reduction <maximumf>, %151, %cst_58 [1] : vector<2x8xf32> to vector<2xf32>
    %153 = vector.shape_cast %152 : vector<2xf32> to vector<2x1xf32>
    %154 = vector.broadcast %153 : vector<2x1xf32> to vector<2x8xf32>
    %155 = arith.subf %151, %154 : vector<2x8xf32>
    %156 = math.exp %155 : vector<2x8xf32>
    %cst_59 = arith.constant dense<0.000000e+00> : vector<2xf32>
    %157 = vector.multi_reduction <add>, %156, %cst_59 [1] : vector<2x8xf32> to vector<2xf32>
    %158 = vector.shape_cast %157 : vector<2xf32> to vector<2x1xf32>
    %159 = vector.broadcast %158 : vector<2x1xf32> to vector<2x8xf32>
    %160 = arith.divf %156, %159 : vector<2x8xf32>
    %161 = vector.shape_cast %160 : vector<2x8xf32> to vector<2x8x1xf32>
    %162 = vector.broadcast %161 : vector<2x8x1xf32> to vector<2x8x32xf32>
    %163 = arith.mulf %162, %1 : vector<2x8x32xf32>
    %cst_60 = arith.constant dense<0.000000e+00> : vector<2x32xf32>
    %164 = vector.multi_reduction <add>, %163, %cst_60 [1] : vector<2x8x32xf32> to vector<2x32xf32>
    %165 = vector.extract_strided_slice %16 {offsets = [2, 0, 0], sizes = [1, 2, 96], strides = [1, 1, 1]} : vector<8x2x96xf32> to vector<1x2x96xf32>
    %166 = vector.shape_cast %165 : vector<1x2x96xf32> to vector<2x96xf32>
    %c0_61 = arith.constant 0 : index
    %c0_62 = arith.constant 0 : index
    %167 = vector.load %arg12[%c0_61, %c0_62] : memref<32x96xf32, #tpu.memory_space<vmem>>, vector<32x96xf32>
    %cst_63 = arith.constant dense<0.000000e+00> : vector<2x96xf32>
    %168 = tpu.matmul %164, %167, %cst_63 {dimension_numbers = #tpu.dot_dimension_numbers<[1], [0], [0], [1], [0, 0, 1, 1], [], []>} : vector<2x32xf32>, vector<32x96xf32>, vector<2x96xf32> -> vector<2x96xf32>
    %169 = arith.addf %166, %168 : vector<2x96xf32>
    %c0_64 = arith.constant 0 : index
    %c0_65 = arith.constant 0 : index
    %170 = vector.load %arg13[%c0_64, %c0_65] : memref<32x96xf32, #tpu.memory_space<vmem>>, vector<32x96xf32>
    %cst_66 = arith.constant dense<0.000000e+00> : vector<2x96xf32>
    %171 = tpu.matmul %109, %170, %cst_66 {dimension_numbers = #tpu.dot_dimension_numbers<[1], [0], [0], [1], [0, 0, 1, 1], [], []>} : vector<2x32xf32>, vector<32x96xf32>, vector<2x96xf32> -> vector<2x96xf32>
    %c0_67 = arith.constant 0 : index
    %c0_68 = arith.constant 0 : index
    %172 = vector.load %arg14[%c0_67, %c0_68] : memref<1x96xf32, #tpu.memory_space<vmem>>, vector<1x96xf32>
    %173 = vector.broadcast %172 : vector<1x96xf32> to vector<2x96xf32>
    %174 = arith.addf %171, %173 : vector<2x96xf32>
    %175 = vector.extract_strided_slice %169 {offsets = [0, 0], sizes = [2, 32], strides = [1, 1]} : vector<2x96xf32> to vector<2x32xf32>
    %176 = vector.extract_strided_slice %169 {offsets = [0, 32], sizes = [2, 32], strides = [1, 1]} : vector<2x96xf32> to vector<2x32xf32>
    %177 = vector.extract_strided_slice %169 {offsets = [0, 64], sizes = [2, 32], strides = [1, 1]} : vector<2x96xf32> to vector<2x32xf32>
    %178 = vector.extract_strided_slice %174 {offsets = [0, 0], sizes = [2, 32], strides = [1, 1]} : vector<2x96xf32> to vector<2x32xf32>
    %179 = vector.extract_strided_slice %174 {offsets = [0, 32], sizes = [2, 32], strides = [1, 1]} : vector<2x96xf32> to vector<2x32xf32>
    %180 = vector.extract_strided_slice %174 {offsets = [0, 64], sizes = [2, 32], strides = [1, 1]} : vector<2x96xf32> to vector<2x32xf32>
    %181 = arith.addf %175, %178 : vector<2x32xf32>
    %182 = arith.negf %181 : vector<2x32xf32>
    %183 = math.exp %182 : vector<2x32xf32>
    %cst_69 = arith.constant 1.000000e+00 : f32
    %184 = vector.broadcast %cst_69 : f32 to vector<2x32xf32>
    %185 = arith.addf %184, %183 : vector<2x32xf32>
    %186 = arith.divf %184, %185 : vector<2x32xf32>
    %187 = arith.addf %176, %179 : vector<2x32xf32>
    %188 = arith.negf %187 : vector<2x32xf32>
    %189 = math.exp %188 : vector<2x32xf32>
    %cst_70 = arith.constant 1.000000e+00 : f32
    %190 = vector.broadcast %cst_70 : f32 to vector<2x32xf32>
    %191 = arith.addf %190, %189 : vector<2x32xf32>
    %192 = arith.divf %190, %191 : vector<2x32xf32>
    %193 = arith.mulf %186, %180 : vector<2x32xf32>
    %194 = arith.addf %177, %193 : vector<2x32xf32>
    %195 = math.tanh %194 : vector<2x32xf32>
    %cst_71 = arith.constant 1.000000e+00 : f32
    %196 = vector.broadcast %cst_71 : f32 to vector<2x32xf32>
    %197 = arith.subf %196, %192 : vector<2x32xf32>
    %198 = arith.mulf %197, %195 : vector<2x32xf32>
    %199 = arith.mulf %192, %109 : vector<2x32xf32>
    %200 = arith.addf %198, %199 : vector<2x32xf32>
    %201 = vector.extract_strided_slice %14 {offsets = [2, 0, 0], sizes = [1, 2, 96], strides = [1, 1, 1]} : vector<8x2x96xf32> to vector<1x2x96xf32>
    %202 = vector.shape_cast %201 : vector<1x2x96xf32> to vector<2x96xf32>
    %c0_72 = arith.constant 0 : index
    %c0_73 = arith.constant 0 : index
    %203 = vector.load %arg8[%c0_72, %c0_73] : memref<32x96xf32, #tpu.memory_space<vmem>>, vector<32x96xf32>
    %cst_74 = arith.constant dense<0.000000e+00> : vector<2x96xf32>
    %204 = tpu.matmul %142, %203, %cst_74 {dimension_numbers = #tpu.dot_dimension_numbers<[1], [0], [0], [1], [0, 0, 1, 1], [], []>} : vector<2x32xf32>, vector<32x96xf32>, vector<2x96xf32> -> vector<2x96xf32>
    %c0_75 = arith.constant 0 : index
    %c0_76 = arith.constant 0 : index
    %205 = vector.load %arg9[%c0_75, %c0_76] : memref<1x96xf32, #tpu.memory_space<vmem>>, vector<1x96xf32>
    %206 = vector.broadcast %205 : vector<1x96xf32> to vector<2x96xf32>
    %207 = arith.addf %204, %206 : vector<2x96xf32>
    %208 = vector.extract_strided_slice %202 {offsets = [0, 0], sizes = [2, 32], strides = [1, 1]} : vector<2x96xf32> to vector<2x32xf32>
    %209 = vector.extract_strided_slice %202 {offsets = [0, 32], sizes = [2, 32], strides = [1, 1]} : vector<2x96xf32> to vector<2x32xf32>
    %210 = vector.extract_strided_slice %202 {offsets = [0, 64], sizes = [2, 32], strides = [1, 1]} : vector<2x96xf32> to vector<2x32xf32>
    %211 = vector.extract_strided_slice %207 {offsets = [0, 0], sizes = [2, 32], strides = [1, 1]} : vector<2x96xf32> to vector<2x32xf32>
    %212 = vector.extract_strided_slice %207 {offsets = [0, 32], sizes = [2, 32], strides = [1, 1]} : vector<2x96xf32> to vector<2x32xf32>
    %213 = vector.extract_strided_slice %207 {offsets = [0, 64], sizes = [2, 32], strides = [1, 1]} : vector<2x96xf32> to vector<2x32xf32>
    %214 = arith.addf %208, %211 : vector<2x32xf32>
    %215 = arith.negf %214 : vector<2x32xf32>
    %216 = math.exp %215 : vector<2x32xf32>
    %cst_77 = arith.constant 1.000000e+00 : f32
    %217 = vector.broadcast %cst_77 : f32 to vector<2x32xf32>
    %218 = arith.addf %217, %216 : vector<2x32xf32>
    %219 = arith.divf %217, %218 : vector<2x32xf32>
    %220 = arith.addf %209, %212 : vector<2x32xf32>
    %221 = arith.negf %220 : vector<2x32xf32>
    %222 = math.exp %221 : vector<2x32xf32>
    %cst_78 = arith.constant 1.000000e+00 : f32
    %223 = vector.broadcast %cst_78 : f32 to vector<2x32xf32>
    %224 = arith.addf %223, %222 : vector<2x32xf32>
    %225 = arith.divf %223, %224 : vector<2x32xf32>
    %226 = arith.mulf %219, %213 : vector<2x32xf32>
    %227 = arith.addf %210, %226 : vector<2x32xf32>
    %228 = math.tanh %227 : vector<2x32xf32>
    %cst_79 = arith.constant 1.000000e+00 : f32
    %229 = vector.broadcast %cst_79 : f32 to vector<2x32xf32>
    %230 = arith.subf %229, %225 : vector<2x32xf32>
    %231 = arith.mulf %230, %228 : vector<2x32xf32>
    %232 = arith.mulf %225, %142 : vector<2x32xf32>
    %233 = arith.addf %231, %232 : vector<2x32xf32>
    %c0_80 = arith.constant 0 : index
    %c0_81 = arith.constant 0 : index
    %234 = vector.load %arg10[%c0_80, %c0_81] : memref<32x32xf32, #tpu.memory_space<vmem>>, vector<32x32xf32>
    %cst_82 = arith.constant dense<0.000000e+00> : vector<2x32xf32>
    %235 = tpu.matmul %233, %234, %cst_82 {dimension_numbers = #tpu.dot_dimension_numbers<[1], [0], [0], [1], [0, 0, 1, 1], [], []>} : vector<2x32xf32>, vector<32x32xf32>, vector<2x32xf32> -> vector<2x32xf32>
    %c0_83 = arith.constant 0 : index
    %c0_84 = arith.constant 0 : index
    %236 = vector.load %arg11[%c0_83, %c0_84] : memref<1x32xf32, #tpu.memory_space<vmem>>, vector<1x32xf32>
    %237 = vector.broadcast %236 : vector<1x32xf32> to vector<2x32xf32>
    %238 = arith.addf %235, %237 : vector<2x32xf32>
    %239 = vector.shape_cast %238 : vector<2x32xf32> to vector<2x1x32xf32>
    %240 = vector.broadcast %239 : vector<2x1x32xf32> to vector<2x8x32xf32>
    %241 = arith.mulf %240, %1 : vector<2x8x32xf32>
    %cst_85 = arith.constant dense<0.000000e+00> : vector<2x8xf32>
    %242 = vector.multi_reduction <add>, %241, %cst_85 [2] : vector<2x8x32xf32> to vector<2x8xf32>
    %cst_86 = arith.constant dense<0xFF800000> : vector<2xf32>
    %243 = vector.multi_reduction <maximumf>, %242, %cst_86 [1] : vector<2x8xf32> to vector<2xf32>
    %244 = vector.shape_cast %243 : vector<2xf32> to vector<2x1xf32>
    %245 = vector.broadcast %244 : vector<2x1xf32> to vector<2x8xf32>
    %246 = arith.subf %242, %245 : vector<2x8xf32>
    %247 = math.exp %246 : vector<2x8xf32>
    %cst_87 = arith.constant dense<0.000000e+00> : vector<2xf32>
    %248 = vector.multi_reduction <add>, %247, %cst_87 [1] : vector<2x8xf32> to vector<2xf32>
    %249 = vector.shape_cast %248 : vector<2xf32> to vector<2x1xf32>
    %250 = vector.broadcast %249 : vector<2x1xf32> to vector<2x8xf32>
    %251 = arith.divf %247, %250 : vector<2x8xf32>
    %252 = vector.shape_cast %251 : vector<2x8xf32> to vector<2x8x1xf32>
    %253 = vector.broadcast %252 : vector<2x8x1xf32> to vector<2x8x32xf32>
    %254 = arith.mulf %253, %1 : vector<2x8x32xf32>
    %cst_88 = arith.constant dense<0.000000e+00> : vector<2x32xf32>
    %255 = vector.multi_reduction <add>, %254, %cst_88 [1] : vector<2x8x32xf32> to vector<2x32xf32>
    %256 = vector.extract_strided_slice %16 {offsets = [3, 0, 0], sizes = [1, 2, 96], strides = [1, 1, 1]} : vector<8x2x96xf32> to vector<1x2x96xf32>
    %257 = vector.shape_cast %256 : vector<1x2x96xf32> to vector<2x96xf32>
    %c0_89 = arith.constant 0 : index
    %c0_90 = arith.constant 0 : index
    %258 = vector.load %arg12[%c0_89, %c0_90] : memref<32x96xf32, #tpu.memory_space<vmem>>, vector<32x96xf32>
    %cst_91 = arith.constant dense<0.000000e+00> : vector<2x96xf32>
    %259 = tpu.matmul %255, %258, %cst_91 {dimension_numbers = #tpu.dot_dimension_numbers<[1], [0], [0], [1], [0, 0, 1, 1], [], []>} : vector<2x32xf32>, vector<32x96xf32>, vector<2x96xf32> -> vector<2x96xf32>
    %260 = arith.addf %257, %259 : vector<2x96xf32>
    %c0_92 = arith.constant 0 : index
    %c0_93 = arith.constant 0 : index
    %261 = vector.load %arg13[%c0_92, %c0_93] : memref<32x96xf32, #tpu.memory_space<vmem>>, vector<32x96xf32>
    %cst_94 = arith.constant dense<0.000000e+00> : vector<2x96xf32>
    %262 = tpu.matmul %200, %261, %cst_94 {dimension_numbers = #tpu.dot_dimension_numbers<[1], [0], [0], [1], [0, 0, 1, 1], [], []>} : vector<2x32xf32>, vector<32x96xf32>, vector<2x96xf32> -> vector<2x96xf32>
    %c0_95 = arith.constant 0 : index
    %c0_96 = arith.constant 0 : index
    %263 = vector.load %arg14[%c0_95, %c0_96] : memref<1x96xf32, #tpu.memory_space<vmem>>, vector<1x96xf32>
    %264 = vector.broadcast %263 : vector<1x96xf32> to vector<2x96xf32>
    %265 = arith.addf %262, %264 : vector<2x96xf32>
    %266 = vector.extract_strided_slice %260 {offsets = [0, 0], sizes = [2, 32], strides = [1, 1]} : vector<2x96xf32> to vector<2x32xf32>
    %267 = vector.extract_strided_slice %260 {offsets = [0, 32], sizes = [2, 32], strides = [1, 1]} : vector<2x96xf32> to vector<2x32xf32>
    %268 = vector.extract_strided_slice %260 {offsets = [0, 64], sizes = [2, 32], strides = [1, 1]} : vector<2x96xf32> to vector<2x32xf32>
    %269 = vector.extract_strided_slice %265 {offsets = [0, 0], sizes = [2, 32], strides = [1, 1]} : vector<2x96xf32> to vector<2x32xf32>
    %270 = vector.extract_strided_slice %265 {offsets = [0, 32], sizes = [2, 32], strides = [1, 1]} : vector<2x96xf32> to vector<2x32xf32>
    %271 = vector.extract_strided_slice %265 {offsets = [0, 64], sizes = [2, 32], strides = [1, 1]} : vector<2x96xf32> to vector<2x32xf32>
    %272 = arith.addf %266, %269 : vector<2x32xf32>
    %273 = arith.negf %272 : vector<2x32xf32>
    %274 = math.exp %273 : vector<2x32xf32>
    %cst_97 = arith.constant 1.000000e+00 : f32
    %275 = vector.broadcast %cst_97 : f32 to vector<2x32xf32>
    %276 = arith.addf %275, %274 : vector<2x32xf32>
    %277 = arith.divf %275, %276 : vector<2x32xf32>
    %278 = arith.addf %267, %270 : vector<2x32xf32>
    %279 = arith.negf %278 : vector<2x32xf32>
    %280 = math.exp %279 : vector<2x32xf32>
    %cst_98 = arith.constant 1.000000e+00 : f32
    %281 = vector.broadcast %cst_98 : f32 to vector<2x32xf32>
    %282 = arith.addf %281, %280 : vector<2x32xf32>
    %283 = arith.divf %281, %282 : vector<2x32xf32>
    %284 = arith.mulf %277, %271 : vector<2x32xf32>
    %285 = arith.addf %268, %284 : vector<2x32xf32>
    %286 = math.tanh %285 : vector<2x32xf32>
    %cst_99 = arith.constant 1.000000e+00 : f32
    %287 = vector.broadcast %cst_99 : f32 to vector<2x32xf32>
    %288 = arith.subf %287, %283 : vector<2x32xf32>
    %289 = arith.mulf %288, %286 : vector<2x32xf32>
    %290 = arith.mulf %283, %200 : vector<2x32xf32>
    %291 = arith.addf %289, %290 : vector<2x32xf32>
    %292 = vector.extract_strided_slice %14 {offsets = [3, 0, 0], sizes = [1, 2, 96], strides = [1, 1, 1]} : vector<8x2x96xf32> to vector<1x2x96xf32>
    %293 = vector.shape_cast %292 : vector<1x2x96xf32> to vector<2x96xf32>
    %c0_100 = arith.constant 0 : index
    %c0_101 = arith.constant 0 : index
    %294 = vector.load %arg8[%c0_100, %c0_101] : memref<32x96xf32, #tpu.memory_space<vmem>>, vector<32x96xf32>
    %cst_102 = arith.constant dense<0.000000e+00> : vector<2x96xf32>
    %295 = tpu.matmul %233, %294, %cst_102 {dimension_numbers = #tpu.dot_dimension_numbers<[1], [0], [0], [1], [0, 0, 1, 1], [], []>} : vector<2x32xf32>, vector<32x96xf32>, vector<2x96xf32> -> vector<2x96xf32>
    %c0_103 = arith.constant 0 : index
    %c0_104 = arith.constant 0 : index
    %296 = vector.load %arg9[%c0_103, %c0_104] : memref<1x96xf32, #tpu.memory_space<vmem>>, vector<1x96xf32>
    %297 = vector.broadcast %296 : vector<1x96xf32> to vector<2x96xf32>
    %298 = arith.addf %295, %297 : vector<2x96xf32>
    %299 = vector.extract_strided_slice %293 {offsets = [0, 0], sizes = [2, 32], strides = [1, 1]} : vector<2x96xf32> to vector<2x32xf32>
    %300 = vector.extract_strided_slice %293 {offsets = [0, 32], sizes = [2, 32], strides = [1, 1]} : vector<2x96xf32> to vector<2x32xf32>
    %301 = vector.extract_strided_slice %293 {offsets = [0, 64], sizes = [2, 32], strides = [1, 1]} : vector<2x96xf32> to vector<2x32xf32>
    %302 = vector.extract_strided_slice %298 {offsets = [0, 0], sizes = [2, 32], strides = [1, 1]} : vector<2x96xf32> to vector<2x32xf32>
    %303 = vector.extract_strided_slice %298 {offsets = [0, 32], sizes = [2, 32], strides = [1, 1]} : vector<2x96xf32> to vector<2x32xf32>
    %304 = vector.extract_strided_slice %298 {offsets = [0, 64], sizes = [2, 32], strides = [1, 1]} : vector<2x96xf32> to vector<2x32xf32>
    %305 = arith.addf %299, %302 : vector<2x32xf32>
    %306 = arith.negf %305 : vector<2x32xf32>
    %307 = math.exp %306 : vector<2x32xf32>
    %cst_105 = arith.constant 1.000000e+00 : f32
    %308 = vector.broadcast %cst_105 : f32 to vector<2x32xf32>
    %309 = arith.addf %308, %307 : vector<2x32xf32>
    %310 = arith.divf %308, %309 : vector<2x32xf32>
    %311 = arith.addf %300, %303 : vector<2x32xf32>
    %312 = arith.negf %311 : vector<2x32xf32>
    %313 = math.exp %312 : vector<2x32xf32>
    %cst_106 = arith.constant 1.000000e+00 : f32
    %314 = vector.broadcast %cst_106 : f32 to vector<2x32xf32>
    %315 = arith.addf %314, %313 : vector<2x32xf32>
    %316 = arith.divf %314, %315 : vector<2x32xf32>
    %317 = arith.mulf %310, %304 : vector<2x32xf32>
    %318 = arith.addf %301, %317 : vector<2x32xf32>
    %319 = math.tanh %318 : vector<2x32xf32>
    %cst_107 = arith.constant 1.000000e+00 : f32
    %320 = vector.broadcast %cst_107 : f32 to vector<2x32xf32>
    %321 = arith.subf %320, %316 : vector<2x32xf32>
    %322 = arith.mulf %321, %319 : vector<2x32xf32>
    %323 = arith.mulf %316, %233 : vector<2x32xf32>
    %324 = arith.addf %322, %323 : vector<2x32xf32>
    %c0_108 = arith.constant 0 : index
    %c0_109 = arith.constant 0 : index
    %325 = vector.load %arg10[%c0_108, %c0_109] : memref<32x32xf32, #tpu.memory_space<vmem>>, vector<32x32xf32>
    %cst_110 = arith.constant dense<0.000000e+00> : vector<2x32xf32>
    %326 = tpu.matmul %324, %325, %cst_110 {dimension_numbers = #tpu.dot_dimension_numbers<[1], [0], [0], [1], [0, 0, 1, 1], [], []>} : vector<2x32xf32>, vector<32x32xf32>, vector<2x32xf32> -> vector<2x32xf32>
    %c0_111 = arith.constant 0 : index
    %c0_112 = arith.constant 0 : index
    %327 = vector.load %arg11[%c0_111, %c0_112] : memref<1x32xf32, #tpu.memory_space<vmem>>, vector<1x32xf32>
    %328 = vector.broadcast %327 : vector<1x32xf32> to vector<2x32xf32>
    %329 = arith.addf %326, %328 : vector<2x32xf32>
    %330 = vector.shape_cast %329 : vector<2x32xf32> to vector<2x1x32xf32>
    %331 = vector.broadcast %330 : vector<2x1x32xf32> to vector<2x8x32xf32>
    %332 = arith.mulf %331, %1 : vector<2x8x32xf32>
    %cst_113 = arith.constant dense<0.000000e+00> : vector<2x8xf32>
    %333 = vector.multi_reduction <add>, %332, %cst_113 [2] : vector<2x8x32xf32> to vector<2x8xf32>
    %cst_114 = arith.constant dense<0xFF800000> : vector<2xf32>
    %334 = vector.multi_reduction <maximumf>, %333, %cst_114 [1] : vector<2x8xf32> to vector<2xf32>
    %335 = vector.shape_cast %334 : vector<2xf32> to vector<2x1xf32>
    %336 = vector.broadcast %335 : vector<2x1xf32> to vector<2x8xf32>
    %337 = arith.subf %333, %336 : vector<2x8xf32>
    %338 = math.exp %337 : vector<2x8xf32>
    %cst_115 = arith.constant dense<0.000000e+00> : vector<2xf32>
    %339 = vector.multi_reduction <add>, %338, %cst_115 [1] : vector<2x8xf32> to vector<2xf32>
    %340 = vector.shape_cast %339 : vector<2xf32> to vector<2x1xf32>
    %341 = vector.broadcast %340 : vector<2x1xf32> to vector<2x8xf32>
    %342 = arith.divf %338, %341 : vector<2x8xf32>
    %343 = vector.shape_cast %342 : vector<2x8xf32> to vector<2x8x1xf32>
    %344 = vector.broadcast %343 : vector<2x8x1xf32> to vector<2x8x32xf32>
    %345 = arith.mulf %344, %1 : vector<2x8x32xf32>
    %cst_116 = arith.constant dense<0.000000e+00> : vector<2x32xf32>
    %346 = vector.multi_reduction <add>, %345, %cst_116 [1] : vector<2x8x32xf32> to vector<2x32xf32>
    %347 = vector.extract_strided_slice %16 {offsets = [4, 0, 0], sizes = [1, 2, 96], strides = [1, 1, 1]} : vector<8x2x96xf32> to vector<1x2x96xf32>
    %348 = vector.shape_cast %347 : vector<1x2x96xf32> to vector<2x96xf32>
    %c0_117 = arith.constant 0 : index
    %c0_118 = arith.constant 0 : index
    %349 = vector.load %arg12[%c0_117, %c0_118] : memref<32x96xf32, #tpu.memory_space<vmem>>, vector<32x96xf32>
    %cst_119 = arith.constant dense<0.000000e+00> : vector<2x96xf32>
    %350 = tpu.matmul %346, %349, %cst_119 {dimension_numbers = #tpu.dot_dimension_numbers<[1], [0], [0], [1], [0, 0, 1, 1], [], []>} : vector<2x32xf32>, vector<32x96xf32>, vector<2x96xf32> -> vector<2x96xf32>
    %351 = arith.addf %348, %350 : vector<2x96xf32>
    %c0_120 = arith.constant 0 : index
    %c0_121 = arith.constant 0 : index
    %352 = vector.load %arg13[%c0_120, %c0_121] : memref<32x96xf32, #tpu.memory_space<vmem>>, vector<32x96xf32>
    %cst_122 = arith.constant dense<0.000000e+00> : vector<2x96xf32>
    %353 = tpu.matmul %291, %352, %cst_122 {dimension_numbers = #tpu.dot_dimension_numbers<[1], [0], [0], [1], [0, 0, 1, 1], [], []>} : vector<2x32xf32>, vector<32x96xf32>, vector<2x96xf32> -> vector<2x96xf32>
    %c0_123 = arith.constant 0 : index
    %c0_124 = arith.constant 0 : index
    %354 = vector.load %arg14[%c0_123, %c0_124] : memref<1x96xf32, #tpu.memory_space<vmem>>, vector<1x96xf32>
    %355 = vector.broadcast %354 : vector<1x96xf32> to vector<2x96xf32>
    %356 = arith.addf %353, %355 : vector<2x96xf32>
    %357 = vector.extract_strided_slice %351 {offsets = [0, 0], sizes = [2, 32], strides = [1, 1]} : vector<2x96xf32> to vector<2x32xf32>
    %358 = vector.extract_strided_slice %351 {offsets = [0, 32], sizes = [2, 32], strides = [1, 1]} : vector<2x96xf32> to vector<2x32xf32>
    %359 = vector.extract_strided_slice %351 {offsets = [0, 64], sizes = [2, 32], strides = [1, 1]} : vector<2x96xf32> to vector<2x32xf32>
    %360 = vector.extract_strided_slice %356 {offsets = [0, 0], sizes = [2, 32], strides = [1, 1]} : vector<2x96xf32> to vector<2x32xf32>
    %361 = vector.extract_strided_slice %356 {offsets = [0, 32], sizes = [2, 32], strides = [1, 1]} : vector<2x96xf32> to vector<2x32xf32>
    %362 = vector.extract_strided_slice %356 {offsets = [0, 64], sizes = [2, 32], strides = [1, 1]} : vector<2x96xf32> to vector<2x32xf32>
    %363 = arith.addf %357, %360 : vector<2x32xf32>
    %364 = arith.negf %363 : vector<2x32xf32>
    %365 = math.exp %364 : vector<2x32xf32>
    %cst_125 = arith.constant 1.000000e+00 : f32
    %366 = vector.broadcast %cst_125 : f32 to vector<2x32xf32>
    %367 = arith.addf %366, %365 : vector<2x32xf32>
    %368 = arith.divf %366, %367 : vector<2x32xf32>
    %369 = arith.addf %358, %361 : vector<2x32xf32>
    %370 = arith.negf %369 : vector<2x32xf32>
    %371 = math.exp %370 : vector<2x32xf32>
    %cst_126 = arith.constant 1.000000e+00 : f32
    %372 = vector.broadcast %cst_126 : f32 to vector<2x32xf32>
    %373 = arith.addf %372, %371 : vector<2x32xf32>
    %374 = arith.divf %372, %373 : vector<2x32xf32>
    %375 = arith.mulf %368, %362 : vector<2x32xf32>
    %376 = arith.addf %359, %375 : vector<2x32xf32>
    %377 = math.tanh %376 : vector<2x32xf32>
    %cst_127 = arith.constant 1.000000e+00 : f32
    %378 = vector.broadcast %cst_127 : f32 to vector<2x32xf32>
    %379 = arith.subf %378, %374 : vector<2x32xf32>
    %380 = arith.mulf %379, %377 : vector<2x32xf32>
    %381 = arith.mulf %374, %291 : vector<2x32xf32>
    %382 = arith.addf %380, %381 : vector<2x32xf32>
    %383 = vector.extract_strided_slice %14 {offsets = [4, 0, 0], sizes = [1, 2, 96], strides = [1, 1, 1]} : vector<8x2x96xf32> to vector<1x2x96xf32>
    %384 = vector.shape_cast %383 : vector<1x2x96xf32> to vector<2x96xf32>
    %c0_128 = arith.constant 0 : index
    %c0_129 = arith.constant 0 : index
    %385 = vector.load %arg8[%c0_128, %c0_129] : memref<32x96xf32, #tpu.memory_space<vmem>>, vector<32x96xf32>
    %cst_130 = arith.constant dense<0.000000e+00> : vector<2x96xf32>
    %386 = tpu.matmul %324, %385, %cst_130 {dimension_numbers = #tpu.dot_dimension_numbers<[1], [0], [0], [1], [0, 0, 1, 1], [], []>} : vector<2x32xf32>, vector<32x96xf32>, vector<2x96xf32> -> vector<2x96xf32>
    %c0_131 = arith.constant 0 : index
    %c0_132 = arith.constant 0 : index
    %387 = vector.load %arg9[%c0_131, %c0_132] : memref<1x96xf32, #tpu.memory_space<vmem>>, vector<1x96xf32>
    %388 = vector.broadcast %387 : vector<1x96xf32> to vector<2x96xf32>
    %389 = arith.addf %386, %388 : vector<2x96xf32>
    %390 = vector.extract_strided_slice %384 {offsets = [0, 0], sizes = [2, 32], strides = [1, 1]} : vector<2x96xf32> to vector<2x32xf32>
    %391 = vector.extract_strided_slice %384 {offsets = [0, 32], sizes = [2, 32], strides = [1, 1]} : vector<2x96xf32> to vector<2x32xf32>
    %392 = vector.extract_strided_slice %384 {offsets = [0, 64], sizes = [2, 32], strides = [1, 1]} : vector<2x96xf32> to vector<2x32xf32>
    %393 = vector.extract_strided_slice %389 {offsets = [0, 0], sizes = [2, 32], strides = [1, 1]} : vector<2x96xf32> to vector<2x32xf32>
    %394 = vector.extract_strided_slice %389 {offsets = [0, 32], sizes = [2, 32], strides = [1, 1]} : vector<2x96xf32> to vector<2x32xf32>
    %395 = vector.extract_strided_slice %389 {offsets = [0, 64], sizes = [2, 32], strides = [1, 1]} : vector<2x96xf32> to vector<2x32xf32>
    %396 = arith.addf %390, %393 : vector<2x32xf32>
    %397 = arith.negf %396 : vector<2x32xf32>
    %398 = math.exp %397 : vector<2x32xf32>
    %cst_133 = arith.constant 1.000000e+00 : f32
    %399 = vector.broadcast %cst_133 : f32 to vector<2x32xf32>
    %400 = arith.addf %399, %398 : vector<2x32xf32>
    %401 = arith.divf %399, %400 : vector<2x32xf32>
    %402 = arith.addf %391, %394 : vector<2x32xf32>
    %403 = arith.negf %402 : vector<2x32xf32>
    %404 = math.exp %403 : vector<2x32xf32>
    %cst_134 = arith.constant 1.000000e+00 : f32
    %405 = vector.broadcast %cst_134 : f32 to vector<2x32xf32>
    %406 = arith.addf %405, %404 : vector<2x32xf32>
    %407 = arith.divf %405, %406 : vector<2x32xf32>
    %408 = arith.mulf %401, %395 : vector<2x32xf32>
    %409 = arith.addf %392, %408 : vector<2x32xf32>
    %410 = math.tanh %409 : vector<2x32xf32>
    %cst_135 = arith.constant 1.000000e+00 : f32
    %411 = vector.broadcast %cst_135 : f32 to vector<2x32xf32>
    %412 = arith.subf %411, %407 : vector<2x32xf32>
    %413 = arith.mulf %412, %410 : vector<2x32xf32>
    %414 = arith.mulf %407, %324 : vector<2x32xf32>
    %415 = arith.addf %413, %414 : vector<2x32xf32>
    %c0_136 = arith.constant 0 : index
    %c0_137 = arith.constant 0 : index
    %416 = vector.load %arg10[%c0_136, %c0_137] : memref<32x32xf32, #tpu.memory_space<vmem>>, vector<32x32xf32>
    %cst_138 = arith.constant dense<0.000000e+00> : vector<2x32xf32>
    %417 = tpu.matmul %415, %416, %cst_138 {dimension_numbers = #tpu.dot_dimension_numbers<[1], [0], [0], [1], [0, 0, 1, 1], [], []>} : vector<2x32xf32>, vector<32x32xf32>, vector<2x32xf32> -> vector<2x32xf32>
    %c0_139 = arith.constant 0 : index
    %c0_140 = arith.constant 0 : index
    %418 = vector.load %arg11[%c0_139, %c0_140] : memref<1x32xf32, #tpu.memory_space<vmem>>, vector<1x32xf32>
    %419 = vector.broadcast %418 : vector<1x32xf32> to vector<2x32xf32>
    %420 = arith.addf %417, %419 : vector<2x32xf32>
    %421 = vector.shape_cast %420 : vector<2x32xf32> to vector<2x1x32xf32>
    %422 = vector.broadcast %421 : vector<2x1x32xf32> to vector<2x8x32xf32>
    %423 = arith.mulf %422, %1 : vector<2x8x32xf32>
    %cst_141 = arith.constant dense<0.000000e+00> : vector<2x8xf32>
    %424 = vector.multi_reduction <add>, %423, %cst_141 [2] : vector<2x8x32xf32> to vector<2x8xf32>
    %cst_142 = arith.constant dense<0xFF800000> : vector<2xf32>
    %425 = vector.multi_reduction <maximumf>, %424, %cst_142 [1] : vector<2x8xf32> to vector<2xf32>
    %426 = vector.shape_cast %425 : vector<2xf32> to vector<2x1xf32>
    %427 = vector.broadcast %426 : vector<2x1xf32> to vector<2x8xf32>
    %428 = arith.subf %424, %427 : vector<2x8xf32>
    %429 = math.exp %428 : vector<2x8xf32>
    %cst_143 = arith.constant dense<0.000000e+00> : vector<2xf32>
    %430 = vector.multi_reduction <add>, %429, %cst_143 [1] : vector<2x8xf32> to vector<2xf32>
    %431 = vector.shape_cast %430 : vector<2xf32> to vector<2x1xf32>
    %432 = vector.broadcast %431 : vector<2x1xf32> to vector<2x8xf32>
    %433 = arith.divf %429, %432 : vector<2x8xf32>
    %434 = vector.shape_cast %433 : vector<2x8xf32> to vector<2x8x1xf32>
    %435 = vector.broadcast %434 : vector<2x8x1xf32> to vector<2x8x32xf32>
    %436 = arith.mulf %435, %1 : vector<2x8x32xf32>
    %cst_144 = arith.constant dense<0.000000e+00> : vector<2x32xf32>
    %437 = vector.multi_reduction <add>, %436, %cst_144 [1] : vector<2x8x32xf32> to vector<2x32xf32>
    %438 = vector.extract_strided_slice %16 {offsets = [5, 0, 0], sizes = [1, 2, 96], strides = [1, 1, 1]} : vector<8x2x96xf32> to vector<1x2x96xf32>
    %439 = vector.shape_cast %438 : vector<1x2x96xf32> to vector<2x96xf32>
    %c0_145 = arith.constant 0 : index
    %c0_146 = arith.constant 0 : index
    %440 = vector.load %arg12[%c0_145, %c0_146] : memref<32x96xf32, #tpu.memory_space<vmem>>, vector<32x96xf32>
    %cst_147 = arith.constant dense<0.000000e+00> : vector<2x96xf32>
    %441 = tpu.matmul %437, %440, %cst_147 {dimension_numbers = #tpu.dot_dimension_numbers<[1], [0], [0], [1], [0, 0, 1, 1], [], []>} : vector<2x32xf32>, vector<32x96xf32>, vector<2x96xf32> -> vector<2x96xf32>
    %442 = arith.addf %439, %441 : vector<2x96xf32>
    %c0_148 = arith.constant 0 : index
    %c0_149 = arith.constant 0 : index
    %443 = vector.load %arg13[%c0_148, %c0_149] : memref<32x96xf32, #tpu.memory_space<vmem>>, vector<32x96xf32>
    %cst_150 = arith.constant dense<0.000000e+00> : vector<2x96xf32>
    %444 = tpu.matmul %382, %443, %cst_150 {dimension_numbers = #tpu.dot_dimension_numbers<[1], [0], [0], [1], [0, 0, 1, 1], [], []>} : vector<2x32xf32>, vector<32x96xf32>, vector<2x96xf32> -> vector<2x96xf32>
    %c0_151 = arith.constant 0 : index
    %c0_152 = arith.constant 0 : index
    %445 = vector.load %arg14[%c0_151, %c0_152] : memref<1x96xf32, #tpu.memory_space<vmem>>, vector<1x96xf32>
    %446 = vector.broadcast %445 : vector<1x96xf32> to vector<2x96xf32>
    %447 = arith.addf %444, %446 : vector<2x96xf32>
    %448 = vector.extract_strided_slice %442 {offsets = [0, 0], sizes = [2, 32], strides = [1, 1]} : vector<2x96xf32> to vector<2x32xf32>
    %449 = vector.extract_strided_slice %442 {offsets = [0, 32], sizes = [2, 32], strides = [1, 1]} : vector<2x96xf32> to vector<2x32xf32>
    %450 = vector.extract_strided_slice %442 {offsets = [0, 64], sizes = [2, 32], strides = [1, 1]} : vector<2x96xf32> to vector<2x32xf32>
    %451 = vector.extract_strided_slice %447 {offsets = [0, 0], sizes = [2, 32], strides = [1, 1]} : vector<2x96xf32> to vector<2x32xf32>
    %452 = vector.extract_strided_slice %447 {offsets = [0, 32], sizes = [2, 32], strides = [1, 1]} : vector<2x96xf32> to vector<2x32xf32>
    %453 = vector.extract_strided_slice %447 {offsets = [0, 64], sizes = [2, 32], strides = [1, 1]} : vector<2x96xf32> to vector<2x32xf32>
    %454 = arith.addf %448, %451 : vector<2x32xf32>
    %455 = arith.negf %454 : vector<2x32xf32>
    %456 = math.exp %455 : vector<2x32xf32>
    %cst_153 = arith.constant 1.000000e+00 : f32
    %457 = vector.broadcast %cst_153 : f32 to vector<2x32xf32>
    %458 = arith.addf %457, %456 : vector<2x32xf32>
    %459 = arith.divf %457, %458 : vector<2x32xf32>
    %460 = arith.addf %449, %452 : vector<2x32xf32>
    %461 = arith.negf %460 : vector<2x32xf32>
    %462 = math.exp %461 : vector<2x32xf32>
    %cst_154 = arith.constant 1.000000e+00 : f32
    %463 = vector.broadcast %cst_154 : f32 to vector<2x32xf32>
    %464 = arith.addf %463, %462 : vector<2x32xf32>
    %465 = arith.divf %463, %464 : vector<2x32xf32>
    %466 = arith.mulf %459, %453 : vector<2x32xf32>
    %467 = arith.addf %450, %466 : vector<2x32xf32>
    %468 = math.tanh %467 : vector<2x32xf32>
    %cst_155 = arith.constant 1.000000e+00 : f32
    %469 = vector.broadcast %cst_155 : f32 to vector<2x32xf32>
    %470 = arith.subf %469, %465 : vector<2x32xf32>
    %471 = arith.mulf %470, %468 : vector<2x32xf32>
    %472 = arith.mulf %465, %382 : vector<2x32xf32>
    %473 = arith.addf %471, %472 : vector<2x32xf32>
    %474 = vector.extract_strided_slice %14 {offsets = [5, 0, 0], sizes = [1, 2, 96], strides = [1, 1, 1]} : vector<8x2x96xf32> to vector<1x2x96xf32>
    %475 = vector.shape_cast %474 : vector<1x2x96xf32> to vector<2x96xf32>
    %c0_156 = arith.constant 0 : index
    %c0_157 = arith.constant 0 : index
    %476 = vector.load %arg8[%c0_156, %c0_157] : memref<32x96xf32, #tpu.memory_space<vmem>>, vector<32x96xf32>
    %cst_158 = arith.constant dense<0.000000e+00> : vector<2x96xf32>
    %477 = tpu.matmul %415, %476, %cst_158 {dimension_numbers = #tpu.dot_dimension_numbers<[1], [0], [0], [1], [0, 0, 1, 1], [], []>} : vector<2x32xf32>, vector<32x96xf32>, vector<2x96xf32> -> vector<2x96xf32>
    %c0_159 = arith.constant 0 : index
    %c0_160 = arith.constant 0 : index
    %478 = vector.load %arg9[%c0_159, %c0_160] : memref<1x96xf32, #tpu.memory_space<vmem>>, vector<1x96xf32>
    %479 = vector.broadcast %478 : vector<1x96xf32> to vector<2x96xf32>
    %480 = arith.addf %477, %479 : vector<2x96xf32>
    %481 = vector.extract_strided_slice %475 {offsets = [0, 0], sizes = [2, 32], strides = [1, 1]} : vector<2x96xf32> to vector<2x32xf32>
    %482 = vector.extract_strided_slice %475 {offsets = [0, 32], sizes = [2, 32], strides = [1, 1]} : vector<2x96xf32> to vector<2x32xf32>
    %483 = vector.extract_strided_slice %475 {offsets = [0, 64], sizes = [2, 32], strides = [1, 1]} : vector<2x96xf32> to vector<2x32xf32>
    %484 = vector.extract_strided_slice %480 {offsets = [0, 0], sizes = [2, 32], strides = [1, 1]} : vector<2x96xf32> to vector<2x32xf32>
    %485 = vector.extract_strided_slice %480 {offsets = [0, 32], sizes = [2, 32], strides = [1, 1]} : vector<2x96xf32> to vector<2x32xf32>
    %486 = vector.extract_strided_slice %480 {offsets = [0, 64], sizes = [2, 32], strides = [1, 1]} : vector<2x96xf32> to vector<2x32xf32>
    %487 = arith.addf %481, %484 : vector<2x32xf32>
    %488 = arith.negf %487 : vector<2x32xf32>
    %489 = math.exp %488 : vector<2x32xf32>
    %cst_161 = arith.constant 1.000000e+00 : f32
    %490 = vector.broadcast %cst_161 : f32 to vector<2x32xf32>
    %491 = arith.addf %490, %489 : vector<2x32xf32>
    %492 = arith.divf %490, %491 : vector<2x32xf32>
    %493 = arith.addf %482, %485 : vector<2x32xf32>
    %494 = arith.negf %493 : vector<2x32xf32>
    %495 = math.exp %494 : vector<2x32xf32>
    %cst_162 = arith.constant 1.000000e+00 : f32
    %496 = vector.broadcast %cst_162 : f32 to vector<2x32xf32>
    %497 = arith.addf %496, %495 : vector<2x32xf32>
    %498 = arith.divf %496, %497 : vector<2x32xf32>
    %499 = arith.mulf %492, %486 : vector<2x32xf32>
    %500 = arith.addf %483, %499 : vector<2x32xf32>
    %501 = math.tanh %500 : vector<2x32xf32>
    %cst_163 = arith.constant 1.000000e+00 : f32
    %502 = vector.broadcast %cst_163 : f32 to vector<2x32xf32>
    %503 = arith.subf %502, %498 : vector<2x32xf32>
    %504 = arith.mulf %503, %501 : vector<2x32xf32>
    %505 = arith.mulf %498, %415 : vector<2x32xf32>
    %506 = arith.addf %504, %505 : vector<2x32xf32>
    %c0_164 = arith.constant 0 : index
    %c0_165 = arith.constant 0 : index
    %507 = vector.load %arg10[%c0_164, %c0_165] : memref<32x32xf32, #tpu.memory_space<vmem>>, vector<32x32xf32>
    %cst_166 = arith.constant dense<0.000000e+00> : vector<2x32xf32>
    %508 = tpu.matmul %506, %507, %cst_166 {dimension_numbers = #tpu.dot_dimension_numbers<[1], [0], [0], [1], [0, 0, 1, 1], [], []>} : vector<2x32xf32>, vector<32x32xf32>, vector<2x32xf32> -> vector<2x32xf32>
    %c0_167 = arith.constant 0 : index
    %c0_168 = arith.constant 0 : index
    %509 = vector.load %arg11[%c0_167, %c0_168] : memref<1x32xf32, #tpu.memory_space<vmem>>, vector<1x32xf32>
    %510 = vector.broadcast %509 : vector<1x32xf32> to vector<2x32xf32>
    %511 = arith.addf %508, %510 : vector<2x32xf32>
    %512 = vector.shape_cast %511 : vector<2x32xf32> to vector<2x1x32xf32>
    %513 = vector.broadcast %512 : vector<2x1x32xf32> to vector<2x8x32xf32>
    %514 = arith.mulf %513, %1 : vector<2x8x32xf32>
    %cst_169 = arith.constant dense<0.000000e+00> : vector<2x8xf32>
    %515 = vector.multi_reduction <add>, %514, %cst_169 [2] : vector<2x8x32xf32> to vector<2x8xf32>
    %cst_170 = arith.constant dense<0xFF800000> : vector<2xf32>
    %516 = vector.multi_reduction <maximumf>, %515, %cst_170 [1] : vector<2x8xf32> to vector<2xf32>
    %517 = vector.shape_cast %516 : vector<2xf32> to vector<2x1xf32>
    %518 = vector.broadcast %517 : vector<2x1xf32> to vector<2x8xf32>
    %519 = arith.subf %515, %518 : vector<2x8xf32>
    %520 = math.exp %519 : vector<2x8xf32>
    %cst_171 = arith.constant dense<0.000000e+00> : vector<2xf32>
    %521 = vector.multi_reduction <add>, %520, %cst_171 [1] : vector<2x8xf32> to vector<2xf32>
    %522 = vector.shape_cast %521 : vector<2xf32> to vector<2x1xf32>
    %523 = vector.broadcast %522 : vector<2x1xf32> to vector<2x8xf32>
    %524 = arith.divf %520, %523 : vector<2x8xf32>
    %525 = vector.shape_cast %524 : vector<2x8xf32> to vector<2x8x1xf32>
    %526 = vector.broadcast %525 : vector<2x8x1xf32> to vector<2x8x32xf32>
    %527 = arith.mulf %526, %1 : vector<2x8x32xf32>
    %cst_172 = arith.constant dense<0.000000e+00> : vector<2x32xf32>
    %528 = vector.multi_reduction <add>, %527, %cst_172 [1] : vector<2x8x32xf32> to vector<2x32xf32>
    %529 = vector.extract_strided_slice %16 {offsets = [6, 0, 0], sizes = [1, 2, 96], strides = [1, 1, 1]} : vector<8x2x96xf32> to vector<1x2x96xf32>
    %530 = vector.shape_cast %529 : vector<1x2x96xf32> to vector<2x96xf32>
    %c0_173 = arith.constant 0 : index
    %c0_174 = arith.constant 0 : index
    %531 = vector.load %arg12[%c0_173, %c0_174] : memref<32x96xf32, #tpu.memory_space<vmem>>, vector<32x96xf32>
    %cst_175 = arith.constant dense<0.000000e+00> : vector<2x96xf32>
    %532 = tpu.matmul %528, %531, %cst_175 {dimension_numbers = #tpu.dot_dimension_numbers<[1], [0], [0], [1], [0, 0, 1, 1], [], []>} : vector<2x32xf32>, vector<32x96xf32>, vector<2x96xf32> -> vector<2x96xf32>
    %533 = arith.addf %530, %532 : vector<2x96xf32>
    %c0_176 = arith.constant 0 : index
    %c0_177 = arith.constant 0 : index
    %534 = vector.load %arg13[%c0_176, %c0_177] : memref<32x96xf32, #tpu.memory_space<vmem>>, vector<32x96xf32>
    %cst_178 = arith.constant dense<0.000000e+00> : vector<2x96xf32>
    %535 = tpu.matmul %473, %534, %cst_178 {dimension_numbers = #tpu.dot_dimension_numbers<[1], [0], [0], [1], [0, 0, 1, 1], [], []>} : vector<2x32xf32>, vector<32x96xf32>, vector<2x96xf32> -> vector<2x96xf32>
    %c0_179 = arith.constant 0 : index
    %c0_180 = arith.constant 0 : index
    %536 = vector.load %arg14[%c0_179, %c0_180] : memref<1x96xf32, #tpu.memory_space<vmem>>, vector<1x96xf32>
    %537 = vector.broadcast %536 : vector<1x96xf32> to vector<2x96xf32>
    %538 = arith.addf %535, %537 : vector<2x96xf32>
    %539 = vector.extract_strided_slice %533 {offsets = [0, 0], sizes = [2, 32], strides = [1, 1]} : vector<2x96xf32> to vector<2x32xf32>
    %540 = vector.extract_strided_slice %533 {offsets = [0, 32], sizes = [2, 32], strides = [1, 1]} : vector<2x96xf32> to vector<2x32xf32>
    %541 = vector.extract_strided_slice %533 {offsets = [0, 64], sizes = [2, 32], strides = [1, 1]} : vector<2x96xf32> to vector<2x32xf32>
    %542 = vector.extract_strided_slice %538 {offsets = [0, 0], sizes = [2, 32], strides = [1, 1]} : vector<2x96xf32> to vector<2x32xf32>
    %543 = vector.extract_strided_slice %538 {offsets = [0, 32], sizes = [2, 32], strides = [1, 1]} : vector<2x96xf32> to vector<2x32xf32>
    %544 = vector.extract_strided_slice %538 {offsets = [0, 64], sizes = [2, 32], strides = [1, 1]} : vector<2x96xf32> to vector<2x32xf32>
    %545 = arith.addf %539, %542 : vector<2x32xf32>
    %546 = arith.negf %545 : vector<2x32xf32>
    %547 = math.exp %546 : vector<2x32xf32>
    %cst_181 = arith.constant 1.000000e+00 : f32
    %548 = vector.broadcast %cst_181 : f32 to vector<2x32xf32>
    %549 = arith.addf %548, %547 : vector<2x32xf32>
    %550 = arith.divf %548, %549 : vector<2x32xf32>
    %551 = arith.addf %540, %543 : vector<2x32xf32>
    %552 = arith.negf %551 : vector<2x32xf32>
    %553 = math.exp %552 : vector<2x32xf32>
    %cst_182 = arith.constant 1.000000e+00 : f32
    %554 = vector.broadcast %cst_182 : f32 to vector<2x32xf32>
    %555 = arith.addf %554, %553 : vector<2x32xf32>
    %556 = arith.divf %554, %555 : vector<2x32xf32>
    %557 = arith.mulf %550, %544 : vector<2x32xf32>
    %558 = arith.addf %541, %557 : vector<2x32xf32>
    %559 = math.tanh %558 : vector<2x32xf32>
    %cst_183 = arith.constant 1.000000e+00 : f32
    %560 = vector.broadcast %cst_183 : f32 to vector<2x32xf32>
    %561 = arith.subf %560, %556 : vector<2x32xf32>
    %562 = arith.mulf %561, %559 : vector<2x32xf32>
    %563 = arith.mulf %556, %473 : vector<2x32xf32>
    %564 = arith.addf %562, %563 : vector<2x32xf32>
    %565 = vector.extract_strided_slice %14 {offsets = [6, 0, 0], sizes = [1, 2, 96], strides = [1, 1, 1]} : vector<8x2x96xf32> to vector<1x2x96xf32>
    %566 = vector.shape_cast %565 : vector<1x2x96xf32> to vector<2x96xf32>
    %c0_184 = arith.constant 0 : index
    %c0_185 = arith.constant 0 : index
    %567 = vector.load %arg8[%c0_184, %c0_185] : memref<32x96xf32, #tpu.memory_space<vmem>>, vector<32x96xf32>
    %cst_186 = arith.constant dense<0.000000e+00> : vector<2x96xf32>
    %568 = tpu.matmul %506, %567, %cst_186 {dimension_numbers = #tpu.dot_dimension_numbers<[1], [0], [0], [1], [0, 0, 1, 1], [], []>} : vector<2x32xf32>, vector<32x96xf32>, vector<2x96xf32> -> vector<2x96xf32>
    %c0_187 = arith.constant 0 : index
    %c0_188 = arith.constant 0 : index
    %569 = vector.load %arg9[%c0_187, %c0_188] : memref<1x96xf32, #tpu.memory_space<vmem>>, vector<1x96xf32>
    %570 = vector.broadcast %569 : vector<1x96xf32> to vector<2x96xf32>
    %571 = arith.addf %568, %570 : vector<2x96xf32>
    %572 = vector.extract_strided_slice %566 {offsets = [0, 0], sizes = [2, 32], strides = [1, 1]} : vector<2x96xf32> to vector<2x32xf32>
    %573 = vector.extract_strided_slice %566 {offsets = [0, 32], sizes = [2, 32], strides = [1, 1]} : vector<2x96xf32> to vector<2x32xf32>
    %574 = vector.extract_strided_slice %566 {offsets = [0, 64], sizes = [2, 32], strides = [1, 1]} : vector<2x96xf32> to vector<2x32xf32>
    %575 = vector.extract_strided_slice %571 {offsets = [0, 0], sizes = [2, 32], strides = [1, 1]} : vector<2x96xf32> to vector<2x32xf32>
    %576 = vector.extract_strided_slice %571 {offsets = [0, 32], sizes = [2, 32], strides = [1, 1]} : vector<2x96xf32> to vector<2x32xf32>
    %577 = vector.extract_strided_slice %571 {offsets = [0, 64], sizes = [2, 32], strides = [1, 1]} : vector<2x96xf32> to vector<2x32xf32>
    %578 = arith.addf %572, %575 : vector<2x32xf32>
    %579 = arith.negf %578 : vector<2x32xf32>
    %580 = math.exp %579 : vector<2x32xf32>
    %cst_189 = arith.constant 1.000000e+00 : f32
    %581 = vector.broadcast %cst_189 : f32 to vector<2x32xf32>
    %582 = arith.addf %581, %580 : vector<2x32xf32>
    %583 = arith.divf %581, %582 : vector<2x32xf32>
    %584 = arith.addf %573, %576 : vector<2x32xf32>
    %585 = arith.negf %584 : vector<2x32xf32>
    %586 = math.exp %585 : vector<2x32xf32>
    %cst_190 = arith.constant 1.000000e+00 : f32
    %587 = vector.broadcast %cst_190 : f32 to vector<2x32xf32>
    %588 = arith.addf %587, %586 : vector<2x32xf32>
    %589 = arith.divf %587, %588 : vector<2x32xf32>
    %590 = arith.mulf %583, %577 : vector<2x32xf32>
    %591 = arith.addf %574, %590 : vector<2x32xf32>
    %592 = math.tanh %591 : vector<2x32xf32>
    %cst_191 = arith.constant 1.000000e+00 : f32
    %593 = vector.broadcast %cst_191 : f32 to vector<2x32xf32>
    %594 = arith.subf %593, %589 : vector<2x32xf32>
    %595 = arith.mulf %594, %592 : vector<2x32xf32>
    %596 = arith.mulf %589, %506 : vector<2x32xf32>
    %597 = arith.addf %595, %596 : vector<2x32xf32>
    %c0_192 = arith.constant 0 : index
    %c0_193 = arith.constant 0 : index
    %598 = vector.load %arg10[%c0_192, %c0_193] : memref<32x32xf32, #tpu.memory_space<vmem>>, vector<32x32xf32>
    %cst_194 = arith.constant dense<0.000000e+00> : vector<2x32xf32>
    %599 = tpu.matmul %597, %598, %cst_194 {dimension_numbers = #tpu.dot_dimension_numbers<[1], [0], [0], [1], [0, 0, 1, 1], [], []>} : vector<2x32xf32>, vector<32x32xf32>, vector<2x32xf32> -> vector<2x32xf32>
    %c0_195 = arith.constant 0 : index
    %c0_196 = arith.constant 0 : index
    %600 = vector.load %arg11[%c0_195, %c0_196] : memref<1x32xf32, #tpu.memory_space<vmem>>, vector<1x32xf32>
    %601 = vector.broadcast %600 : vector<1x32xf32> to vector<2x32xf32>
    %602 = arith.addf %599, %601 : vector<2x32xf32>
    %603 = vector.shape_cast %602 : vector<2x32xf32> to vector<2x1x32xf32>
    %604 = vector.broadcast %603 : vector<2x1x32xf32> to vector<2x8x32xf32>
    %605 = arith.mulf %604, %1 : vector<2x8x32xf32>
    %cst_197 = arith.constant dense<0.000000e+00> : vector<2x8xf32>
    %606 = vector.multi_reduction <add>, %605, %cst_197 [2] : vector<2x8x32xf32> to vector<2x8xf32>
    %cst_198 = arith.constant dense<0xFF800000> : vector<2xf32>
    %607 = vector.multi_reduction <maximumf>, %606, %cst_198 [1] : vector<2x8xf32> to vector<2xf32>
    %608 = vector.shape_cast %607 : vector<2xf32> to vector<2x1xf32>
    %609 = vector.broadcast %608 : vector<2x1xf32> to vector<2x8xf32>
    %610 = arith.subf %606, %609 : vector<2x8xf32>
    %611 = math.exp %610 : vector<2x8xf32>
    %cst_199 = arith.constant dense<0.000000e+00> : vector<2xf32>
    %612 = vector.multi_reduction <add>, %611, %cst_199 [1] : vector<2x8xf32> to vector<2xf32>
    %613 = vector.shape_cast %612 : vector<2xf32> to vector<2x1xf32>
    %614 = vector.broadcast %613 : vector<2x1xf32> to vector<2x8xf32>
    %615 = arith.divf %611, %614 : vector<2x8xf32>
    %616 = vector.shape_cast %615 : vector<2x8xf32> to vector<2x8x1xf32>
    %617 = vector.broadcast %616 : vector<2x8x1xf32> to vector<2x8x32xf32>
    %618 = arith.mulf %617, %1 : vector<2x8x32xf32>
    %cst_200 = arith.constant dense<0.000000e+00> : vector<2x32xf32>
    %619 = vector.multi_reduction <add>, %618, %cst_200 [1] : vector<2x8x32xf32> to vector<2x32xf32>
    %620 = vector.extract_strided_slice %16 {offsets = [7, 0, 0], sizes = [1, 2, 96], strides = [1, 1, 1]} : vector<8x2x96xf32> to vector<1x2x96xf32>
    %621 = vector.shape_cast %620 : vector<1x2x96xf32> to vector<2x96xf32>
    %c0_201 = arith.constant 0 : index
    %c0_202 = arith.constant 0 : index
    %622 = vector.load %arg12[%c0_201, %c0_202] : memref<32x96xf32, #tpu.memory_space<vmem>>, vector<32x96xf32>
    %cst_203 = arith.constant dense<0.000000e+00> : vector<2x96xf32>
    %623 = tpu.matmul %619, %622, %cst_203 {dimension_numbers = #tpu.dot_dimension_numbers<[1], [0], [0], [1], [0, 0, 1, 1], [], []>} : vector<2x32xf32>, vector<32x96xf32>, vector<2x96xf32> -> vector<2x96xf32>
    %624 = arith.addf %621, %623 : vector<2x96xf32>
    %c0_204 = arith.constant 0 : index
    %c0_205 = arith.constant 0 : index
    %625 = vector.load %arg13[%c0_204, %c0_205] : memref<32x96xf32, #tpu.memory_space<vmem>>, vector<32x96xf32>
    %cst_206 = arith.constant dense<0.000000e+00> : vector<2x96xf32>
    %626 = tpu.matmul %564, %625, %cst_206 {dimension_numbers = #tpu.dot_dimension_numbers<[1], [0], [0], [1], [0, 0, 1, 1], [], []>} : vector<2x32xf32>, vector<32x96xf32>, vector<2x96xf32> -> vector<2x96xf32>
    %c0_207 = arith.constant 0 : index
    %c0_208 = arith.constant 0 : index
    %627 = vector.load %arg14[%c0_207, %c0_208] : memref<1x96xf32, #tpu.memory_space<vmem>>, vector<1x96xf32>
    %628 = vector.broadcast %627 : vector<1x96xf32> to vector<2x96xf32>
    %629 = arith.addf %626, %628 : vector<2x96xf32>
    %630 = vector.extract_strided_slice %624 {offsets = [0, 0], sizes = [2, 32], strides = [1, 1]} : vector<2x96xf32> to vector<2x32xf32>
    %631 = vector.extract_strided_slice %624 {offsets = [0, 32], sizes = [2, 32], strides = [1, 1]} : vector<2x96xf32> to vector<2x32xf32>
    %632 = vector.extract_strided_slice %624 {offsets = [0, 64], sizes = [2, 32], strides = [1, 1]} : vector<2x96xf32> to vector<2x32xf32>
    %633 = vector.extract_strided_slice %629 {offsets = [0, 0], sizes = [2, 32], strides = [1, 1]} : vector<2x96xf32> to vector<2x32xf32>
    %634 = vector.extract_strided_slice %629 {offsets = [0, 32], sizes = [2, 32], strides = [1, 1]} : vector<2x96xf32> to vector<2x32xf32>
    %635 = vector.extract_strided_slice %629 {offsets = [0, 64], sizes = [2, 32], strides = [1, 1]} : vector<2x96xf32> to vector<2x32xf32>
    %636 = arith.addf %630, %633 : vector<2x32xf32>
    %637 = arith.negf %636 : vector<2x32xf32>
    %638 = math.exp %637 : vector<2x32xf32>
    %cst_209 = arith.constant 1.000000e+00 : f32
    %639 = vector.broadcast %cst_209 : f32 to vector<2x32xf32>
    %640 = arith.addf %639, %638 : vector<2x32xf32>
    %641 = arith.divf %639, %640 : vector<2x32xf32>
    %642 = arith.addf %631, %634 : vector<2x32xf32>
    %643 = arith.negf %642 : vector<2x32xf32>
    %644 = math.exp %643 : vector<2x32xf32>
    %cst_210 = arith.constant 1.000000e+00 : f32
    %645 = vector.broadcast %cst_210 : f32 to vector<2x32xf32>
    %646 = arith.addf %645, %644 : vector<2x32xf32>
    %647 = arith.divf %645, %646 : vector<2x32xf32>
    %648 = arith.mulf %641, %635 : vector<2x32xf32>
    %649 = arith.addf %632, %648 : vector<2x32xf32>
    %650 = math.tanh %649 : vector<2x32xf32>
    %cst_211 = arith.constant 1.000000e+00 : f32
    %651 = vector.broadcast %cst_211 : f32 to vector<2x32xf32>
    %652 = arith.subf %651, %647 : vector<2x32xf32>
    %653 = arith.mulf %652, %650 : vector<2x32xf32>
    %654 = arith.mulf %647, %564 : vector<2x32xf32>
    %655 = arith.addf %653, %654 : vector<2x32xf32>
    %c0_212 = arith.constant 0 : index
    %c0_213 = arith.constant 0 : index
    %656 = vector.load %arg15[%c0_212, %c0_213] : memref<32x32xf32, #tpu.memory_space<vmem>>, vector<32x32xf32>
    %cst_214 = arith.constant dense<0.000000e+00> : vector<2x32xf32>
    %657 = tpu.matmul %655, %656, %cst_214 {dimension_numbers = #tpu.dot_dimension_numbers<[1], [0], [0], [1], [0, 0, 1, 1], [], []>} : vector<2x32xf32>, vector<32x32xf32>, vector<2x32xf32> -> vector<2x32xf32>
    %c0_215 = arith.constant 0 : index
    %c0_216 = arith.constant 0 : index
    %658 = vector.load %arg16[%c0_215, %c0_216] : memref<1x32xf32, #tpu.memory_space<vmem>>, vector<1x32xf32>
    %659 = vector.broadcast %658 : vector<1x32xf32> to vector<2x32xf32>
    %660 = arith.addf %657, %659 : vector<2x32xf32>
    %661 = vector.extract_strided_slice %660 {offsets = [0, 0], sizes = [2, 16], strides = [1, 1]} : vector<2x32xf32> to vector<2x16xf32>
    %662 = vector.extract_strided_slice %660 {offsets = [0, 16], sizes = [2, 16], strides = [1, 1]} : vector<2x32xf32> to vector<2x16xf32>
    %c0_217 = arith.constant 0 : index
    %c0_218 = arith.constant 0 : index
    %663 = vector.load %arg3[%c0_217, %c0_218] : memref<2x16xf32, #tpu.memory_space<vmem>>, vector<2x16xf32>
    %cst_219 = arith.constant 5.000000e-01 : f32
    %664 = vector.broadcast %cst_219 : f32 to vector<2x16xf32>
    %665 = arith.mulf %664, %662 : vector<2x16xf32>
    %666 = math.exp %665 : vector<2x16xf32>
    %667 = arith.mulf %663, %666 : vector<2x16xf32>
    %668 = arith.addf %661, %667 : vector<2x16xf32>
    %c0_220 = arith.constant 0 : index
    %c0_221 = arith.constant 0 : index
    %669 = vector.load %arg17[%c0_220, %c0_221] : memref<2x16xf32, #tpu.memory_space<vmem>>, vector<2x16xf32>
    tpu.vector_store %arg17[%c0_220, %c0_221], %668 {strides = array<i32>} : memref<2x16xf32, #tpu.memory_space<vmem>>, vector<2x16xf32>,
    %c0_222 = arith.constant 0 : index
    %c0_223 = arith.constant 0 : index
    %670 = vector.load %arg18[%c0_222, %c0_223] : memref<2x16xf32, #tpu.memory_space<vmem>>, vector<2x16xf32>
    tpu.vector_store %arg18[%c0_222, %c0_223], %661 {strides = array<i32>} : memref<2x16xf32, #tpu.memory_space<vmem>>, vector<2x16xf32>,
    %c0_224 = arith.constant 0 : index
    %c0_225 = arith.constant 0 : index
    %671 = vector.load %arg19[%c0_224, %c0_225] : memref<2x16xf32, #tpu.memory_space<vmem>>, vector<2x16xf32>
    tpu.vector_store %arg19[%c0_224, %c0_225], %662 {strides = array<i32>} : memref<2x16xf32, #tpu.memory_space<vmem>>, vector<2x16xf32>,
    return
  }
  func.func @transform_0(%arg0: i32) -> (i32, i32, i32) {
    %c0_i32 = arith.constant 0 : i32
    %c0_i32_0 = arith.constant 0 : i32
    %c0_i32_1 = arith.constant 0 : i32
    return %c0_i32, %arg0, %c0_i32_0 : i32, i32, i32
  }
  func.func @transform_1(%arg0: i32) -> (i32, i32, i32) {
    %c0_i32 = arith.constant 0 : i32
    %c0_i32_0 = arith.constant 0 : i32
    %c0_i32_1 = arith.constant 0 : i32
    return %arg0, %c0_i32, %c0_i32_0 : i32, i32, i32
  }
  func.func @transform_2(%arg0: i32) -> (i32, i32) {
    %c0_i32 = arith.constant 0 : i32
    %c0_i32_0 = arith.constant 0 : i32
    return %arg0, %c0_i32 : i32, i32
  }
  func.func @transform_3(%arg0: i32) -> (i32, i32) {
    %c0_i32 = arith.constant 0 : i32
    %c0_i32_0 = arith.constant 0 : i32
    %c0_i32_1 = arith.constant 0 : i32
    return %c0_i32, %c0_i32_0 : i32, i32
  }
  func.func @transform_4(%arg0: i32) -> (i32, i32) {
    %c0_i32 = arith.constant 0 : i32
    %c0_i32_0 = arith.constant 0 : i32
    %c0_i32_1 = arith.constant 0 : i32
    return %c0_i32, %c0_i32_0 : i32, i32
  }
  func.func @transform_5(%arg0: i32) -> (i32, i32) {
    %c0_i32 = arith.constant 0 : i32
    %c0_i32_0 = arith.constant 0 : i32
    %c0_i32_1 = arith.constant 0 : i32
    return %c0_i32, %c0_i32_0 : i32, i32
  }
  func.func @transform_6(%arg0: i32) -> (i32, i32) {
    %c0_i32 = arith.constant 0 : i32
    %c0_i32_0 = arith.constant 0 : i32
    %c0_i32_1 = arith.constant 0 : i32
    return %c0_i32, %c0_i32_0 : i32, i32
  }
  func.func @transform_7(%arg0: i32) -> (i32, i32) {
    %c0_i32 = arith.constant 0 : i32
    %c0_i32_0 = arith.constant 0 : i32
    %c0_i32_1 = arith.constant 0 : i32
    return %c0_i32, %c0_i32_0 : i32, i32
  }
  func.func @transform_8(%arg0: i32) -> (i32, i32) {
    %c0_i32 = arith.constant 0 : i32
    %c0_i32_0 = arith.constant 0 : i32
    %c0_i32_1 = arith.constant 0 : i32
    return %c0_i32, %c0_i32_0 : i32, i32
  }
  func.func @transform_9(%arg0: i32) -> (i32, i32) {
    %c0_i32 = arith.constant 0 : i32
    %c0_i32_0 = arith.constant 0 : i32
    %c0_i32_1 = arith.constant 0 : i32
    return %c0_i32, %c0_i32_0 : i32, i32
  }
  func.func @transform_10(%arg0: i32) -> (i32, i32) {
    %c0_i32 = arith.constant 0 : i32
    %c0_i32_0 = arith.constant 0 : i32
    %c0_i32_1 = arith.constant 0 : i32
    return %c0_i32, %c0_i32_0 : i32, i32
  }
  func.func @transform_11(%arg0: i32) -> (i32, i32) {
    %c0_i32 = arith.constant 0 : i32
    %c0_i32_0 = arith.constant 0 : i32
    %c0_i32_1 = arith.constant 0 : i32
    return %c0_i32, %c0_i32_0 : i32, i32
  }
  func.func @transform_12(%arg0: i32) -> (i32, i32) {
    %c0_i32 = arith.constant 0 : i32
    %c0_i32_0 = arith.constant 0 : i32
    %c0_i32_1 = arith.constant 0 : i32
    return %c0_i32, %c0_i32_0 : i32, i32
  }
  func.func @transform_13(%arg0: i32) -> (i32, i32) {
    %c0_i32 = arith.constant 0 : i32
    %c0_i32_0 = arith.constant 0 : i32
    %c0_i32_1 = arith.constant 0 : i32
    return %c0_i32, %c0_i32_0 : i32, i32
  }
  func.func @transform_14(%arg0: i32) -> (i32, i32) {
    %c0_i32 = arith.constant 0 : i32
    %c0_i32_0 = arith.constant 0 : i32
    %c0_i32_1 = arith.constant 0 : i32
    return %c0_i32, %c0_i32_0 : i32, i32
  }
  func.func @transform_15(%arg0: i32) -> (i32, i32) {
    %c0_i32 = arith.constant 0 : i32
    %c0_i32_0 = arith.constant 0 : i32
    %c0_i32_1 = arith.constant 0 : i32
    return %c0_i32, %c0_i32_0 : i32, i32
  }
  func.func @transform_16(%arg0: i32) -> (i32, i32) {
    %c0_i32 = arith.constant 0 : i32
    %c0_i32_0 = arith.constant 0 : i32
    return %arg0, %c0_i32 : i32, i32
  }
  func.func @transform_17(%arg0: i32) -> (i32, i32) {
    %c0_i32 = arith.constant 0 : i32
    %c0_i32_0 = arith.constant 0 : i32
    return %arg0, %c0_i32 : i32, i32
  }
  func.func @transform_18(%arg0: i32) -> (i32, i32) {
    %c0_i32 = arith.constant 0 : i32
    %c0_i32_0 = arith.constant 0 : i32
    return %arg0, %c0_i32 : i32, i32
  }
}

</mosaic_0001>

<bundles_post_ra>
// kernel: tpu_custom_call.1
= control target key start
LH: loop header
LB: loop body
LE: loop exit
PB: predicated region body
PF: predicated region fallthrough
CT: control target
= control target key end

     0   :  { %s4379_s0 = inlined_call_operand.vmem [shape: f32[8,2,4], index: 0, kind: input, shape index: {}]   ;;  %s4380_s1 = inlined_call_operand.hbm [shape: f32[2,8,32], index: 1, kind: input, shape index: {}]   ;;  %s4381_s2 = inlined_call_operand.hbm [shape: f32[2,16], index: 2, kind: input, shape index: {}]   ;;  %s4382_s3 = inlined_call_operand.hbm [shape: f32[4,32], index: 3, kind: input, shape index: {}]   ;;  %s4383_s4 = inlined_call_operand.hbm [shape: f32[1,32], index: 4, kind: input, shape index: {}]   ;;  %s4384_s5 = inlined_call_operand.hbm [shape: f32[32,192], index: 5, kind: input, shape index: {}]   ;;  %s4385_s6 = inlined_call_operand.hbm [shape: f32[1,192], index: 6, kind: input, shape index: {}]   ;;  %s4386_s7 = inlined_call_operand.hbm [shape: f32[32,96], index: 7, kind: input, shape index: {}]   ;;  %s4387_s8 = inlined_call_operand.hbm [shape: f32[1,96], index: 8, kind: input, shape index: {}]   ;;  %s4388_s9 = inlined_call_operand.vmem [shape: f32[32,32], index: 9, kind: input, shape index: {}]   ;;  %s4389_s10 = inlined_call_operand.vmem [shape: f32[1,32], index: 10, kind: input, shape index: {}]   ;;  %s4390_s11 = inlined_call_operand.hbm [shape: f32[32,96], index: 11, kind: input, shape index: {}]   ;;  %s4391_s12 = inlined_call_operand.hbm [shape: f32[32,96], index: 12, kind: input, shape index: {}]   ;;  %s4392_s13 = inlined_call_operand.vmem [shape: f32[1,96], index: 13, kind: input, shape index: {}]   ;;  %s4393_s14 = inlined_call_operand.hbm [shape: f32[32,32], index: 14, kind: input, shape index: {}]   ;;  %s4394_s15 = inlined_call_operand.vmem [shape: f32[1,32], index: 15, kind: input, shape index: {}]   ;;  %s4395_s16 = inlined_call_operand.hbm [shape: f32[2,16], index: 16, kind: output, shape index: {0}]   ;;  %s4396_s17 = inlined_call_operand.hbm [shape: f32[2,16], index: 17, kind: output, shape index: {1}]   ;;  %s4397_s18 = inlined_call_operand.hbm [shape: f32[2,16], index: 18, kind: output, shape index: {2}]  }
   0x1   :  { %4400 = sst [smem:[#allocation32_spill]] %s4379_s0 }
   0x2   :  { %4401 = sst [smem:[#allocation33_spill]] %s4380_s1 }
   0x3   :  { %4402 = sst [smem:[#allocation34_spill]] %s4381_s2 }
   0x4   :  { %24 = vsyncpa [#allocation3], 0 }
   0x5   :  { %25 = vsyncpa [#allocation6], 0 }
   0x6   :  { %26 = vsyncpa [#allocation9], 0 }
   0x7   :  { %27 = vsyncpa [#allocation12], 0 }
   0x8   :  { %28 = vsyncpa [#allocation15], 0 }
   0x9   :  { %29 = vsyncpa [#allocation18], 0 }
   0xa   :  { %30 = vsyncpa [#allocation4], 0  ;;  %s4403_s29 = sld [smem:[#allocation34_spill]] }
  0x10   :  { %s52_s30 = sshll.u32 %s4403_s29, 4  ;;  %s53_s30 = int_to_ptr.hbm [resolvable:$true] %s52_s30 }
  0x11   :  { %31 = vsyncpa [#allocation22], 0  ;;  %s3411_s0 = smov [#allocation5]   ;;  %s74_s21 = sshll.u32 %s4383_s4, 4  ;;  %s75_s21 = int_to_ptr.hbm [resolvable:$true] %s74_s21 }
  0x12   :  { %s54_s19 = sshll.u32 %s3411_s0, 4  ;;  %s3412_s22 = smov [#allocation8]   ;;  %s55_s19 = int_to_ptr.vmem [resolvable:$true] %s54_s19 }
  0x13   :  { %57 = dma.hbm_to_vmem [thread:$0]  %s53_s30, 32, %s55_s19, [#allocation6]  }
  0x14   :  { %s76_s2 = sshll.u32 %s3412_s22, 4  ;;  %s98_s25 = sshll.u32 %s4385_s6, 4  ;;  %s77_s2 = int_to_ptr.vmem [resolvable:$true] %s76_s2  ;;  %s99_s25 = int_to_ptr.hbm [resolvable:$true] %s98_s25 }
  0x15   :  { %79 = dma.hbm_to_vmem [thread:$0]  %s75_s21, 16, %s77_s2, [#allocation9]  }
  0x16   :  { %s122_s28 = sshll.u32 %s4387_s8, 4  ;;  %s3413_s29 = smov [#allocation11]   ;;  %s123_s28 = int_to_ptr.hbm [resolvable:$true] %s122_s28 }
  0x17   :  { %s100_s0 = sshll.u32 %s3413_s29, 4  ;;  %s3414_s4 = smov [#allocation14]   ;;  %s101_s0 = int_to_ptr.vmem [resolvable:$true] %s100_s0 }
  0x18   :  { %103 = dma.hbm_to_vmem [thread:$0]  %s99_s25, 32, %s101_s0, [#allocation12]  }
  0x19   :  { %s124_s30 = sshll.u32 %s3414_s4, 4  ;;  %s149_s6 = sshll.u32 %s4391_s12, 4  ;;  %s125_s30 = int_to_ptr.vmem [resolvable:$true] %s124_s30  ;;  %s150_s6 = int_to_ptr.hbm [resolvable:$true] %s149_s6 }
  0x1a   :  { %127 = dma.hbm_to_vmem [thread:$0]  %s123_s28, 16, %s125_s30, [#allocation15]  }
  0x1b   :  { %s3415_s20 = smov [#allocation17]   ;;  %s4404_s8 = sld [smem:[#allocation33_spill]] }
  0x1c   :  { %s151_s21 = sshll.u32 %s3415_s20, 4  ;;  %s3416_s24 = smov 128   ;;  %s152_s21 = int_to_ptr.vmem [resolvable:$true] %s151_s21 }
  0x1d   :  { %s3417_s26 = smov 8   ;;  %s3418_s25 = smov [#allocation2]  }
  0x1e   :  { %157 = dma.hbm_to_vmem [thread:$0]  %s150_s6, 512, %s152_s21, [#allocation18], %s3416_s24, %s3416_s24, %s3417_s26  }
  0x1f   :  { %s40_s27 = sshll.u32 %s3418_s25, 4  ;;  %s63_s12 = sshll.u32 %s4382_s3, 4  ;;  %s41_s27 = int_to_ptr.vmem [resolvable:$true] %s40_s27  ;;  %s64_s12 = int_to_ptr.hbm [resolvable:$true] %s63_s12 }
  0x20   :  { %s84_s30 = sshll.u32 %s4384_s5, 4  ;;  %s3419_s19 = smov [#allocation7]   ;;  %s85_s30 = int_to_ptr.hbm [resolvable:$true] %s84_s30 }
  0x21   :  { %s38_s23 = sshll.u32 %s4404_s8, 4  ;;  %s65_s1 = sshll.u32 %s3419_s19, 4  ;;  %s39_s23 = int_to_ptr.hbm [resolvable:$true] %s38_s23  ;;  %s66_s1 = int_to_ptr.vmem [resolvable:$true] %s65_s1 }
  0x22   :  { %46 = dma.hbm_to_vmem [thread:$0]  %s39_s23, 256, %s41_s27, [#allocation3], %s3416_s24, %s3416_s24, %s3417_s26  }
  0x23   :  { %68 = dma.hbm_to_vmem [thread:$0]  %s64_s12, 64, %s66_s1, [#allocation6]  }
  0x24   :  { %s3420_s6 = smov [#allocation10]   ;;  %s3421_s21 = smov 256  }
  0x25   :  { %s86_s20 = sshll.u32 %s3420_s6, 4  ;;  %s3422_s3 = smov 16   ;;  %s87_s20 = int_to_ptr.vmem [resolvable:$true] %s86_s20 }
  0x26   :  { %92 = dma.hbm_to_vmem [thread:$0]  %s85_s30, 1024, %s87_s20, [#allocation9], %s3421_s21, %s3421_s21, %s3422_s3  }
  0x27   :  { %s108_s8 = sshll.u32 %s4386_s7, 4  ;;  %s3423_s23 = smov [#allocation13]   ;;  %s109_s8 = int_to_ptr.hbm [resolvable:$true] %s108_s8 }
  0x28   :  { %s110_s25 = sshll.u32 %s3423_s23, 4  ;;  %s136_s28 = sshll.u32 %s4390_s11, 4  ;;  %s111_s25 = int_to_ptr.vmem [resolvable:$true] %s110_s25  ;;  %s137_s28 = int_to_ptr.hbm [resolvable:$true] %s136_s28 }
  0x29   :  { %116 = dma.hbm_to_vmem [thread:$0]  %s109_s8, 512, %s111_s25, [#allocation12], %s3416_s24, %s3416_s24, %s3417_s26  }
  0x2a   :  { %s3424_s29 = smov [#allocation16]   ;;  %s164_s30 = sshll.u32 %s4393_s14, 4  ;;  %s165_s30 = int_to_ptr.hbm [resolvable:$true] %s164_s30 }
  0x2b   :  { %s138_s12 = sshll.u32 %s3424_s29, 4  ;;  %s3425_s7 = smov [#allocation19]   ;;  %s139_s12 = int_to_ptr.vmem [resolvable:$true] %s138_s12 }
  0x2c   :  { %144 = dma.hbm_to_vmem [thread:$0]  %s137_s28, 512, %s139_s12, [#allocation15], %s3416_s24, %s3416_s24, %s3417_s26  }
  0x2d   :  { %s166_s19 = sshll.u32 %s3425_s7, 4  ;;  %s167_s19 = int_to_ptr.vmem [resolvable:$true] %s166_s19 }
  0x2e   :  { %172 = dma.hbm_to_vmem [thread:$0]  %s165_s30, 512, %s167_s19, [#allocation18], %s3416_s24, %s3416_s24, %s3417_s26  }
  0x2f   :  { %3395 = dma.done.wait [#allocation3], 256  }
  0x30   :  { %3396 = vsyncadd [#allocation3], 4294967040 }
  0x31   :  { %3397 = dma.done.wait [#allocation6], 96  }
  0x32   :  { %3398 = vsyncadd [#allocation6], 4294967200 }
  0x33   :  { %3399 = dma.done.wait [#allocation9], 1040  }
  0x34   :  { %3400 = vsyncadd [#allocation9], 4294966256 }
  0x35   :  { %3401 = dma.done.wait [#allocation12], 544  }
  0x36   :  { %3402 = vsyncadd [#allocation12], 4294966752 }
  0x37   :  { %3403 = dma.done.wait [#allocation15], 528  }
  0x38   :  { %3404 = vsyncadd [#allocation15], 4294966768 }
  0x39   :  { %3405 = dma.done.wait [#allocation18], 1024  }
  0x3a   :  { %3406 = vsyncadd [#allocation18], 4294966272  ;;  %vm264_vm0 = vcmask 1043456   ;;  %v229_v0 = vld [vmem:[#allocation7] sm:$0xf]  ;;  %s4405_s1 = sld [smem:[#allocation32_spill]] }
  0x3b   :  { %2781 = vmatpush.msk.msra.mxu0 %vm264_vm0, %v229_v0  ;;  %v3590_v5 = vld [vmem:[#allocation13 + $0x18] sm:$0xff]  ;;  %v3592_v6 = vld [vmem:[#allocation13 + $0x10] sm:$0xff]  ;;  %v3595_v7 = vld [vmem:[#allocation13 + $0x8] sm:$0xff]  ;;  %vm259_vm1 = vcmask 31744   ;;  %v3426_v13 = vmov 0.0   ;;  %vm305_vm2 = vcmask 261120  }
  0x3c   :  { %421 = vmatpush.msra.mxu3 %v3590_v5  ;;  %v297_v8 = vld [vmem:[#allocation10 + $0x30] sm:$0xff]  ;;  %v298_v9 = vld [vmem:[#allocation10 + $0x38] sm:$0xff]  ;;  %v295_v10 = vld [vmem:[#allocation10 + $0x20] sm:$0xff]  ;;  %s3427_s22 = smov 64   ;;  %s3428_s12 = smov 96   ;;  %vm523_vm15 = vcmask 1041409  }
  0x3d   :  { %324 = vmatpush.msra.mxu1 %v297_v8  ;;  %347 = vmatpush.msra.mxu2 %v298_v9  ;;  %v296_v11 = vld [vmem:[#allocation10 + $0x28] sm:$0xff]  ;;  %v293_v15 = vld [vmem:[#allocation10 + $0x10] sm:$0xff]  ;;  %v294_v16 = vld [vmem:[#allocation10 + $0x18] sm:$0xff]  ;;  %vm526_vm0 = vcmask 58368   ;;  %s3430_s21 = smov 32   ;;  %s3431_s19 = smov 112  }
  0x3e   :  { %422 = vmatpush.msra.mxu3 %v3592_v6  ;;  %v3598_v12 = vld [vmem:[#allocation13] sm:$0xff]  ;;  %v2863_v19 = vld [vmem:[#allocation8] ss:$0 sm:$0xff]  ;;  %v3618_v25 = vld [vmem:[#allocation11] sm:$0x3]  ;;  %s3432_s11 = smov [#allocation21]  }
  0x3f   :  { %325 = vmatpush.msra.mxu1 %v295_v10  ;;  %348 = vmatpush.msra.mxu2 %v296_v11  ;;  %v291_v17 = vld [vmem:[#allocation10] sm:$0xff]  ;;  %v292_v18 = vld [vmem:[#allocation10 + $0x8] sm:$0xff]  ;;  %v301_v26 = vperm.slane %v3618_v25, 0  ;;  %s2744_s14 = sshll.u32 %s3432_s11, 4  ;;  %s2746_s24 = sshll.u32 %s4396_s17, 4  ;;  %s2745_s14 = int_to_ptr.vmem [resolvable:$true] %s2744_s14  ;;  %s2747_s24 = int_to_ptr.hbm [resolvable:$true] %s2746_s24 }
  0x40   :  { %v219_v1 = vld [vmem:[%s4405_s1] sm:$0x3]  ;;  %v220_v2 = vld [vmem:[%s4405_s1 + $0x2] sm:$0x3]  ;;  %v221_v3 = vld [vmem:[%s4405_s1 + $0x4] sm:$0x3]  ;;  %423 = vmatpush.msra.mxu3 %v3595_v7 }
  0x41   :  { %v222_v4 = vld [vmem:[%s4405_s1 + $0x6] sm:$0x3]  ;;  %242 = vst [vmem:[#allocation1] ss:$4 sm:$0xff] %v219_v1  ;;  %326 = vmatpush.msra.mxu1 %v293_v15  ;;  %349 = vmatpush.msra.mxu2 %v294_v16  ;;  %v3608_v22 = vld [vmem:[#allocation14] ss:$0 sm:$0xff] }
  0x42   :  { %244 = vst [vmem:[#allocation1 + $0x1] ss:$4 sm:$0xff] %v220_v2  ;;  %424 = vmatpush.msra.mxu3 %v3598_v12  ;;  %v223_v45 = vld [vmem:[%s4405_s1 + $0x8] sm:$0x3]  ;;  %v224_v46 = vld [vmem:[%s4405_s1 + $0xa] sm:$0x3] }
  0x43   :  { %246 = vst [vmem:[#allocation1 + $0x2] ss:$4 sm:$0xff] %v221_v3  ;;  %425 = vmatmul.f32.vlgmr.msra.gmra.mxu3 %v3426_v13  ;;  %327 = vmatpush.msra.mxu1 %v291_v17  ;;  %v225_v47 = vld [vmem:[%s4405_s1 + $0xc] sm:$0x3]  ;;  %v226_v48 = vld [vmem:[%s4405_s1 + $0xe] sm:$0x3] }
  0x44   :  { %248 = vst [vmem:[#allocation1 + $0x3] ss:$4 sm:$0xff] %v222_v4  ;;  %350 = vmatpush.msra.mxu2 %v292_v18  ;;  %s2757_s3 = sshll.u32 %s4397_s18, 4  ;;  %s3434_s17 = smov [#allocation20]   ;;  %s2758_s3 = int_to_ptr.hbm [resolvable:$true] %s2757_s3 }
  0x45   :  { %250 = vst [vmem:[#allocation1 + $0x20] ss:$4 sm:$0xff] %v223_v45  ;;  %s2733_s2 = sshll.u32 %s3434_s17, 4  ;;  %s2735_s25 = sshll.u32 %s4395_s16, 4  ;;  %s2734_s2 = int_to_ptr.vmem [resolvable:$true] %s2733_s2  ;;  %s2736_s25 = int_to_ptr.hbm [resolvable:$true] %s2735_s25 }
  0x46   :  { %765 = vmatpush.msrb.mxu2 %v3590_v5  ;;  %252 = vst [vmem:[#allocation1 + $0x21] ss:$4 sm:$0xff] %v224_v46 }
  0x47   :  { %254 = vst [vmem:[#allocation1 + $0x22] ss:$4 sm:$0xff] %v225_v47  ;;  %v3713_v47 = vld [vmem:[%s4389_s10] ss:$0 sm:$0xff] }
  0x48   :  { %766 = vmatpush.msrb.mxu2 %v3592_v6  ;;  %256 = vst [vmem:[#allocation1 + $0x23] ss:$4 sm:$0xff] %v226_v48 }
  0x4a   :  { %767 = vmatpush.msrb.mxu2 %v3595_v7 }
  0x4b   :  { %v257_v14 = vld.sshfl [vmem:[#allocation1] sm:$0xff pattern:$0x73625140] }
  0x4c   :  { %2782 = vmatmul.msk.f32.vlgmr.msra.gmra.mxu0 %vm259_vm1, %v257_v14  ;;  %768 = vmatpush.msrb.mxu2 %v3598_v12 }
  0x4f   :  { %v258_v49 = vld.sshfl [vmem:[#allocation1 + $0x20] sm:$0xff pattern:$0x73625140] }
  0x54   :  { %2783 = vmatmul.msk.f32.gmra.mxu0 %vm259_vm1, %v258_v49 }
  0xc6   :  { %v426_v23 = vpop.f32.mrf.mxu3 }
  0xc7   :  { %v427_v24 = vadd.f32 %v3608_v22, %v426_v23 }
  0xc9   :  { %v285_v20 = vpop.f32.mrf.mxu0  ;;  %450 = vrot.lane.b32.xlu0 %v427_v24, %s3427_s22 }
  0xca   :  { %v286_v21 = vadd.f32 %v2863_v19, %v285_v20 }
  0xcc   :  { %2784 = vmatmul.msk.f32.vlgmr.msra.gmra.mxu1 %vm305_vm2, %v286_v21  ;;  %2786 = vmatmul.msk.f32.vlgmr.msra.gmra.mxu2 %vm305_vm2, %v286_v21 }
  0xcd   :  { %1087 = vmatpush.msra.mxu2 %v3590_v5 }
  0xcf   :  { %1088 = vmatpush.msra.mxu2 %v3592_v6 }
  0xd1   :  { %1089 = vmatpush.msra.mxu2 %v3595_v7  ;;  %v288_v53 = vpop.f32.mrf.mxu0 }
  0xd2   :  { %v289_v54 = vadd.f32 %v2863_v19, %v288_v53 }
  0xd3   :  { %1090 = vmatpush.msra.mxu2 %v3598_v12 }
  0xd4   :  { %2787 = vmatmul.msk.f32.gmra.mxu2 %vm305_vm2, %v289_v54  ;;  %2785 = vmatmul.msk.f32.gmra.mxu1 %vm305_vm2, %v289_v54 }
 0x13b   :  { %v451_v40 = vpop.permute.xlu0 %450 }
 0x149   :  { %v329_v27 = vpop.f32.mrf.mxu1 }
 0x14a   :  { %v3623_v28 = vadd.f32 %v329_v27, %v301_v26 }
 0x14c   :  { %v429_v29 = vadd.f32 %v427_v24, %v3623_v28  ;;  %v360_v3 = vrot.slane %v3623_v28, 2  ;;  %v361_v54 = vrot.slane %v3623_v28, 4 }
 0x14e   :  { %v2788_v30 = vmul.f32 -1.442695, %v429_v29  ;;  %v3666_v29 = vld [vmem:[%s4388_s9 + $0x18] sm:$0xff] }
 0x14f   :  { %v3654_v63 = vpop.f32.mrf.mxu2  ;;  %495 = vmatpush.msrb.mxu3 %v3666_v29 }
 0x150   :  { %2868 = vpow2.f32 %v2788_v30  ;;  %v3672_v30 = vld [vmem:[%s4388_s9 + $0x10] sm:$0xff] }
 0x151   :  { %496 = vmatpush.msrb.mxu3 %v3672_v30 }
 0x156   :  { %v2869_v31 = vpop.eup %2868 }
 0x157   :  { %v433_v32 = vadd.f32 1.0, %v2869_v31  ;;  %v3656_v0 = vpop.f32.mrf.mxu2  ;;  %v3677_v31 = vld [vmem:[%s4388_s9 + $0x8] sm:$0xff] }
 0x158   :  { %497 = vmatpush.msrb.mxu3 %v3677_v31 }
 0x159   :  { %2870 = vrcp.f32 %v433_v32  ;;  %v445_v36 = vand.u32 2147483648, %v433_v32  ;;  %v443_v38 = vand.u32 2147483647, %v433_v32  ;;  %vm439_vm4 = vweird.f32 %v433_v32 }
 0x15b   :  { %v446_v41 = vor.u32 1.1754944e-38, %v445_v36  ;;  %vm444_vm6 = vcmp.eq.f32.partialorder %v443_v38, 8.507059e+37 }
 0x15f   :  { %v2871_v33 = vpop.eup %2870 }
 0x160   :  { %v435_v34 = vmul.f32 %v2871_v33, %v433_v32  ;;  %vm440_vm3 = vweird.f32 %v2871_v33  ;;  %v3683_v32 = vld [vmem:[%s4388_s9] sm:$0xff] }
 0x161   :  { %vm441_vm5 = vmor %vm439_vm4, %vm440_vm3  ;;  %498 = vmatpush.msrb.mxu3 %v3683_v32 }
 0x162   :  { %v436_v35 = vsub.f32 1.0, %v435_v34 }
 0x163   :  { %831 = vmatpush.msra.mxu3 %v3666_v29 }
 0x164   :  { %v437_v37 = vmul.f32 %v2871_v33, %v436_v35 }
 0x165   :  { %832 = vmatpush.msra.mxu3 %v3672_v30 }
 0x166   :  { %v438_v39 = vadd.f32 %v2871_v33, %v437_v37 }
 0x167   :  { %833 = vmatpush.msra.mxu3 %v3677_v31 }
 0x168   :  { %v442_v42 = vsel %vm441_vm5, %v2871_v33, %v438_v39 }
 0x169   :  { %v447_v43 = vsel %vm444_vm6, %v446_v41, %v442_v42  ;;  %834 = vmatpush.msra.mxu3 %v3683_v32 }
 0x16a   :  { %v453_v44 = vmul.f32 %v451_v40, %v447_v43  ;;  %v460_v55 = vsub.f32 1.0, %v447_v43  ;;  %v466_v57 = vmul.f32 0.0, %v447_v43 }
 0x16c   :  { %455 = vrot.lane.b32.xlu0 %v453_v44, %s3427_s22 }
 0x1de   :  { %v456_v50 = vpop.permute.xlu0 %455 }
 0x1df   :  { %v458_v51 = vadd.f32 %v456_v50, %v3623_v28 }
 0x1e1   :  { %2872 = vtanh.f32 %v458_v51  ;;  %v3716_v51 = vld [vmem:[#allocation2] sm:$0xff] }
 0x1e7   :  { %v2873_v52 = vpop.eup %2872 }
 0x1e8   :  { %462 = vrot.lane.b32.xlu1 %v2873_v52, %s3428_s12 }
 0x25a   :  { %v463_v56 = vpop.permute.xlu1 %462 }
 0x25b   :  { %v465_v58 = vmul.f32 %v463_v56, %v460_v55 }
 0x25d   :  { %v3644_v59 = vadd.f32 %v466_v57, %v465_v58 }
 0x25f   :  { %477 = vst [vmem:[#allocation1] ss:$4 sm:$0xff] %v3644_v59 }
 0x266   :  { %v478_v60 = vld.sshfl [vmem:[#allocation1] sm:$0xff pattern:$0x73625140] }
 0x267   :  { %747 = vst [vmem:[#allocation1] ss:$4 sm:$0xff] %v3644_v59 }
 0x26e   :  { %v748_v61 = vld.sshfl [vmem:[#allocation1] sm:$0xff pattern:$0x73625140] }
 0x26f   :  { %749 = vrot.lane.b32.xlu1 %v748_v61, %s3428_s12 }
 0x2e1   :  { %v750_v62 = vpop.permute.xlu1 %749 }
 0x2e2   :  { %2793 = vmatmul.msk.f32.vlgmr.msrb.gmra.mxu2 %vm305_vm2, %v750_v62 }
 0x2e3   :  { %1409 = vmatpush.msrb.mxu2 %v3590_v5 }
 0x2e5   :  { %1410 = vmatpush.msrb.mxu2 %v3592_v6 }
 0x2e7   :  { %1411 = vmatpush.msrb.mxu2 %v3595_v7 }
 0x2e9   :  { %1412 = vmatpush.msrb.mxu2 %v3598_v12 }
 0x365   :  { %v770_v1 = vpop.f32.mrf.mxu2 }
 0x366   :  { %v771_v2 = vadd.f32 %v3608_v22, %v770_v1 }
 0x368   :  { %794 = vrot.lane.b32.xlu2 %v771_v2, %s3427_s22  ;;  %v773_v4 = vadd.f32 %v771_v2, %v360_v3 }
 0x36a   :  { %v2794_v8 = vmul.f32 -1.442695, %v773_v4 }
 0x36c   :  { %2874 = vpow2.f32 %v2794_v8 }
 0x372   :  { %v2875_v9 = vpop.eup %2874 }
 0x373   :  { %v777_v10 = vadd.f32 1.0, %v2875_v9 }
 0x375   :  { %2876 = vrcp.f32 %v777_v10  ;;  %v789_v18 = vand.u32 2147483648, %v777_v10  ;;  %vm783_vm8 = vweird.f32 %v777_v10  ;;  %v787_v19 = vand.u32 2147483647, %v777_v10 }
 0x377   :  { %v790_v21 = vor.u32 1.1754944e-38, %v789_v18  ;;  %vm788_vm10 = vcmp.eq.f32.partialorder %v787_v19, 8.507059e+37 }
 0x37b   :  { %v2877_v11 = vpop.eup %2876 }
 0x37c   :  { %v779_v14 = vmul.f32 %v2877_v11, %v777_v10  ;;  %vm784_vm7 = vweird.f32 %v2877_v11 }
 0x37d   :  { %vm785_vm9 = vmor %vm783_vm8, %vm784_vm7 }
 0x37e   :  { %v780_v15 = vsub.f32 1.0, %v779_v14 }
 0x380   :  { %v781_v16 = vmul.f32 %v2877_v11, %v780_v15 }
 0x382   :  { %v782_v17 = vadd.f32 %v2877_v11, %v781_v16  ;;  %v3723_v16 = vld [vmem:[#allocation2 + $0x8] sm:$0xff] }
 0x384   :  { %v786_v20 = vsel %vm785_vm9, %v2877_v11, %v782_v17 }
 0x385   :  { %v791_v24 = vsel %vm788_vm10, %v790_v21, %v786_v20 }
 0x386   :  { %v804_v37 = vsub.f32 1.0, %v791_v24  ;;  %v810_v39 = vmul.f32 %v791_v24, %v3644_v59 }
 0x3c2   :  { %v795_v23 = vpop.permute.xlu2 %794 }
 0x3c3   :  { %v797_v27 = vmul.f32 %v795_v23, %v791_v24 }
 0x3c5   :  { %799 = vrot.lane.b32.xlu2 %v797_v27, %s3427_s22  ;;  %v519_v27 = vlaneseq }
 0x3cd   :  { %479 = vrot.lane.b32.xlu2 %v478_v60, %s3428_s12 }
 0x41f   :  { %v800_v33 = vpop.permute.xlu2 %799 }
 0x420   :  { %v802_v34 = vadd.f32 %v800_v33, %v360_v3  ;;  %v3733_v33 = vand.u32 127, %v519_v27 }
 0x422   :  { %2878 = vtanh.f32 %v802_v34 }
 0x427   :  { %v480_v35 = vpop.permute.xlu2 %479 }
 0x428   :  { %v2879_v36 = vpop.eup %2878  ;;  %2789 = vmatmul.msk.f32.vlgmr.msrb.gmra.mxu3 %vm305_vm2, %v480_v35 }
 0x429   :  { %806 = vrot.lane.b32.xlu0 %v2879_v36, %s3428_s12  ;;  %1153 = vmatpush.msrb.mxu3 %v3666_v29 }
 0x42b   :  { %1154 = vmatpush.msrb.mxu3 %v3672_v30 }
 0x42d   :  { %1155 = vmatpush.msrb.mxu3 %v3677_v31 }
 0x42f   :  { %1156 = vmatpush.msrb.mxu3 %v3683_v32 }
 0x49b   :  { %v807_v38 = vpop.permute.xlu0 %806 }
 0x49c   :  { %v809_v40 = vmul.f32 %v807_v38, %v804_v37 }
 0x49e   :  { %v3698_v41 = vadd.f32 %v810_v39, %v809_v40 }
 0x4a0   :  { %813 = vst [vmem:[#allocation1] ss:$4 sm:$0xff] %v3698_v41 }
 0x4a7   :  { %v814_v42 = vld.sshfl [vmem:[#allocation1] sm:$0xff pattern:$0x73625140] }
 0x4a8   :  { %1069 = vst [vmem:[#allocation1] ss:$4 sm:$0xff] %v3698_v41 }
 0x4ab   :  { %v500_v48 = vpop.f32.mrf.mxu3 }
 0x4ac   :  { %v501_v49 = vadd.f32 %v3713_v47, %v500_v48  ;;  %v3429_v48 = vmov 0  }
 0x4ad   :  { %2861 = vset.pattern.permute.xlu0 %v3429_v48  ;;  %2860 = vset.pattern.permute.xlu1 %v3429_v48 }
 0x4ae   :  { %v505_v50 = vperm.slane %v501_v49, 0  ;;  %v504_v14 = vrot.slane %v501_v49, 1  ;;  %2862 = vset.pattern.permute.xlu2 %v3429_v48 }
 0x4af   :  { %v1070_v43 = vld.sshfl [vmem:[#allocation1] sm:$0xff pattern:$0x73625140] }
 0x4b0   :  { %1071 = vrot.lane.b32.xlu1 %v1070_v43, %s3428_s12  ;;  %v509_v52 = vmul.f32 %v505_v50, %v3716_v51  ;;  %v506_v15 = vperm.slane %v504_v14, 0 }
 0x4b2   :  { %v511_v53 = vsel %vm305_vm2, %v509_v52, 0.0  ;;  %v510_v17 = vmul.f32 %v506_v15, %v3723_v16 }
 0x4b4   :  { %v514_v18 = vsel %vm305_vm2, %v510_v17, 0.0  ;;  %v362_v17 = vrot.slane %v3623_v28, 6 }
 0x522   :  { %v1072_v44 = vpop.permute.xlu1 %1071 }
 0x523   :  { %2800 = vmatmul.msk.f32.vlgmr.msra.gmra.mxu2 %vm305_vm2, %v1072_v44 }
 0x524   :  { %1731 = vmatpush.msra.mxu2 %v3590_v5 }
 0x526   :  { %1732 = vmatpush.msra.mxu2 %v3592_v6 }
 0x528   :  { %1733 = vmatpush.msra.mxu2 %v3595_v7 }
 0x52a   :  { %1734 = vmatpush.msra.mxu2 %v3598_v12 }
 0x5a6   :  { %v1092_v45 = vpop.f32.mrf.mxu2 }
 0x5a7   :  { %v1093_v46 = vadd.f32 %v3608_v22, %v1092_v45 }
 0x5a9   :  { %1116 = vrot.lane.b32.xlu0 %v1093_v46, %s3427_s22  ;;  %v1095_v55 = vadd.f32 %v1093_v46, %v361_v54 }
 0x5ab   :  { %v2801_v56 = vmul.f32 -1.442695, %v1095_v55 }
 0x5ad   :  { %2880 = vpow2.f32 %v2801_v56 }
 0x5b3   :  { %v2881_v57 = vpop.eup %2880 }
 0x5b4   :  { %v1099_v58 = vadd.f32 1.0, %v2881_v57 }
 0x5b6   :  { %2882 = vrcp.f32 %v1099_v58  ;;  %v1111_v2 = vand.u32 2147483648, %v1099_v58  ;;  %vm1105_vm12 = vweird.f32 %v1099_v58  ;;  %v1109_v3 = vand.u32 2147483647, %v1099_v58 }
 0x5b8   :  { %v1112_v8 = vor.u32 1.1754944e-38, %v1111_v2  ;;  %vm1110_vm14 = vcmp.eq.f32.partialorder %v1109_v3, 8.507059e+37 }
 0x5bc   :  { %v2883_v59 = vpop.eup %2882 }
 0x5bd   :  { %v1101_v60 = vmul.f32 %v2883_v59, %v1099_v58  ;;  %vm1106_vm11 = vweird.f32 %v2883_v59 }
 0x5be   :  { %vm1107_vm13 = vmor %vm1105_vm12, %vm1106_vm11 }
 0x5bf   :  { %v1102_v61 = vsub.f32 1.0, %v1101_v60 }
 0x5c1   :  { %v1103_v62 = vmul.f32 %v2883_v59, %v1102_v61 }
 0x5c3   :  { %v1104_v1 = vadd.f32 %v2883_v59, %v1103_v62 }
 0x5c5   :  { %v1108_v4 = vsel %vm1107_vm13, %v2883_v59, %v1104_v1 }
 0x5c6   :  { %v1113_v10 = vsel %vm1110_vm14, %v1112_v8, %v1108_v4  ;;  %vm374_vm14 = vcmask 1043458  }
 0x5c7   :  { %v1126_v39 = vsub.f32 1.0, %v1113_v10 }
 0x5d3   :  { %512 = vadd.xlane.f32.xlu0 %v511_v53 }
 0x5e7   :  { %815 = vrot.lane.b32.xlu0 %v814_v42, %s3428_s12  ;;  %v1132_v42 = vmul.f32 %v1113_v10, %v3698_v41 }
 0x61b   :  { %v1117_v9 = vpop.permute.xlu0 %1116 }
 0x61c   :  { %v1119_v11 = vmul.f32 %v1117_v9, %v1113_v10 }
 0x61e   :  { %1121 = vrot.lane.b32.xlu1 %v1119_v11, %s3427_s22 }
 0x646   :  { %v513_v19 = vpop.xlane.xlu0 %512 }
 0x647   :  { %v521_v36 = vperm.slane %v513_v19, %v3733_v33 }
 0x648   :  { %515 = vadd.xlane.f32.xlu1 %v514_v18 }
 0x659   :  { %v816_v20 = vpop.permute.xlu0 %815 }
 0x65a   :  { %2795 = vmatmul.msk.f32.vlgmr.msra.gmra.mxu3 %vm305_vm2, %v816_v20 }
 0x65b   :  { %1475 = vmatpush.msra.mxu3 %v3666_v29 }
 0x65d   :  { %1476 = vmatpush.msra.mxu3 %v3672_v30 }
 0x65f   :  { %1477 = vmatpush.msra.mxu3 %v3677_v31 }
 0x661   :  { %1478 = vmatpush.msra.mxu3 %v3683_v32 }
 0x690   :  { %v1122_v21 = vpop.permute.xlu1 %1121 }
 0x691   :  { %v1124_v23 = vadd.f32 %v1122_v21, %v361_v54 }
 0x693   :  { %2884 = vtanh.f32 %v1124_v23 }
 0x699   :  { %v2885_v24 = vpop.eup %2884 }
 0x69a   :  { %1128 = vrot.lane.b32.xlu2 %v2885_v24, %s3428_s12 }
 0x6bb   :  { %v516_v34 = vpop.xlane.xlu1 %515 }
 0x6bc   :  { %v522_v35 = vperm.slane %v516_v34, %v3733_v33 }
 0x6be   :  { %v524_v37 = vsel %vm523_vm15, %v522_v35, %v521_v36 }
 0x6bf   :  { %v527_v38 = vsel %vm526_vm0, %v524_v37, -inf }
 0x6c3   :  { %528 = vmax.xlane.f32.xlu2 %v527_v38 }
 0x6dd   :  { %v836_v8 = vpop.f32.mrf.mxu3 }
 0x6de   :  { %v3762_v9 = vadd.f32 %v3713_v47, %v836_v8 }
 0x6e0   :  { %v840_v10 = vrot.slane %v3762_v9, 1 }
 0x6e2   :  { %v842_v11 = vperm.slane %v840_v10, 0 }
 0x6e4   :  { %v846_v14 = vmul.f32 %v842_v11, %v3723_v16 }
 0x6e6   :  { %v850_v15 = vsel %vm305_vm2, %v846_v14, 0.0 }
 0x6f4   :  { %v1129_v40 = vpop.permute.xlu2 %1128 }
 0x6f5   :  { %v1131_v43 = vmul.f32 %v1129_v40, %v1126_v39 }
 0x6f7   :  { %v3740_v44 = vadd.f32 %v1132_v42, %v1131_v43 }
 0x6f9   :  { %1135 = vst [vmem:[#allocation1] ss:$4 sm:$0xff] %v3740_v44 }
 0x700   :  { %v3743_v45 = vld.sshfl [vmem:[#allocation1] sm:$0xff pattern:$0x73625140] }
 0x701   :  { %1391 = vst [vmem:[#allocation1] ss:$4 sm:$0xff] %v3740_v44 }
 0x708   :  { %v1392_v46 = vld.sshfl [vmem:[#allocation1] sm:$0xff pattern:$0x73625140] }
 0x709   :  { %1393 = vrot.lane.b32.xlu2 %v1392_v46, %s3428_s12 }
 0x736   :  { %v529_v49 = vpop.xlane.xlu2 %528 }
 0x737   :  { %v531_v50 = vperm.slane %v529_v49, 0  ;;  %v532_v52 = vperm.slane %v529_v49, 1 }
 0x739   :  { %v535_v41 = vsub.f32 %v513_v19, %v531_v50  ;;  %v536_v53 = vsub.f32 %v516_v34, %v532_v52 }
 0x73b   :  { %v537_v54 = vmul.f32 1.442695, %v535_v41  ;;  %v539_v55 = vmul.f32 1.442695, %v536_v53 }
 0x73d   :  { %2886 = vpow2.f32 %v537_v54 }
 0x73e   :  { %2888 = vpow2.f32 %v539_v55 }
 0x743   :  { %v2887_v56 = vpop.eup %2886 }
 0x744   :  { %v3747_v57 = vpop.eup %2888  ;;  %544 = vperm.xlu1 %2860, %v2887_v56  }
 0x745   :  { %547 = vperm.xlu0 %2861, %v3747_v57  }
 0x763   :  { %v1394_v58 = vpop.permute.xlu2 %1393 }
 0x764   :  { %2807 = vmatmul.msk.f32.vlgmr.msrb.gmra.mxu2 %vm305_vm2, %v1394_v58 }
 0x765   :  { %2053 = vmatpush.msrb.mxu2 %v3590_v5 }
 0x767   :  { %2054 = vmatpush.msrb.mxu2 %v3592_v6 }
 0x769   :  { %2055 = vmatpush.msrb.mxu2 %v3595_v7 }
 0x76b   :  { %2056 = vmatpush.msrb.mxu2 %v3598_v12 }
 0x7b6   :  { %v545_v59 = vpop.permute.xlu1 %544 }
 0x7b7   :  { %v548_v60 = vpop.permute.xlu0 %547  ;;  %v549_v61 = vperm.slane %v545_v59, %v3733_v33 }
 0x7b8   :  { %v550_v62 = vperm.slane %v548_v60, %v3733_v33 }
 0x7ba   :  { %v551_v1 = vsel %vm523_vm15, %v550_v62, %v549_v61 }
 0x7bb   :  { %v553_v2 = vsel %vm526_vm0, %v551_v1, 0.0 }
 0x7bc   :  { %554 = vadd.xlane.f32.xlu2 %v553_v2 }
 0x7e7   :  { %v1414_v3 = vpop.f32.mrf.mxu2 }
 0x7e8   :  { %v1415_v4 = vadd.f32 %v3608_v22, %v1414_v3 }
 0x7ea   :  { %1438 = vrot.lane.b32.xlu0 %v1415_v4, %s3427_s22  ;;  %v1417_v18 = vadd.f32 %v1415_v4, %v362_v17 }
 0x7ec   :  { %v2808_v19 = vmul.f32 -1.442695, %v1417_v18 }
 0x7ee   :  { %2890 = vpow2.f32 %v2808_v19 }
 0x7f4   :  { %v2891_v24 = vpop.eup %2890 }
 0x7f5   :  { %v1421_v38 = vadd.f32 1.0, %v2891_v24  ;;  %v3786_v24 = vld [vmem:[#allocation16 + $0x8] sm:$0xff] }
 0x7f7   :  { %v1433_v8 = vand.u32 2147483648, %v1421_v38  ;;  %vm1427_vm11 = vweird.f32 %v1421_v38 }
 0x7f9   :  { %v1434_v11 = vor.u32 1.1754944e-38, %v1433_v8 }
 0x814   :  { %851 = vadd.xlane.f32.xlu0 %v850_v15 }
 0x82f   :  { %v555_v20 = vpop.xlane.xlu2 %554 }
 0x830   :  { %v557_v21 = vperm.slane %v555_v20, 0  ;;  %v558_v23 = vperm.slane %v555_v20, 1 }
 0x832   :  { %2892 = vrcp.f32 %v557_v21  ;;  %v572_v40 = vand.u32 2147483648, %v557_v21  ;;  %v570_v43 = vand.u32 2147483647, %v557_v21  ;;  %vm566_vm3 = vweird.f32 %v557_v21 }
 0x833   :  { %2894 = vrcp.f32 %v558_v23  ;;  %v587_v53 = vand.u32 2147483648, %v558_v23  ;;  %vm581_vm7 = vweird.f32 %v558_v23  ;;  %v585_v55 = vand.u32 2147483647, %v558_v23 }
 0x834   :  { %2896 = vrcp.f32 %v1421_v38  ;;  %v573_v49 = vor.u32 1.1754944e-38, %v572_v40  ;;  %vm571_vm5 = vcmp.eq.f32.partialorder %v570_v43, 8.507059e+37 }
 0x835   :  { %v588_v60 = vor.u32 1.1754944e-38, %v587_v53  ;;  %vm586_vm9 = vcmp.eq.f32.partialorder %v585_v55, 8.507059e+37 }
 0x838   :  { %v2893_v27 = vpop.eup %2892 }
 0x839   :  { %v2895_v34 = vpop.eup %2894  ;;  %v562_v35 = vmul.f32 %v2893_v27, %v557_v21  ;;  %vm567_vm1 = vweird.f32 %v2893_v27  ;;  %v3780_v21 = vld [vmem:[#allocation16 + $0x18] sm:$0xff] }
 0x83a   :  { %v577_v36 = vmul.f32 %v2895_v34, %v558_v23  ;;  %vm568_vm4 = vmor %vm566_vm3, %vm567_vm1  ;;  %vm582_vm6 = vweird.f32 %v2895_v34  ;;  %v2897_v59 = vpop.eup %2896  ;;  %638 = vmatpush.msrb.mxu0 %v3780_v21  ;;  %v3783_v23 = vld [vmem:[#allocation16 + $0x10] sm:$0xff]  ;;  %vm650_vm1 = vcmask 785408  }
 0x83b   :  { %v563_v37 = vsub.f32 1.0, %v562_v35  ;;  %vm583_vm8 = vmor %vm581_vm7, %vm582_vm6  ;;  %v1423_v62 = vmul.f32 %v2897_v59, %v1421_v38  ;;  %vm1428_vm10 = vweird.f32 %v2897_v59 }
 0x83c   :  { %v578_v39 = vsub.f32 1.0, %v577_v36  ;;  %vm1429_vm12 = vmor %vm1427_vm11, %vm1428_vm10  ;;  %639 = vmatpush.msrb.mxu0 %v3783_v23 }
 0x83d   :  { %v564_v42 = vmul.f32 %v2893_v27, %v563_v37  ;;  %v1424_v2 = vsub.f32 1.0, %v1423_v62 }
 0x83e   :  { %v579_v46 = vmul.f32 %v2895_v34, %v578_v39  ;;  %640 = vmatpush.msrb.mxu0 %v3786_v24 }
 0x83f   :  { %v565_v48 = vadd.f32 %v2893_v27, %v564_v42  ;;  %v1425_v3 = vmul.f32 %v2897_v59, %v1424_v2 }
 0x840   :  { %v580_v52 = vadd.f32 %v2895_v34, %v579_v46 }
 0x841   :  { %v569_v50 = vsel %vm568_vm4, %v2893_v27, %v565_v48  ;;  %v1426_v4 = vadd.f32 %v2897_v59, %v1425_v3  ;;  %v3788_v27 = vld [vmem:[#allocation16] sm:$0xff] }
 0x842   :  { %v574_v41 = vsel %vm571_vm5, %v573_v49, %v569_v50  ;;  %v584_v58 = vsel %vm583_vm8, %v2895_v34, %v580_v52  ;;  %641 = vmatpush.msrb.mxu0 %v3788_v27 }
 0x843   :  { %v575_v54 = vmul.f32 %v2887_v56, %v574_v41  ;;  %v589_v61 = vsel %vm586_vm9, %v588_v60, %v584_v58  ;;  %v1431_v56 = vand.u32 2147483647, %v1421_v38  ;;  %v1430_v10 = vsel %vm1429_vm12, %v2897_v59, %v1426_v4  ;;  %v3809_v60 = vld [vmem:[#allocation17 + $0x18] sm:$0xff] }
 0x844   :  { %v590_v1 = vmul.f32 %v3747_v57, %v589_v61  ;;  %v841_v57 = vperm.slane %v3762_v9, 0  ;;  %966 = vmatpush.msra.mxu0 %v3780_v21  ;;  %v3811_v61 = vld [vmem:[#allocation17 + $0x10] sm:$0xff]  ;;  %674 = vmatpush.msrb.mxu1 %v3809_v60 }
 0x845   :  { %593 = vperm.xlu1 %2860, %v575_v54   ;;  %vm1432_vm13 = vcmp.eq.f32.partialorder %v1431_v56, 8.507059e+37 }
 0x846   :  { %v3771_v15 = vsel %vm1432_vm13, %v1434_v11, %v1430_v10  ;;  %v845_v19 = vmul.f32 %v841_v57, %v3716_v51  ;;  %967 = vmatpush.msra.mxu0 %v3783_v23  ;;  %675 = vmatpush.msrb.mxu1 %v3811_v61 }
 0x847   :  { %v1448_v3 = vsub.f32 1.0, %v3771_v15  ;;  %v1454_v8 = vmul.f32 %v3771_v15, %v3740_v44  ;;  %v3849_v44 = vpop.f32.mrf.mxu1 }
 0x848   :  { %v847_v20 = vsel %vm305_vm2, %v845_v19, 0.0  ;;  %968 = vmatpush.msra.mxu0 %v3786_v24 }
 0x84a   :  { %969 = vmatpush.msra.mxu0 %v3788_v27 }
 0x84d   :  { %598 = vperm.xlu1 %2860, %v590_v1  }
 0x85c   :  { %v1439_v14 = vpop.permute.xlu0 %1438 }
 0x85d   :  { %v1441_v18 = vmul.f32 %v1439_v14, %v3771_v15 }
 0x85f   :  { %1443 = vrot.lane.b32.xlu2 %v1441_v18, %s3427_s22 }
 0x867   :  { %1137 = vrot.lane.b32.xlu2 %v3743_v45, %s3428_s12 }
 0x877   :  { %848 = vadd.xlane.f32.xlu1 %v847_v20 }
 0x8b7   :  { %v594_v45 = vpop.permute.xlu1 %593 }
 0x8b8   :  { %v601_v9 = vmul.f32 %v594_v45, %v3716_v51 }
 0x8b9   :  { %v1444_v34 = vpop.permute.xlu2 %1443 }
 0x8ba   :  { %v603_v35 = vsel %vm305_vm2, %v601_v9, 0.0  ;;  %v1446_v36 = vadd.f32 %v1444_v34, %v362_v17 }
 0x8bb   :  { %v604_v37 = vrot.slane %v603_v35, 4 }
 0x8bc   :  { %2898 = vtanh.f32 %v1446_v36  ;;  %v3860_v36 = vld [vmem:[%s4392_s13] ss:$0 sm:$0xff] }
 0x8bd   :  { %v605_v38 = vadd.f32 %v604_v37, %v603_v35 }
 0x8bf   :  { %v599_v39 = vpop.permute.xlu1 %598  ;;  %v606_v42 = vrot.slane %v605_v38, 2 }
 0x8c0   :  { %v602_v40 = vmul.f32 %v599_v39, %v3723_v16 }
 0x8c1   :  { %v1138_v43 = vpop.permute.xlu2 %1137  ;;  %v607_v50 = vadd.f32 %v606_v42, %v605_v38 }
 0x8c2   :  { %v2899_v46 = vpop.eup %2898  ;;  %v610_v48 = vsel %vm305_vm2, %v602_v40, 0.0  ;;  %2802 = vmatmul.msk.f32.vlgmr.msrb.gmra.mxu3 %vm305_vm2, %v1138_v43 }
 0x8c3   :  { %v611_v49 = vrot.slane %v610_v48, 4  ;;  %1450 = vrot.lane.b32.xlu0 %v2899_v46, %s3428_s12  ;;  %1797 = vmatpush.msrb.mxu3 %v3666_v29  ;;  %v608_v41 = vrot.slane %v607_v50, 1  ;;  %v3815_v29 = vld [vmem:[#allocation17 + $0x8] sm:$0xff] }
 0x8c4   :  { %676 = vmatpush.msrb.mxu1 %v3815_v29 }
 0x8c5   :  { %v612_v17 = vadd.f32 %v611_v49, %v610_v48  ;;  %1798 = vmatpush.msrb.mxu3 %v3672_v30  ;;  %v609_v55 = vadd.f32 %v608_v41, %v607_v50  ;;  %v3819_v30 = vld [vmem:[#allocation17] sm:$0xff] }
 0x8c6   :  { %677 = vmatpush.msrb.mxu1 %v3819_v30 }
 0x8c7   :  { %v613_v52 = vrot.slane %v612_v17, 2  ;;  %1799 = vmatpush.msrb.mxu3 %v3677_v31  ;;  %678 = vmatmul.f32.vlgmr.msrb.gmra.mxu1 %v3426_v13  ;;  %v852_v31 = vpop.xlane.xlu0 %851 }
 0x8c8   :  { %996 = vmatpush.msra.mxu1 %v3809_v60 }
 0x8c9   :  { %v614_v53 = vadd.f32 %v613_v52, %v612_v17  ;;  %1800 = vmatpush.msrb.mxu3 %v3683_v32  ;;  %v856_v32 = vperm.slane %v852_v31, %v3733_v33  ;;  %v302_v17 = vperm.slane %v3618_v25, 1 }
 0x8ca   :  { %997 = vmatpush.msra.mxu1 %v3811_v61 }
 0x8cb   :  { %v615_v54 = vrot.slane %v614_v53, 1 }
 0x8cc   :  { %998 = vmatpush.msra.mxu1 %v3815_v29 }
 0x8cd   :  { %v616_v58 = vadd.f32 %v615_v54, %v614_v53 }
 0x8ce   :  { %999 = vmatpush.msra.mxu1 %v3819_v30 }
 0x8cf   :  { %v623_v59 = vsel %vm523_vm15, %v616_v58, %v609_v55 }
 0x8d0   :  { %2790 = vmatmul.msk.f32.vlgmr.msrb.gmra.mxu0 %vm305_vm2, %v623_v59  ;;  %1318 = vmatpush.msrb.mxu1 %v3809_v60 }
 0x8d1   :  { %1288 = vmatpush.msrb.mxu0 %v3780_v21 }
 0x8d2   :  { %1319 = vmatpush.msrb.mxu1 %v3811_v61 }
 0x8d3   :  { %1289 = vmatpush.msrb.mxu0 %v3783_v23 }
 0x8d4   :  { %1320 = vmatpush.msrb.mxu1 %v3815_v29 }
 0x8d5   :  { %1290 = vmatpush.msrb.mxu0 %v3786_v24 }
 0x8d6   :  { %1321 = vmatpush.msrb.mxu1 %v3819_v30 }
 0x8d7   :  { %1291 = vmatpush.msrb.mxu0 %v3788_v27 }
 0x8ea   :  { %v849_v13 = vpop.xlane.xlu1 %848 }
 0x8eb   :  { %v855_v62 = vperm.slane %v849_v13, %v3733_v33 }
 0x8ed   :  { %v857_v1 = vsel %vm523_vm15, %v856_v32, %v855_v62 }
 0x8ee   :  { %v859_v2 = vsel %vm526_vm0, %v857_v1, -inf }
 0x8ef   :  { %860 = vmax.xlane.f32.xlu1 %v859_v2 }
 0x935   :  { %v1451_v4 = vpop.permute.xlu0 %1450 }
 0x936   :  { %v1453_v56 = vmul.f32 %v1451_v4, %v1448_v3 }
 0x938   :  { %v3842_v10 = vadd.f32 %v1454_v8, %v1453_v56 }
 0x93a   :  { %1457 = vst [vmem:[#allocation1] ss:$4 sm:$0xff] %v3842_v10 }
 0x941   :  { %v3845_v11 = vld.sshfl [vmem:[#allocation1] sm:$0xff pattern:$0x73625140] }
 0x942   :  { %1713 = vst [vmem:[#allocation1] ss:$4 sm:$0xff] %v3842_v10 }
 0x944   :  { %v679_v37 = vpop.f32.mrf.mxu1 }
 0x945   :  { %v680_v38 = vadd.f32 %v3860_v36, %v679_v37 }
 0x949   :  { %v1714_v39 = vld.sshfl [vmem:[#allocation1] sm:$0xff pattern:$0x73625140] }
 0x94d   :  { %v643_v14 = vpop.f32.mrf.mxu0 }
 0x94e   :  { %647 = vrot.lane.b32.xlu0 %v643_v14, %s3428_s12 }
 0x962   :  { %v861_v18 = vpop.xlane.xlu1 %860 }
 0x963   :  { %v863_v57 = vperm.slane %v861_v18, 0  ;;  %v864_v19 = vperm.slane %v861_v18, 1 }
 0x965   :  { %v867_v20 = vsub.f32 %v849_v13, %v863_v57  ;;  %v868_v45 = vsub.f32 %v852_v31, %v864_v19 }
 0x967   :  { %v869_v9 = vmul.f32 1.442695, %v867_v20  ;;  %v871_v34 = vmul.f32 1.442695, %v868_v45 }
 0x969   :  { %2900 = vpow2.f32 %v869_v9 }
 0x96a   :  { %2902 = vpow2.f32 %v871_v34 }
 0x96f   :  { %v3851_v15 = vpop.eup %2900 }
 0x970   :  { %v3853_v35 = vpop.eup %2902  ;;  %876 = vperm.xlu1 %2860, %v3851_v15  }
 0x971   :  { %879 = vperm.xlu2 %2862, %v3853_v35  }
 0x978   :  { %729 = vrot.lane.b32.xlu1 %v680_v38, %s3430_s21 }
 0x979   :  { %1715 = vrot.lane.b32.xlu2 %v1714_v39, %s3428_s12 }
 0x981   :  { %683 = vrot.lane.b32.xlu2 %v680_v38, %s3428_s12 }
 0x9cb   :  { %v880_v40 = vpop.permute.xlu2 %879 }
 0x9cc   :  { %v882_v46 = vperm.slane %v880_v40, %v3733_v33 }
 0x9d3   :  { %v1716_v42 = vpop.permute.xlu2 %1715 }
 0x9d4   :  { %2814 = vmatmul.msk.f32.vlgmr.msra.gmra.mxu2 %vm305_vm2, %v1716_v42 }
 0x9d5   :  { %2375 = vmatpush.msra.mxu2 %v3590_v5  ;;  %v353_v5 = vadd.f32 %v3654_v63, %v302_v17 }
 0x9d7   :  { %2376 = vmatpush.msra.mxu2 %v3592_v6  ;;  %v648_v6 = vpop.permute.xlu0 %647 }
 0x9d9   :  { %2377 = vmatpush.msra.mxu2 %v3595_v7  ;;  %v3879_v7 = vrot.slane %v353_v5, 6 }
 0x9db   :  { %2378 = vmatpush.msra.mxu2 %v3598_v12  ;;  %v649_v12 = vrot.slane %v648_v6, 6  ;;  %v375_v52 = vsel %vm374_vm14, %v3623_v28, %v3879_v7  ;;  %v3885_v54 = vpop.permute.xlu2 %683 }
 0x9dc   :  { %v376_v53 = vrot.slane %v375_v52, 2 }
 0x9dd   :  { %v651_v41 = vsel %vm650_vm1, %v649_v12, %v648_v6 }
 0x9de   :  { %v3887_v55 = vadd.f32 %v651_v41, %v376_v53 }
 0x9e0   :  { %v686_v63 = vadd.f32 %v3885_v54, %v3887_v55 }
 0x9e2   :  { %v877_v43 = vpop.permute.xlu1 %876  ;;  %v2791_v58 = vmul.f32 -1.442695, %v686_v63 }
 0x9e3   :  { %v881_v48 = vperm.slane %v877_v43, %v3733_v33 }
 0x9e4   :  { %2904 = vpow2.f32 %v2791_v58 }
 0x9e5   :  { %v883_v49 = vsel %vm523_vm15, %v882_v46, %v881_v48 }
 0x9e6   :  { %v885_v50 = vsel %vm526_vm0, %v883_v49, 0.0 }
 0x9e7   :  { %886 = vadd.xlane.f32.xlu0 %v885_v50 }
 0x9ea   :  { %v2905_v59 = vpop.eup %2904 }
 0x9eb   :  { %v690_v31 = vadd.f32 1.0, %v2905_v59  ;;  %v730_v59 = vpop.permute.xlu1 %729 }
 0x9ed   :  { %2906 = vrcp.f32 %v690_v31  ;;  %v702_v12 = vand.u32 2147483648, %v690_v31  ;;  %vm696_vm12 = vweird.f32 %v690_v31  ;;  %v700_v41 = vand.u32 2147483647, %v690_v31 }
 0x9ef   :  { %v703_v58 = vor.u32 1.1754944e-38, %v702_v12 }
 0x9f3   :  { %v2907_v3 = vpop.eup %2906 }
 0x9f4   :  { %v692_v4 = vmul.f32 %v2907_v3, %v690_v31  ;;  %vm697_vm9 = vweird.f32 %v2907_v3 }
 0x9f5   :  { %vm698_vm13 = vmor %vm696_vm12, %vm697_vm9  ;;  %vm377_vm12 = vcmask 1045508  }
 0x9f6   :  { %v693_v18 = vsub.f32 1.0, %v692_v4 }
 0x9f8   :  { %v694_v34 = vmul.f32 %v2907_v3, %v693_v18 }
 0x9fa   :  { %v695_v50 = vadd.f32 %v2907_v3, %v694_v34 }
 0x9fc   :  { %v699_v63 = vsel %vm698_vm13, %v2907_v3, %v695_v50 }
 0xa57   :  { %v1736_v13 = vpop.f32.mrf.mxu2 }
 0xa58   :  { %v3892_v32 = vadd.f32 %v3608_v22, %v1736_v13 }
 0xa5a   :  { %1760 = vrot.lane.b32.xlu0 %v3892_v32, %s3427_s22  ;;  %v887_v62 = vpop.xlane.xlu0 %886 }
 0xa5b   :  { %v889_v1 = vperm.slane %v887_v62, 0  ;;  %v890_v2 = vperm.slane %v887_v62, 1 }
 0xa5d   :  { %2908 = vrcp.f32 %v889_v1  ;;  %v904_v20 = vand.u32 2147483648, %v889_v1  ;;  %v902_v9 = vand.u32 2147483647, %v889_v1  ;;  %v917_v37 = vand.u32 2147483647, %v890_v2 }
 0xa5e   :  { %2910 = vrcp.f32 %v890_v2  ;;  %v919_v38 = vand.u32 2147483648, %v890_v2  ;;  %vm898_vm5 = vweird.f32 %v889_v1  ;;  %vm913_vm7 = vweird.f32 %v890_v2 }
 0xa5f   :  { %v905_v42 = vor.u32 1.1754944e-38, %v904_v20  ;;  %vm903_vm8 = vcmp.eq.f32.partialorder %v902_v9, 8.507059e+37  ;;  %vm918_vm11 = vcmp.eq.f32.partialorder %v917_v37, 8.507059e+37  ;;  %v707_v20 = vrot.slane %v3887_v55, 2 }
 0xa60   :  { %v920_v48 = vor.u32 1.1754944e-38, %v919_v38 }
 0xa63   :  { %v2909_v8 = vpop.eup %2908 }
 0xa64   :  { %v894_v56 = vmul.f32 %v2909_v8, %v889_v1  ;;  %v2911_v14 = vpop.eup %2910  ;;  %vm899_vm3 = vweird.f32 %v2909_v8 }
 0xa65   :  { %v909_v19 = vmul.f32 %v2911_v14, %v890_v2  ;;  %vm914_vm4 = vweird.f32 %v2911_v14  ;;  %vm900_vm6 = vmor %vm898_vm5, %vm899_vm3  ;;  %vm701_vm3 = vcmp.eq.f32.partialorder %v700_v41, 8.507059e+37 }
 0xa66   :  { %v895_v57 = vsub.f32 1.0, %v894_v56  ;;  %vm915_vm10 = vmor %vm913_vm7, %vm914_vm4  ;;  %v704_v13 = vsel %vm701_vm3, %v703_v58, %v699_v63 }
 0xa67   :  { %v910_v45 = vsub.f32 1.0, %v909_v19  ;;  %v732_v62 = vmul.f32 %v730_v59, %v704_v13 }
 0xa68   :  { %v896_v22 = vmul.f32 %v2909_v8, %v895_v57 }
 0xa69   :  { %v911_v39 = vmul.f32 %v2911_v14, %v910_v45  ;;  %v709_v45 = vadd.f32 %v707_v20, %v3885_v54 }
 0xa6a   :  { %v897_v40 = vadd.f32 %v2909_v8, %v896_v22 }
 0xa6b   :  { %v912_v43 = vadd.f32 %v2911_v14, %v911_v39  ;;  %v2792_v9 = vmul.f32 -1.442695, %v709_v45 }
 0xa6c   :  { %v901_v46 = vsel %vm900_vm6, %v2909_v8, %v897_v40 }
 0xa6d   :  { %v906_v49 = vsel %vm903_vm8, %v905_v42, %v901_v46  ;;  %v916_v5 = vsel %vm915_vm10, %v2911_v14, %v912_v43 }
 0xa6e   :  { %v907_v6 = vmul.f32 %v3851_v15, %v906_v49  ;;  %v921_v52 = vsel %vm918_vm11, %v920_v48, %v916_v5  ;;  %v1158_v15 = vpop.f32.mrf.mxu3 }
 0xa6f   :  { %v922_v53 = vmul.f32 %v3853_v35, %v921_v52  ;;  %v1159_v1 = vadd.f32 %v3713_v47, %v1158_v15  ;;  %v3905_v35 = vadd.f32 %v3849_v44, %v301_v26 }
 0xa70   :  { %925 = vperm.xlu2 %2862, %v907_v6  }
 0xa71   :  { %930 = vperm.xlu1 %2860, %v922_v53   ;;  %v1162_v31 = vrot.slane %v1159_v1, 1  ;;  %v1163_v2 = vperm.slane %v1159_v1, 0  ;;  %v1739_v4 = vadd.f32 %v3892_v32, %v3905_v35 }
 0xa73   :  { %v1164_v3 = vperm.slane %v1162_v31, 0  ;;  %v1167_v8 = vmul.f32 %v1163_v2, %v3716_v51  ;;  %v2815_v56 = vmul.f32 -1.442695, %v1739_v4 }
 0xa75   :  { %v1168_v14 = vmul.f32 %v1164_v3, %v3723_v16  ;;  %v1169_v18 = vsel %vm305_vm2, %v1167_v8, 0.0  ;;  %2912 = vpow2.f32 %v2815_v56 }
 0xa77   :  { %v1172_v47 = vsel %vm305_vm2, %v1168_v14, 0.0 }
 0xa78   :  { %733 = vrot.lane.b32.xlu2 %v3887_v55, %s3428_s12 }
 0xa79   :  { %738 = vrot.lane.b32.xlu1 %v732_v62, %s3430_s21 }
 0xa7b   :  { %v2913_v57 = vpop.eup %2912 }
 0xa7c   :  { %v1743_v19 = vadd.f32 1.0, %v2913_v57 }
 0xa7e   :  { %2914 = vrcp.f32 %v1743_v19  ;;  %v1755_v37 = vand.u32 2147483648, %v1743_v19  ;;  %vm1749_vm5 = vweird.f32 %v1743_v19  ;;  %v1753_v38 = vand.u32 2147483647, %v1743_v19 }
 0xa7f   :  { %2916 = vpow2.f32 %v2792_v9 }
 0xa80   :  { %v1756_v40 = vor.u32 1.1754944e-38, %v1755_v37  ;;  %vm1754_vm7 = vcmp.eq.f32.partialorder %v1753_v38, 8.507059e+37 }
 0xa84   :  { %v2915_v26 = vpop.eup %2914 }
 0xa85   :  { %v1745_v44 = vmul.f32 %v2915_v26, %v1743_v19  ;;  %vm1750_vm4 = vweird.f32 %v2915_v26  ;;  %v2917_v55 = vpop.eup %2916 }
 0xa86   :  { %vm1751_vm6 = vmor %vm1749_vm5, %vm1750_vm4  ;;  %v713_v54 = vadd.f32 1.0, %v2917_v55 }
 0xa87   :  { %v1746_v32 = vsub.f32 1.0, %v1745_v44 }
 0xa88   :  { %2918 = vrcp.f32 %v713_v54  ;;  %v725_v2 = vand.u32 2147483648, %v713_v54  ;;  %vm719_vm9 = vweird.f32 %v713_v54  ;;  %v723_v8 = vand.u32 2147483647, %v713_v54 }
 0xa89   :  { %v1747_v22 = vmul.f32 %v2915_v26, %v1746_v32 }
 0xa8a   :  { %vm724_vm11 = vcmp.eq.f32.partialorder %v723_v8, 8.507059e+37 }
 0xa8b   :  { %v1748_v34 = vadd.f32 %v2915_v26, %v1747_v22 }
 0xa8d   :  { %v1752_v39 = vsel %vm1751_vm6, %v2915_v26, %v1748_v34 }
 0xa8e   :  { %v2919_v49 = vpop.eup %2918 }
 0xa8f   :  { %v715_v5 = vmul.f32 %v2919_v49, %v713_v54  ;;  %vm720_vm8 = vweird.f32 %v2919_v49  ;;  %v3947_v54 = vld [vmem:[%s4388_s9 + $0x18] sm:$0xff] }
 0xa90   :  { %vm721_vm10 = vmor %vm719_vm9, %vm720_vm8 }
 0xa91   :  { %v716_v12 = vsub.f32 1.0, %v715_v5 }
 0xa93   :  { %v717_v63 = vmul.f32 %v2919_v49, %v716_v12 }
 0xa95   :  { %v718_v31 = vadd.f32 %v2919_v49, %v717_v63 }
 0xaa1   :  { %1170 = vadd.xlane.f32.xlu2 %v1169_v18  ;;  %v722_v18 = vsel %vm721_vm10, %v2919_v49, %v718_v31  ;;  %v3965_v49 = vld [vmem:[%s4388_s9] sm:$0xff] }
 0xaa3   :  { %1173 = vadd.xlane.f32.xlu1 %v1172_v47  ;;  %v726_v47 = vor.u32 1.1754944e-38, %v725_v2 }
 0xaa5   :  { %v727_v19 = vsel %vm724_vm11, %v726_v47, %v722_v18 }
 0xaa6   :  { %v743_v32 = vsub.f32 1.0, %v727_v19  ;;  %v745_v9 = vmul.f32 0.0, %v727_v19 }
 0xab9   :  { %1459 = vrot.lane.b32.xlu2 %v3845_v11, %s3428_s12  ;;  %v3917_v11 = vsel %vm1754_vm7, %v1756_v40, %v1752_v39 }
 0xaba   :  { %v1776_v18 = vmul.f32 %v3917_v11, %v3842_v10 }
 0xaca   :  { %v926_v46 = vpop.permute.xlu2 %925 }
 0xacb   :  { %v933_v48 = vmul.f32 %v926_v46, %v3716_v51  ;;  %v3953_v46 = vld [vmem:[%s4388_s9 + $0x10] sm:$0xff] }
 0xacc   :  { %v1761_v42 = vpop.permute.xlu0 %1760 }
 0xacd   :  { %v1763_v43 = vmul.f32 %v1761_v42, %v3917_v11  ;;  %v935_v50 = vsel %vm305_vm2, %v933_v48, 0.0  ;;  %v3959_v48 = vld [vmem:[%s4388_s9 + $0x8] sm:$0xff] }
 0xace   :  { %v936_v6 = vrot.slane %v935_v50, 4 }
 0xacf   :  { %1765 = vrot.lane.b32.xlu1 %v1763_v43, %s3427_s22 }
 0xad0   :  { %v937_v52 = vadd.f32 %v936_v6, %v935_v50 }
 0xad2   :  { %v938_v58 = vrot.slane %v937_v52, 2  ;;  %v734_v13 = vpop.permute.xlu2 %733 }
 0xad3   :  { %v735_v51 = vrot.slane %v734_v13, 2 }
 0xad4   :  { %v939_v15 = vadd.f32 %v938_v58, %v937_v52 }
 0xad6   :  { %v940_v14 = vrot.slane %v939_v15, 1 }
 0xad8   :  { %v941_v26 = vadd.f32 %v940_v14, %v939_v15  ;;  %v1770_v14 = vsub.f32 1.0, %v3917_v11 }
 0xae3   :  { %v931_v41 = vpop.permute.xlu1 %930 }
 0xae4   :  { %v934_v53 = vmul.f32 %v931_v41, %v3723_v16 }
 0xae6   :  { %v942_v59 = vsel %vm305_vm2, %v934_v53, 0.0 }
 0xae7   :  { %v943_v62 = vrot.slane %v942_v59, 4 }
 0xae9   :  { %v944_v1 = vadd.f32 %v943_v62, %v942_v59 }
 0xaeb   :  { %v945_v3 = vrot.slane %v944_v1, 2  ;;  %v739_v4 = vpop.permute.xlu1 %738 }
 0xaec   :  { %v741_v56 = vadd.f32 %v739_v4, %v735_v51 }
 0xaed   :  { %v946_v16 = vadd.f32 %v945_v3, %v944_v1 }
 0xaee   :  { %2920 = vtanh.f32 %v741_v56 }
 0xaef   :  { %v947_v57 = vrot.slane %v946_v16, 1 }
 0xaf1   :  { %v948_v44 = vadd.f32 %v947_v57, %v946_v16 }
 0xaf3   :  { %v951_v20 = vsel %vm523_vm15, %v948_v44, %v941_v26 }
 0xaf4   :  { %v2921_v45 = vpop.eup %2920  ;;  %2796 = vmatmul.msk.f32.vlgmr.msra.gmra.mxu0 %vm305_vm2, %v951_v20  ;;  %v378_v20 = vsel %vm377_vm12, %v3623_v28, %v3879_v7 }
 0xaf5   :  { %v744_v22 = vmul.f32 %v2921_v45, %v743_v32  ;;  %1610 = vmatpush.msra.mxu0 %v3780_v21  ;;  %v379_v11 = vrot.slane %v378_v20, 4 }
 0xaf7   :  { %v3928_v34 = vadd.f32 %v745_v9, %v744_v22  ;;  %1611 = vmatpush.msra.mxu0 %v3783_v23  ;;  %v4003_v9 = vld [vmem:[%s4389_s10] ss:$0 sm:$0xff] }
 0xaf9   :  { %2797 = vmatmul.msk.f32.vlgmr.msra.gmra.mxu1 %vm305_vm2, %v3928_v34  ;;  %1612 = vmatpush.msra.mxu0 %v3786_v24 }
 0xafa   :  { %1640 = vmatpush.msra.mxu1 %v3809_v60 }
 0xafb   :  { %1613 = vmatpush.msra.mxu0 %v3788_v27 }
 0xafc   :  { %1641 = vmatpush.msra.mxu1 %v3811_v61 }
 0xafe   :  { %1642 = vmatpush.msra.mxu1 %v3815_v29 }
 0xb00   :  { %1643 = vmatpush.msra.mxu1 %v3819_v30 }
 0xb14   :  { %v1171_v37 = vpop.xlane.xlu2 %1170 }
 0xb15   :  { %v1177_v38 = vperm.slane %v1171_v37, %v3733_v33 }
 0xb16   :  { %v1174_v39 = vpop.xlane.xlu1 %1173 }
 0xb17   :  { %v1178_v40 = vperm.slane %v1174_v39, %v3733_v33 }
 0xb19   :  { %v1179_v42 = vsel %vm523_vm15, %v1178_v40, %v1177_v38 }
 0xb1a   :  { %v1181_v43 = vsel %vm526_vm0, %v1179_v42, -inf }
 0xb1b   :  { %1182 = vmax.xlane.f32.xlu0 %v1181_v43 }
 0xb1c   :  { %v1460_v55 = vpop.permute.xlu2 %1459 }
 0xb1d   :  { %2809 = vmatmul.msk.f32.vlgmr.msra.gmra.mxu3 %vm305_vm2, %v1460_v55 }
 0xb1e   :  { %2119 = vmatpush.msra.mxu3 %v3947_v54 }
 0xb20   :  { %2120 = vmatpush.msra.mxu3 %v3953_v46 }
 0xb22   :  { %2121 = vmatpush.msra.mxu3 %v3959_v48 }
 0xb24   :  { %2122 = vmatpush.msra.mxu3 %v3965_v49 }
 0xb41   :  { %v1766_v63 = vpop.permute.xlu1 %1765 }
 0xb42   :  { %v1768_v58 = vadd.f32 %v1766_v63, %v3905_v35 }
 0xb71   :  { %v971_v62 = vpop.f32.mrf.mxu0 }
 0xb76   :  { %v1001_v1 = vpop.f32.mrf.mxu1 }
 0xb77   :  { %v1002_v31 = vadd.f32 %v3860_v36, %v1001_v1 }
 0xb8e   :  { %v1183_v50 = vpop.xlane.xlu0 %1182 }
 0xb8f   :  { %v1185_v5 = vperm.slane %v1183_v50, 0  ;;  %v1186_v6 = vperm.slane %v1183_v50, 1 }
 0xb91   :  { %v1189_v12 = vsub.f32 %v1171_v37, %v1185_v5  ;;  %v1190_v52 = vsub.f32 %v1174_v39, %v1186_v6  ;;  %v4009_v39 = vld [vmem:[#allocation2] sm:$0xff] }
 0xb93   :  { %v1191_v41 = vmul.f32 1.442695, %v1189_v12  ;;  %v1193_v53 = vmul.f32 1.442695, %v1190_v52 }
 0xb95   :  { %2922 = vpow2.f32 %v1191_v41 }
 0xb96   :  { %2924 = vpow2.f32 %v1193_v53 }
 0xb97   :  { %2926 = vtanh.f32 %v1768_v58 }
 0xb9b   :  { %v3969_v59 = vpop.eup %2922 }
 0xb9c   :  { %v3971_v13 = vpop.eup %2924  ;;  %1198 = vperm.xlu2 %2862, %v3969_v59  }
 0xb9d   :  { %1201 = vperm.xlu1 %2860, %v3971_v13   ;;  %v2927_v15 = vpop.eup %2926 }
 0xba0   :  { %v1480_v22 = vpop.f32.mrf.mxu3 }
 0xba1   :  { %v4006_v37 = vadd.f32 %v4003_v9, %v1480_v22 }
 0xba3   :  { %v1485_v38 = vperm.slane %v4006_v37, 0 }
 0xba4   :  { %975 = vrot.lane.b32.xlu2 %v971_v62, %s3428_s12 }
 0xba5   :  { %1772 = vrot.lane.b32.xlu1 %v2927_v15, %s3428_s12  ;;  %v1489_v40 = vmul.f32 %v4009_v39, %v1485_v38 }
 0xba7   :  { %v1491_v42 = vsel %vm305_vm2, %v1489_v40, 0.0 }
 0xbac   :  { %1005 = vrot.lane.b32.xlu2 %v1002_v31, %s3428_s12 }
 0xbad   :  { %1051 = vrot.lane.b32.xlu1 %v1002_v31, %s3430_s21 }
 0xbf6   :  { %v1199_v51 = vpop.permute.xlu2 %1198 }
 0xbf7   :  { %v1203_v3 = vperm.slane %v1199_v51, %v3733_v33 }
 0xbfe   :  { %v976_v26 = vpop.permute.xlu2 %975 }
 0xbff   :  { %v977_v44 = vrot.slane %v976_v26, 6 }
 0xc01   :  { %v978_v10 = vsel %vm650_vm1, %v977_v44, %v976_v26 }
 0xc02   :  { %v3996_v45 = vadd.f32 %v978_v10, %v379_v11 }
 0xc06   :  { %v4013_v43 = vpop.permute.xlu2 %1005 }
 0xc07   :  { %v1008_v55 = vadd.f32 %v4013_v43, %v3996_v45 }
 0xc09   :  { %v2798_v50 = vmul.f32 -1.442695, %v1008_v55 }
 0xc0b   :  { %2928 = vpow2.f32 %v2798_v50 }
 0xc0f   :  { %v1202_v2 = vpop.permute.xlu1 %1201 }
 0xc10   :  { %v1204_v4 = vperm.slane %v1202_v2, %v3733_v33 }
 0xc11   :  { %v2929_v5 = vpop.eup %2928 }
 0xc12   :  { %v1205_v8 = vsel %vm523_vm15, %v1204_v4, %v1203_v3  ;;  %v1012_v6 = vadd.f32 1.0, %v2929_v5 }
 0xc13   :  { %v1207_v56 = vsel %vm526_vm0, %v1205_v8, 0.0 }
 0xc14   :  { %1208 = vadd.xlane.f32.xlu0 %v1207_v56  ;;  %2930 = vrcp.f32 %v1012_v6  ;;  %v1024_v38 = vand.u32 2147483648, %v1012_v6  ;;  %vm1018_vm11 = vweird.f32 %v1012_v6  ;;  %v1022_v55 = vand.u32 2147483647, %v1012_v6 }
 0xc17   :  { %v1773_v16 = vpop.permute.xlu1 %1772 }
 0xc18   :  { %v1775_v47 = vmul.f32 %v1773_v16, %v1770_v14 }
 0xc1a   :  { %v3987_v57 = vadd.f32 %v1776_v18, %v1775_v47  ;;  %v2931_v63 = vpop.eup %2930 }
 0xc1b   :  { %v1014_v58 = vmul.f32 %v2931_v63, %v1012_v6  ;;  %vm1019_vm7 = vweird.f32 %v2931_v63 }
 0xc1c   :  { %1779 = vst [vmem:[#allocation1] ss:$4 sm:$0xff] %v3987_v57 }
 0xc1d   :  { %v1015_v31 = vsub.f32 1.0, %v1014_v58  ;;  %v1484_v58 = vrot.slane %v4006_v37, 1  ;;  %v1029_v37 = vrot.slane %v3996_v45, 2 }
 0xc1f   :  { %v1016_v16 = vmul.f32 %v2931_v63, %v1015_v31  ;;  %v1031_v31 = vadd.f32 %v1029_v37, %v4013_v43 }
 0xc21   :  { %v1017_v10 = vadd.f32 %v2931_v63, %v1016_v16 }
 0xc23   :  { %v1780_v19 = vld.sshfl [vmem:[#allocation1] sm:$0xff pattern:$0x73625140] }
 0xc24   :  { %2035 = vst [vmem:[#allocation1] ss:$4 sm:$0xff] %v3987_v57 }
 0xc2b   :  { %v2036_v32 = vld.sshfl [vmem:[#allocation1] sm:$0xff pattern:$0x73625140] }
 0xc2c   :  { %2037 = vrot.lane.b32.xlu2 %v2036_v32, %s3428_s12 }
 0xc34   :  { %1055 = vrot.lane.b32.xlu2 %v3996_v45, %s3428_s12 }
 0xc5d   :  { %1492 = vadd.xlane.f32.xlu2 %v1491_v42 }
 0xc75   :  { %1781 = vrot.lane.b32.xlu2 %v1780_v19, %s3428_s12 }
 0xc86   :  { %v2038_v12 = vpop.permute.xlu2 %2037 }
 0xc87   :  { %v1209_v52 = vpop.xlane.xlu0 %1208  ;;  %2821 = vmatmul.msk.f32.vlgmr.msrb.gmra.mxu2 %vm305_vm2, %v2038_v12  ;;  %v1025_v12 = vor.u32 1.1754944e-38, %v1024_v38 }
 0xc88   :  { %v1211_v41 = vperm.slane %v1209_v52, 0  ;;  %v1212_v53 = vperm.slane %v1209_v52, 1 }
 0xc8a   :  { %2932 = vrcp.f32 %v1211_v41  ;;  %v1226_v4 = vand.u32 2147483648, %v1211_v41  ;;  %v1241_v8 = vand.u32 2147483648, %v1212_v53  ;;  %v1224_v14 = vand.u32 2147483647, %v1211_v41 }
 0xc8b   :  { %2934 = vrcp.f32 %v1212_v53  ;;  %v1239_v47 = vand.u32 2147483647, %v1212_v53  ;;  %vm1220_vm4 = vweird.f32 %v1211_v41  ;;  %vm1235_vm5 = vweird.f32 %v1212_v53 }
 0xc8c   :  { %v1227_v44 = vor.u32 1.1754944e-38, %v1226_v4  ;;  %v1242_v32 = vor.u32 1.1754944e-38, %v1241_v8  ;;  %vm1225_vm9 = vcmp.eq.f32.partialorder %v1224_v14, 8.507059e+37  ;;  %v4037_v14 = vld [vmem:[#allocation14] ss:$0 sm:$0xff] }
 0xc8d   :  { %vm1240_vm10 = vcmp.eq.f32.partialorder %v1239_v47, 8.507059e+37 }
 0xc90   :  { %v2933_v62 = vpop.eup %2932 }
 0xc91   :  { %v2935_v15 = vpop.eup %2934  ;;  %v1216_v1 = vmul.f32 %v2933_v62, %v1211_v41  ;;  %vm1221_vm13 = vweird.f32 %v2933_v62  ;;  %v1052_v41 = vpop.permute.xlu1 %1051 }
 0xc92   :  { %v1231_v51 = vmul.f32 %v2935_v15, %v1212_v53  ;;  %vm1236_vm3 = vweird.f32 %v2935_v15  ;;  %vm1222_vm6 = vmor %vm1220_vm4, %vm1221_vm13 }
 0xc93   :  { %v1217_v2 = vsub.f32 1.0, %v1216_v1  ;;  %vm1237_vm8 = vmor %vm1235_vm5, %vm1236_vm3  ;;  %vm1023_vm3 = vcmp.eq.f32.partialorder %v1022_v55, 8.507059e+37 }
 0xc94   :  { %v1232_v3 = vsub.f32 1.0, %v1231_v51  ;;  %vm1020_vm13 = vmor %vm1018_vm11, %vm1019_vm7  ;;  %v2799_v51 = vmul.f32 -1.442695, %v1031_v31 }
 0xc95   :  { %v1218_v56 = vmul.f32 %v2933_v62, %v1217_v2  ;;  %v1021_v5 = vsel %vm1020_vm13, %v2931_v63, %v1017_v10  ;;  %vm4399_vm13 = vcmask 1045504  }
 0xc96   :  { %v1233_v18 = vmul.f32 %v2935_v15, %v1232_v3  ;;  %v1026_v52 = vsel %vm1023_vm3, %v1025_v12, %v1021_v5  ;;  %2936 = vpow2.f32 %v2799_v51 }
 0xc97   :  { %v1219_v19 = vadd.f32 %v2933_v62, %v1218_v56  ;;  %v1054_v53 = vmul.f32 %v1052_v41, %v1026_v52 }
 0xc98   :  { %v1234_v26 = vadd.f32 %v2935_v15, %v1233_v18 }
 0xc99   :  { %v1223_v20 = vsel %vm1222_vm6, %v2933_v62, %v1219_v19  ;;  %v1486_v62 = vperm.slane %v1484_v58, 0 }
 0xc9a   :  { %v1238_v11 = vsel %vm1237_vm8, %v2935_v15, %v1234_v26  ;;  %v1228_v22 = vsel %vm1225_vm9, %v1227_v44, %v1223_v20  ;;  %v1056_v15 = vpop.permute.xlu2 %1055 }
 0xc9b   :  { %v1243_v40 = vsel %vm1240_vm10, %v1242_v32, %v1238_v11  ;;  %v1229_v42 = vmul.f32 %v3969_v59, %v1228_v22  ;;  %v4024_v59 = vld [vmem:[#allocation2 + $0x8] sm:$0xff]  ;;  %v1057_v10 = vrot.slane %v1056_v15, 2 }
 0xc9c   :  { %v1244_v50 = vmul.f32 %v3971_v13, %v1243_v40  ;;  %v1490_v6 = vmul.f32 %v4024_v59, %v1486_v62  ;;  %v2937_v2 = vpop.eup %2936 }
 0xc9d   :  { %1247 = vperm.xlu0 %2861, %v1229_v42   ;;  %v1035_v3 = vadd.f32 1.0, %v2937_v2 }
 0xc9e   :  { %1252 = vperm.xlu1 %2860, %v1244_v50   ;;  %v1494_v13 = vsel %vm305_vm2, %v1490_v6, 0.0 }
 0xc9f   :  { %2938 = vrcp.f32 %v1035_v3  ;;  %v1047_v22 = vand.u32 2147483648, %v1035_v3  ;;  %vm1041_vm5 = vweird.f32 %v1035_v3  ;;  %v1045_v42 = vand.u32 2147483647, %v1035_v3 }
 0xca1   :  { %v1048_v41 = vor.u32 1.1754944e-38, %v1047_v22  ;;  %vm1046_vm7 = vcmp.eq.f32.partialorder %v1045_v42, 8.507059e+37 }
 0xca5   :  { %v2939_v4 = vpop.eup %2938 }
 0xca6   :  { %1060 = vrot.lane.b32.xlu1 %v1054_v53, %s3430_s21  ;;  %v1037_v8 = vmul.f32 %v2939_v4, %v1035_v3  ;;  %vm1042_vm4 = vweird.f32 %v2939_v4 }
 0xca7   :  { %vm1043_vm6 = vmor %vm1041_vm5, %vm1042_vm4 }
 0xcc7   :  { %1495 = vadd.xlane.f32.xlu0 %v1494_v13 }
 0xcd0   :  { %v4028_v63 = vpop.xlane.xlu2 %1492 }
 0xcd8   :  { %v1782_v1 = vpop.permute.xlu2 %1781 }
 0xcd9   :  { %2816 = vmatmul.msk.f32.vlgmr.msrb.gmra.mxu3 %vm305_vm2, %v1782_v1 }
 0xcda   :  { %2441 = vmatpush.msrb.mxu3 %v3947_v54 }
 0xcdc   :  { %2442 = vmatpush.msrb.mxu3 %v3953_v46  ;;  %v1038_v46 = vsub.f32 1.0, %v1037_v8 }
 0xcde   :  { %2443 = vmatpush.msrb.mxu3 %v3959_v48  ;;  %v1039_v16 = vmul.f32 %v2939_v4, %v1038_v46 }
 0xce0   :  { %2444 = vmatpush.msrb.mxu3 %v3965_v49  ;;  %v1040_v20 = vadd.f32 %v2939_v4, %v1039_v16 }
 0xce2   :  { %v1044_v12 = vsel %vm1043_vm6, %v2939_v4, %v1040_v20 }
 0xce3   :  { %v1049_v62 = vsel %vm1046_vm7, %v1048_v41, %v1044_v12 }
 0xce4   :  { %v1065_v13 = vsub.f32 1.0, %v1049_v62  ;;  %v1067_v31 = vmul.f32 %v1049_v62, %v3928_v34  ;;  %v1499_v34 = vperm.slane %v4028_v63, %v3733_v33 }
 0xd0a   :  { %v2058_v56 = vpop.f32.mrf.mxu2 }
 0xd0b   :  { %v2059_v54 = vadd.f32 %v4037_v14, %v2058_v56 }
 0xd0d   :  { %2082 = vrot.lane.b32.xlu2 %v2059_v54, %s3427_s22 }
 0xd0f   :  { %v1248_v48 = vpop.permute.xlu0 %1247 }
 0xd10   :  { %v1253_v49 = vpop.permute.xlu1 %1252  ;;  %v1255_v45 = vmul.f32 %v4009_v39, %v1248_v48 }
 0xd11   :  { %v1256_v43 = vmul.f32 %v4024_v59, %v1253_v49 }
 0xd12   :  { %v1257_v18 = vsel %vm305_vm2, %v1255_v45, 0.0 }
 0xd13   :  { %v1264_v47 = vsel %vm305_vm2, %v1256_v43, 0.0  ;;  %v1258_v19 = vrot.slane %v1257_v18, 4 }
 0xd14   :  { %v1265_v26 = vrot.slane %v1264_v47, 4 }
 0xd15   :  { %v1259_v44 = vadd.f32 %v1258_v19, %v1257_v18 }
 0xd16   :  { %v1266_v32 = vadd.f32 %v1265_v26, %v1264_v47 }
 0xd17   :  { %v1260_v11 = vrot.slane %v1259_v44, 2 }
 0xd18   :  { %v1267_v38 = vrot.slane %v1266_v32, 2  ;;  %v1061_v40 = vpop.permute.xlu1 %1060 }
 0xd19   :  { %v1261_v55 = vadd.f32 %v1260_v11, %v1259_v44  ;;  %v1063_v50 = vadd.f32 %v1061_v40, %v1057_v10 }
 0xd1a   :  { %v1268_v5 = vadd.f32 %v1267_v38, %v1266_v32 }
 0xd1b   :  { %v1262_v52 = vrot.slane %v1261_v55, 1  ;;  %2940 = vtanh.f32 %v1063_v50 }
 0xd1c   :  { %v1269_v53 = vrot.slane %v1268_v5, 1 }
 0xd1d   :  { %v1263_v58 = vadd.f32 %v1262_v52, %v1261_v55 }
 0xd1e   :  { %v1270_v6 = vadd.f32 %v1269_v53, %v1268_v5  ;;  %v381_v53 = vsel %vm4399_vm13, %v3879_v7, %v3623_v28 }
 0xd1f   :  { %v382_v62 = vrot.slane %v381_v53, 6 }
 0xd20   :  { %v1273_v15 = vsel %vm523_vm15, %v1270_v6, %v1263_v58 }
 0xd21   :  { %v2941_v1 = vpop.eup %2940  ;;  %2803 = vmatmul.msk.f32.vlgmr.msrb.gmra.mxu0 %vm305_vm2, %v1273_v15 }
 0xd22   :  { %v1066_v37 = vmul.f32 %v2941_v1, %v1065_v13  ;;  %1932 = vmatpush.msrb.mxu0 %v3780_v21 }
 0xd24   :  { %v4049_v51 = vadd.f32 %v1067_v31, %v1066_v37  ;;  %1933 = vmatpush.msrb.mxu0 %v3783_v23 }
 0xd26   :  { %2804 = vmatmul.msk.f32.vlgmr.msrb.gmra.mxu1 %vm305_vm2, %v4049_v51  ;;  %1934 = vmatpush.msrb.mxu0 %v3786_v24 }
 0xd27   :  { %1962 = vmatpush.msrb.mxu1 %v3809_v60  ;;  %v363_v60 = vrot.slane %v3905_v35, 2 }
 0xd28   :  { %1935 = vmatpush.msrb.mxu0 %v3788_v27 }
 0xd29   :  { %1963 = vmatpush.msrb.mxu1 %v3811_v61  ;;  %v2061_v27 = vadd.f32 %v2059_v54, %v363_v60 }
 0xd2b   :  { %1964 = vmatpush.msrb.mxu1 %v3815_v29  ;;  %v2822_v61 = vmul.f32 -1.442695, %v2061_v27 }
 0xd2d   :  { %1965 = vmatpush.msrb.mxu1 %v3819_v30  ;;  %2942 = vpow2.f32 %v2822_v61 }
 0xd33   :  { %v2943_v29 = vpop.eup %2942 }
 0xd34   :  { %v2065_v30 = vadd.f32 1.0, %v2943_v29 }
 0xd36   :  { %2944 = vrcp.f32 %v2065_v30  ;;  %vm2071_vm9 = vweird.f32 %v2065_v30  ;;  %v2075_v20 = vand.u32 2147483647, %v2065_v30 }
 0xd38   :  { %vm2076_vm11 = vcmp.eq.f32.partialorder %v2075_v20, 8.507059e+37 }
 0xd3a   :  { %v1496_v21 = vpop.xlane.xlu0 %1495 }
 0xd3b   :  { %v1500_v23 = vperm.slane %v1496_v21, %v3733_v33 }
 0xd3c   :  { %v2945_v48 = vpop.eup %2944 }
 0xd3d   :  { %v1501_v2 = vsel %vm523_vm15, %v1500_v23, %v1499_v34  ;;  %v2067_v43 = vmul.f32 %v2945_v48, %v2065_v30  ;;  %vm2072_vm8 = vweird.f32 %v2945_v48 }
 0xd3e   :  { %v1503_v24 = vsel %vm526_vm0, %v1501_v2, -inf  ;;  %vm2073_vm10 = vmor %vm2071_vm9, %vm2072_vm8 }
 0xd3f   :  { %1504 = vmax.xlane.f32.xlu1 %v1503_v24  ;;  %v2068_v16 = vsub.f32 1.0, %v2067_v43 }
 0xd41   :  { %v2069_v47 = vmul.f32 %v2945_v48, %v2068_v16 }
 0xd43   :  { %v2070_v26 = vadd.f32 %v2945_v48, %v2069_v47 }
 0xd45   :  { %v2074_v10 = vsel %vm2073_vm10, %v2945_v48, %v2070_v26 }
 0xd67   :  { %v2083_v22 = vpop.permute.xlu2 %2082 }
 0xd9e   :  { %v1293_v44 = vpop.f32.mrf.mxu0 }
 0xda3   :  { %v1323_v19 = vpop.f32.mrf.mxu1 }
 0xda4   :  { %v1324_v32 = vadd.f32 %v3860_v36, %v1323_v19 }
 0xdb2   :  { %v1505_v3 = vpop.xlane.xlu1 %1504 }
 0xdb3   :  { %v1507_v4 = vperm.slane %v1505_v3, 0  ;;  %v1508_v8 = vperm.slane %v1505_v3, 1 }
 0xdb5   :  { %v1511_v56 = vsub.f32 %v4028_v63, %v1507_v4  ;;  %v1512_v46 = vsub.f32 %v1496_v21, %v1508_v8  ;;  %v2077_v63 = vand.u32 2147483648, %v2065_v30 }
 0xdb7   :  { %v1513_v49 = vmul.f32 1.442695, %v1511_v56  ;;  %v1515_v45 = vmul.f32 1.442695, %v1512_v46  ;;  %v2078_v11 = vor.u32 1.1754944e-38, %v2077_v63 }
 0xdb9   :  { %2946 = vpow2.f32 %v1513_v49  ;;  %v4078_v38 = vsel %vm2076_vm11, %v2078_v11, %v2074_v10 }
 0xdba   :  { %2948 = vpow2.f32 %v1515_v45  ;;  %v2085_v40 = vmul.f32 %v2083_v22, %v4078_v38 }
 0xdbf   :  { %v4069_v18 = vpop.eup %2946 }
 0xdc0   :  { %v4071_v54 = vpop.eup %2948  ;;  %1520 = vperm.xlu0 %2861, %v4069_v18  }
 0xdc1   :  { %1523 = vperm.xlu1 %2860, %v4071_v54  }
 0xdc8   :  { %1297 = vrot.lane.b32.xlu0 %v1293_v44, %s3428_s12 }
 0xdc9   :  { %1327 = vrot.lane.b32.xlu1 %v1324_v32, %s3428_s12 }
 0xdd0   :  { %2087 = vrot.lane.b32.xlu0 %v2085_v40, %s3427_s22 }
 0xdd1   :  { %1373 = vrot.lane.b32.xlu1 %v1324_v32, %s3430_s21 }
 0xe32   :  { %v1521_v36 = vpop.permute.xlu0 %1520 }
 0xe33   :  { %v1524_v42 = vpop.permute.xlu1 %1523  ;;  %v1525_v55 = vperm.slane %v1521_v36, %v3733_v33 }
 0xe34   :  { %v1526_v50 = vperm.slane %v1524_v42, %v3733_v33 }
 0xe36   :  { %v1527_v5 = vsel %vm523_vm15, %v1526_v50, %v1525_v55 }
 0xe37   :  { %v1529_v12 = vsel %vm526_vm0, %v1527_v5, 0.0 }
 0xe38   :  { %1530 = vadd.xlane.f32.xlu2 %v1529_v12  ;;  %v1802_v12 = vpop.f32.mrf.mxu3 }
 0xe3a   :  { %v1298_v52 = vpop.permute.xlu0 %1297 }
 0xe3b   :  { %v1299_v41 = vrot.slane %v1298_v52, 6  ;;  %v4093_v13 = vpop.permute.xlu1 %1327 }
 0xe3d   :  { %v1300_v58 = vsel %vm650_vm1, %v1299_v41, %v1298_v52  ;;  %v1803_v52 = vadd.f32 %v4003_v9, %v1802_v12  ;;  %v4129_v12 = vld [vmem:[#allocation16 + $0x10] sm:$0xff] }
 0xe3e   :  { %v4091_v6 = vadd.f32 %v1300_v58, %v382_v62 }
 0xe3f   :  { %v1807_v41 = vperm.slane %v1803_v52, 0  ;;  %v1806_v53 = vrot.slane %v1803_v52, 1  ;;  %v4132_v52 = vld [vmem:[#allocation16 + $0x8] sm:$0xff] }
 0xe40   :  { %v1330_v15 = vadd.f32 %v4093_v13, %v4091_v6 }
 0xe41   :  { %v1811_v58 = vmul.f32 %v4009_v39, %v1807_v41  ;;  %v1808_v62 = vperm.slane %v1806_v53, 0 }
 0xe42   :  { %v2805_v1 = vmul.f32 -1.442695, %v1330_v15  ;;  %v2088_v49 = vpop.permute.xlu0 %2087 }
 0xe43   :  { %v2090_v63 = vadd.f32 %v2088_v49, %v363_v60  ;;  %v1813_v15 = vsel %vm305_vm2, %v1811_v58, 0.0  ;;  %v4135_v58 = vld [vmem:[#allocation16] sm:$0xff] }
 0xe44   :  { %2950 = vpow2.f32 %v2805_v1  ;;  %v1812_v1 = vmul.f32 %v4024_v59, %v1808_v62 }
 0xe4a   :  { %v2951_v37 = vpop.eup %2950 }
 0xe4b   :  { %v1334_v31 = vadd.f32 1.0, %v2951_v37  ;;  %v1816_v37 = vsel %vm305_vm2, %v1812_v1, 0.0 }
 0xe4d   :  { %2952 = vrcp.f32 %v1334_v31  ;;  %v1346_v36 = vand.u32 2147483648, %v1334_v31  ;;  %v1344_v42 = vand.u32 2147483647, %v1334_v31 }
 0xe4f   :  { %v1347_v50 = vor.u32 1.1754944e-38, %v1346_v36 }
 0xe53   :  { %v2953_v28 = vpop.eup %2952 }
 0xe54   :  { %v1336_v29 = vmul.f32 %v2953_v28, %v1334_v31  ;;  %vm1341_vm11 = vweird.f32 %v2953_v28 }
 0xe56   :  { %v1337_v47 = vsub.f32 1.0, %v1336_v29 }
 0xe58   :  { %v1338_v22 = vmul.f32 %v2953_v28, %v1337_v47 }
 0xe5a   :  { %v1339_v40 = vadd.f32 %v2953_v28, %v1338_v22 }
 0xeab   :  { %v1531_v21 = vpop.xlane.xlu2 %1530 }
 0xeac   :  { %v1533_v34 = vperm.slane %v1531_v21, 0  ;;  %v1534_v23 = vperm.slane %v1531_v21, 1 }
 0xeae   :  { %2954 = vrcp.f32 %v1533_v34  ;;  %v1548_v3 = vand.u32 2147483648, %v1533_v34  ;;  %v1563_v4 = vand.u32 2147483648, %v1534_v23  ;;  %v1546_v56 = vand.u32 2147483647, %v1533_v34 }
 0xeaf   :  { %2956 = vrcp.f32 %v1534_v23  ;;  %v1561_v48 = vand.u32 2147483647, %v1534_v23  ;;  %vm1542_vm5 = vweird.f32 %v1533_v34  ;;  %vm1557_vm6 = vweird.f32 %v1534_v23 }
 0xeb0   :  { %v1549_v16 = vor.u32 1.1754944e-38, %v1548_v3  ;;  %v1564_v19 = vor.u32 1.1754944e-38, %v1563_v4  ;;  %vm1547_vm9 = vcmp.eq.f32.partialorder %v1546_v56, 8.507059e+37  ;;  %2958 = vtanh.f32 %v2090_v63 }
 0xeb1   :  { %vm1562_vm10 = vcmp.eq.f32.partialorder %v1561_v48, 8.507059e+37 }
 0xeb4   :  { %v2955_v7 = vpop.eup %2954 }
 0xeb5   :  { %v2957_v2 = vpop.eup %2956  ;;  %v1538_v24 = vmul.f32 %v2955_v7, %v1533_v34  ;;  %vm1543_vm3 = vweird.f32 %v2955_v7 }
 0xeb6   :  { %v1553_v27 = vmul.f32 %v2957_v2, %v1534_v23  ;;  %vm1558_vm4 = vweird.f32 %v2957_v2  ;;  %vm1544_vm7 = vmor %vm1542_vm5, %vm1543_vm3  ;;  %vm1340_vm3 = vweird.f32 %v1334_v31  ;;  %v2959_v55 = vpop.eup %2958  ;;  %vm1345_vm5 = vcmp.eq.f32.partialorder %v1344_v42, 8.507059e+37 }
 0xeb7   :  { %v1539_v61 = vsub.f32 1.0, %v1538_v24  ;;  %vm1559_vm8 = vmor %vm1557_vm6, %vm1558_vm4  ;;  %v1351_v31 = vrot.slane %v4091_v6, 2 }
 0xeb8   :  { %v1554_v30 = vsub.f32 1.0, %v1553_v27  ;;  %vm1342_vm4 = vmor %vm1340_vm3, %vm1341_vm11 }
 0xeb9   :  { %v1540_v8 = vmul.f32 %v2955_v7, %v1539_v61  ;;  %v1343_v60 = vsel %vm1342_vm4, %v2953_v28, %v1339_v40  ;;  %v1353_v21 = vadd.f32 %v1351_v31, %v4093_v13  ;;  %v4144_v31 = vld [vmem:[#allocation17 + $0x18] sm:$0xff] }
 0xeba   :  { %v1555_v46 = vmul.f32 %v2957_v2, %v1554_v30 }
 0xebb   :  { %v1541_v45 = vadd.f32 %v2955_v7, %v1540_v8  ;;  %v2806_v34 = vmul.f32 -1.442695, %v1353_v21  ;;  %v4147_v21 = vld [vmem:[#allocation17 + $0x10] sm:$0xff] }
 0xebc   :  { %v1556_v43 = vadd.f32 %v2957_v2, %v1555_v46  ;;  %v2092_v46 = vsub.f32 1.0, %v4078_v38 }
 0xebd   :  { %v1545_v26 = vsel %vm1544_vm7, %v2955_v7, %v1541_v45  ;;  %2960 = vpow2.f32 %v2806_v34  ;;  %v4150_v34 = vld [vmem:[#allocation17 + $0x8] sm:$0xff] }
 0xebe   :  { %v1560_v44 = vsel %vm1559_vm8, %v2957_v2, %v1556_v43  ;;  %v1550_v32 = vsel %vm1547_vm9, %v1549_v16, %v1545_v26  ;;  %v2098_v43 = vmul.f32 %v4078_v38, %v3987_v57 }
 0xebf   :  { %v1565_v20 = vsel %vm1562_vm10, %v1564_v19, %v1560_v44  ;;  %v1551_v10 = vmul.f32 %v4069_v18, %v1550_v32  ;;  %v1348_v18 = vsel %vm1345_vm5, %v1347_v50, %v1343_v60  ;;  %vm383_vm10 = vcmask 1041408  }
 0xec0   :  { %v1566_v11 = vmul.f32 %v4071_v54, %v1565_v20  ;;  %v1374_v54 = vpop.permute.xlu1 %1373 }
 0xec1   :  { %1569 = vperm.xlu0 %2861, %v1551_v10   ;;  %v1376_v5 = vmul.f32 %v1374_v54, %v1348_v18  ;;  %v4124_v18 = vld [vmem:[#allocation16 + $0x18] sm:$0xff] }
 0xec2   :  { %1574 = vperm.xlu1 %2860, %v1566_v11  }
 0xec3   :  { %v2961_v23 = vpop.eup %2960 }
 0xec4   :  { %v1357_v28 = vadd.f32 1.0, %v2961_v23 }
 0xec6   :  { %2962 = vrcp.f32 %v1357_v28  ;;  %v1369_v36 = vand.u32 2147483648, %v1357_v28  ;;  %vm1363_vm7 = vweird.f32 %v1357_v28  ;;  %v1367_v42 = vand.u32 2147483647, %v1357_v28 }
 0xec8   :  { %v1370_v50 = vor.u32 1.1754944e-38, %v1369_v36  ;;  %vm1368_vm9 = vcmp.eq.f32.partialorder %v1367_v42, 8.507059e+37 }
 0xec9   :  { %2094 = vrot.lane.b32.xlu0 %v2959_v55, %s3428_s12 }
 0xeca   :  { %1377 = vrot.lane.b32.xlu1 %v4091_v6, %s3428_s12 }
 0xecc   :  { %v2963_v7 = vpop.eup %2962 }
 0xecd   :  { %v1359_v29 = vmul.f32 %v2963_v7, %v1357_v28  ;;  %vm1364_vm6 = vweird.f32 %v2963_v7 }
 0xece   :  { %vm1365_vm8 = vmor %vm1363_vm7, %vm1364_vm6 }
 0xecf   :  { %v1360_v8 = vsub.f32 1.0, %v1359_v29 }
 0xed1   :  { %1382 = vrot.lane.b32.xlu0 %v1376_v5, %s3430_s21  ;;  %v1361_v19 = vmul.f32 %v2963_v7, %v1360_v8 }
 0xed3   :  { %v1362_v11 = vadd.f32 %v2963_v7, %v1361_v19 }
 0xed5   :  { %v1366_v60 = vsel %vm1365_vm8, %v2963_v7, %v1362_v11 }
 0xed6   :  { %v1371_v5 = vsel %vm1368_vm9, %v1370_v50, %v1366_v60 }
 0xed7   :  { %v1387_v41 = vsub.f32 1.0, %v1371_v5  ;;  %v1389_v62 = vmul.f32 %v1371_v5, %v4049_v51  ;;  %v4153_v51 = vld [vmem:[#allocation17] sm:$0xff] }
 0xef4   :  { %1814 = vadd.xlane.f32.xlu1 %v1813_v15 }
 0xefb   :  { %1817 = vadd.xlane.f32.xlu0 %v1816_v37 }
 0xf33   :  { %v1570_v2 = vpop.permute.xlu0 %1569 }
 0xf34   :  { %v1575_v24 = vpop.permute.xlu1 %1574  ;;  %v1577_v27 = vmul.f32 %v4009_v39, %v1570_v2 }
 0xf35   :  { %v1578_v61 = vmul.f32 %v4024_v59, %v1575_v24 }
 0xf36   :  { %v1579_v30 = vsel %vm305_vm2, %v1577_v27, 0.0 }
 0xf37   :  { %v1586_v3 = vsel %vm305_vm2, %v1578_v61, 0.0  ;;  %v1580_v6 = vrot.slane %v1579_v30, 4 }
 0xf38   :  { %v1587_v4 = vrot.slane %v1586_v3, 4 }
 0xf39   :  { %v1581_v13 = vadd.f32 %v1580_v6, %v1579_v30  ;;  %v4166_v6 = vld [vmem:[%s4392_s13] ss:$0 sm:$0xff] }
 0xf3a   :  { %v1588_v56 = vadd.f32 %v1587_v4, %v1586_v3 }
 0xf3b   :  { %v1582_v48 = vrot.slane %v1581_v13, 2  ;;  %v2095_v49 = vpop.permute.xlu0 %2094 }
 0xf3c   :  { %v1589_v45 = vrot.slane %v1588_v56, 2  ;;  %v2097_v16 = vmul.f32 %v2095_v49, %v2092_v46  ;;  %v1378_v32 = vpop.permute.xlu1 %1377 }
 0xf3d   :  { %v1583_v47 = vadd.f32 %v1582_v48, %v1581_v13  ;;  %v1379_v40 = vrot.slane %v1378_v32, 2 }
 0xf3e   :  { %v1590_v26 = vadd.f32 %v1589_v45, %v1588_v56  ;;  %v4119_v63 = vadd.f32 %v2098_v43, %v2097_v16 }
 0xf3f   :  { %v1584_v44 = vrot.slane %v1583_v47, 1 }
 0xf40   :  { %v1591_v20 = vrot.slane %v1590_v26, 1  ;;  %2101 = vst [vmem:[#allocation1] ss:$4 sm:$0xff] %v4119_v63 }
 0xf41   :  { %v1585_v10 = vadd.f32 %v1584_v44, %v1583_v47 }
 0xf42   :  { %v1592_v22 = vadd.f32 %v1591_v20, %v1590_v26  ;;  %v356_v26 = vadd.f32 %v3656_v0, %v302_v17  ;;  %v364_v0 = vrot.slane %v3905_v35, 4 }
 0xf43   :  { %v1383_v57 = vpop.permute.xlu0 %1382 }
 0xf44   :  { %v1385_v38 = vadd.f32 %v1383_v57, %v1379_v40  ;;  %v1595_v55 = vsel %vm523_vm15, %v1592_v22, %v1585_v10  ;;  %v4182_v44 = vrot.slane %v356_v26, 6 }
 0xf45   :  { %2810 = vmatmul.msk.f32.vlgmr.msra.gmra.mxu0 %vm305_vm2, %v1595_v55 }
 0xf46   :  { %2964 = vtanh.f32 %v1385_v38  ;;  %2254 = vmatpush.msra.mxu0 %v4124_v18  ;;  %v384_v10 = vsel %vm383_vm10, %v3905_v35, %v4182_v44 }
 0xf47   :  { %v2102_v54 = vld.sshfl [vmem:[#allocation1] sm:$0xff pattern:$0x73625140] }
 0xf48   :  { %2103 = vrot.lane.b32.xlu1 %v2102_v54, %s3428_s12  ;;  %2357 = vst [vmem:[#allocation1] ss:$4 sm:$0xff] %v4119_v63  ;;  %2255 = vmatpush.msra.mxu0 %v4129_v12 }
 0xf4a   :  { %2256 = vmatpush.msra.mxu0 %v4132_v52 }
 0xf4c   :  { %v2965_v53 = vpop.eup %2964  ;;  %2257 = vmatpush.msra.mxu0 %v4135_v58 }
 0xf4d   :  { %v1388_v15 = vmul.f32 %v2965_v53, %v1387_v41 }
 0xf4f   :  { %v4139_v1 = vadd.f32 %v1389_v62, %v1388_v15  ;;  %v2358_v37 = vld.sshfl [vmem:[#allocation1] sm:$0xff pattern:$0x73625140] }
 0xf50   :  { %2359 = vrot.lane.b32.xlu2 %v2358_v37, %s3428_s12 }
 0xf51   :  { %2811 = vmatmul.msk.f32.vlgmr.msra.gmra.mxu1 %vm305_vm2, %v4139_v1 }
 0xf52   :  { %2284 = vmatpush.msra.mxu1 %v4144_v31 }
 0xf54   :  { %2285 = vmatpush.msra.mxu1 %v4147_v21 }
 0xf56   :  { %2286 = vmatpush.msra.mxu1 %v4150_v34 }
 0xf58   :  { %2287 = vmatpush.msra.mxu1 %v4153_v51 }
 0xf67   :  { %v1815_v28 = vpop.xlane.xlu1 %1814 }
 0xf68   :  { %v1821_v2 = vperm.slane %v1815_v28, %v3733_v33 }
 0xf6e   :  { %v1818_v23 = vpop.xlane.xlu0 %1817 }
 0xf6f   :  { %v1822_v7 = vperm.slane %v1818_v23, %v3733_v33 }
 0xf71   :  { %v1823_v24 = vsel %vm523_vm15, %v1822_v7, %v1821_v2 }
 0xf72   :  { %v1825_v27 = vsel %vm526_vm0, %v1823_v24, -inf }
 0xf79   :  { %1826 = vmax.xlane.f32.xlu2 %v1825_v27 }
 0xfaa   :  { %v2360_v61 = vpop.permute.xlu2 %2359 }
 0xfab   :  { %2828 = vmatmul.msk.f32.vlgmr.msra.gmra.mxu2 %vm305_vm2, %v2360_v61 }
 0xfba   :  { %v2104_v29 = vpop.permute.xlu1 %2103 }
 0xfbb   :  { %2823 = vmatmul.msk.f32.vlgmr.msra.gmra.mxu3 %vm305_vm2, %v2104_v29 }
 0xfc2   :  { %v1615_v30 = vpop.f32.mrf.mxu0 }
 0xfc3   :  { %1619 = vrot.lane.b32.xlu1 %v1615_v30, %s3428_s12 }
 0xfce   :  { %v1645_v3 = vpop.f32.mrf.mxu1 }
 0xfcf   :  { %v1646_v4 = vadd.f32 %v4166_v6, %v1645_v3 }
 0xfd1   :  { %1695 = vrot.lane.b32.xlu1 %v1646_v4, %s3430_s21 }
 0xfec   :  { %v1827_v13 = vpop.xlane.xlu2 %1826 }
 0xfed   :  { %v1829_v8 = vperm.slane %v1827_v13, 0  ;;  %v1830_v56 = vperm.slane %v1827_v13, 1 }
 0xfef   :  { %v1833_v46 = vsub.f32 %v1815_v28, %v1829_v8  ;;  %v1834_v49 = vsub.f32 %v1818_v23, %v1830_v56 }
 0xff1   :  { %v1835_v48 = vmul.f32 1.442695, %v1833_v46  ;;  %v1837_v45 = vmul.f32 1.442695, %v1834_v49 }
 0xff3   :  { %2966 = vpow2.f32 %v1835_v48 }
 0xff4   :  { %2968 = vpow2.f32 %v1837_v45 }
 0xff9   :  { %v4170_v43 = vpop.eup %2966 }
 0xffa   :  { %1842 = vperm.xlu0 %2861, %v4170_v43   ;;  %v4173_v16 = vpop.eup %2968 }
0x1002   :  { %1845 = vperm.xlu0 %2861, %v4173_v16  }
0x100a   :  { %1649 = vrot.lane.b32.xlu0 %v1646_v4, %s3428_s12 }
0x102e   :  { %v2380_v47 = vpop.f32.mrf.mxu2 }
0x102f   :  { %v2381_v19 = vadd.f32 %v4037_v14, %v2380_v47 }
0x1031   :  { %2404 = vrot.lane.b32.xlu0 %v2381_v19, %s3427_s22  ;;  %v2383_v17 = vadd.f32 %v2381_v19, %v364_v0 }
0x1033   :  { %v2829_v42 = vmul.f32 -1.442695, %v2383_v17 }
0x1035   :  { %v1620_v32 = vpop.permute.xlu1 %1619  ;;  %2970 = vpow2.f32 %v2829_v42 }
0x1036   :  { %v1621_v20 = vrot.slane %v1620_v32, 6 }
0x1038   :  { %v1622_v11 = vsel %vm650_vm1, %v1621_v20, %v1620_v32 }
0x1039   :  { %v4187_v22 = vadd.f32 %v1622_v11, %v384_v10 }
0x103b   :  { %1699 = vrot.lane.b32.xlu0 %v4187_v22, %s3428_s12  ;;  %v2971_v55 = vpop.eup %2970 }
0x103c   :  { %v2387_v60 = vadd.f32 1.0, %v2971_v55 }
0x103e   :  { %2972 = vrcp.f32 %v2387_v60  ;;  %v2399_v15 = vand.u32 2147483648, %v2387_v60  ;;  %vm2393_vm3 = vweird.f32 %v2387_v60  ;;  %v2397_v37 = vand.u32 2147483647, %v2387_v60  ;;  %v2124_v27 = vpop.f32.mrf.mxu3 }
0x103f   :  { %v4205_v61 = vadd.f32 %v4003_v9, %v2124_v27 }
0x1040   :  { %v2400_v28 = vor.u32 1.1754944e-38, %v2399_v15  ;;  %vm2398_vm5 = vcmp.eq.f32.partialorder %v2397_v37, 8.507059e+37 }
0x1041   :  { %v2128_v29 = vrot.slane %v4205_v61, 1 }
0x1043   :  { %v2130_v30 = vperm.slane %v2128_v29, 0 }
0x1044   :  { %v2973_v50 = vpop.eup %2972 }
0x1045   :  { %v2389_v54 = vmul.f32 %v2973_v50, %v2387_v60  ;;  %vm2394_vm11 = vweird.f32 %v2973_v50  ;;  %v2134_v3 = vmul.f32 %v4024_v59, %v2130_v30 }
0x1046   :  { %vm2395_vm4 = vmor %vm2393_vm3, %vm2394_vm11 }
0x1047   :  { %v2390_v5 = vsub.f32 1.0, %v2389_v54  ;;  %v2138_v4 = vsel %vm305_vm2, %v2134_v3, 0.0  ;;  %v1696_v3 = vpop.permute.xlu1 %1695 }
0x1049   :  { %v2391_v41 = vmul.f32 %v2973_v50, %v2390_v5 }
0x104b   :  { %v2392_v62 = vadd.f32 %v2973_v50, %v2391_v41 }
0x104d   :  { %v2396_v23 = vsel %vm2395_vm4, %v2973_v50, %v2392_v62 }
0x104e   :  { %v4200_v7 = vsel %vm2398_vm5, %v2400_v28, %v2396_v23 }
0x106c   :  { %v1843_v25 = vpop.permute.xlu0 %1842 }
0x106d   :  { %v1847_v40 = vperm.slane %v1843_v25, %v3733_v33 }
0x1074   :  { %v1846_v14 = vpop.permute.xlu0 %1845 }
0x1075   :  { %v1848_v36 = vperm.slane %v1846_v14, %v3733_v33 }
0x1077   :  { %v1849_v57 = vsel %vm523_vm15, %v1848_v36, %v1847_v40 }
0x1078   :  { %v1851_v38 = vsel %vm526_vm0, %v1849_v57, 0.0 }
0x1079   :  { %1852 = vadd.xlane.f32.xlu2 %v1851_v38 }
0x107c   :  { %v4198_v53 = vpop.permute.xlu0 %1649 }
0x107d   :  { %v1652_v13 = vadd.f32 %v4198_v53, %v4187_v22 }
0x107f   :  { %v2812_v8 = vmul.f32 -1.442695, %v1652_v13 }
0x1081   :  { %2974 = vpow2.f32 %v2812_v8 }
0x1087   :  { %v2975_v56 = vpop.eup %2974 }
0x1088   :  { %v1656_v46 = vadd.f32 1.0, %v2975_v56  ;;  %v2129_v56 = vperm.slane %v4205_v61, 0 }
0x108a   :  { %2976 = vrcp.f32 %v1656_v46  ;;  %v1668_v28 = vand.u32 2147483648, %v1656_v46  ;;  %vm1662_vm13 = vweird.f32 %v1656_v46 }
0x108c   :  { %v1669_v29 = vor.u32 1.1754944e-38, %v1668_v28 }
0x1090   :  { %v2977_v45 = vpop.eup %2976 }
0x1091   :  { %v1658_v47 = vmul.f32 %v2977_v45, %v1656_v46  ;;  %vm1663_vm4 = vweird.f32 %v2977_v45 }
0x1093   :  { %v1659_v10 = vsub.f32 1.0, %v1658_v47 }
0x1095   :  { %v1660_v38 = vmul.f32 %v2977_v45, %v1659_v10 }
0x1097   :  { %v1661_v15 = vadd.f32 %v2977_v45, %v1660_v38 }
0x10a3   :  { %v2405_v2 = vpop.permute.xlu0 %2404 }
0x10a4   :  { %v2407_v24 = vmul.f32 %v2405_v2, %v4200_v7 }
0x10a6   :  { %2409 = vrot.lane.b32.xlu0 %v2407_v24, %s3427_s22  ;;  %v1666_v24 = vand.u32 2147483647, %v1656_v46  ;;  %v2133_v46 = vmul.f32 %v4009_v39, %v2129_v56 }
0x10ad   :  { %v1700_v13 = vpop.permute.xlu0 %1699 }
0x10d0   :  { %2139 = vadd.xlane.f32.xlu0 %v2138_v4 }
0x10ec   :  { %v1853_v48 = vpop.xlane.xlu2 %1852 }
0x10ed   :  { %v1855_v49 = vperm.slane %v1853_v48, 0  ;;  %v1856_v9 = vperm.slane %v1853_v48, 1  ;;  %v2135_v48 = vsel %vm305_vm2, %v2133_v46, 0.0 }
0x10ef   :  { %2978 = vrcp.f32 %v1855_v49  ;;  %v1870_v17 = vand.u32 2147483648, %v1855_v49  ;;  %v1885_v14 = vand.u32 2147483648, %v1856_v9  ;;  %v1868_v36 = vand.u32 2147483647, %v1855_v49 }
0x10f0   :  { %2980 = vrcp.f32 %v1856_v9  ;;  %v1883_v57 = vand.u32 2147483647, %v1856_v9  ;;  %vm1864_vm8 = vweird.f32 %v1855_v49  ;;  %vm1879_vm9 = vweird.f32 %v1856_v9 }
0x10f1   :  { %v1871_v50 = vor.u32 1.1754944e-38, %v1870_v17  ;;  %v1886_v54 = vor.u32 1.1754944e-38, %v1885_v14  ;;  %vm1869_vm3 = vcmp.eq.f32.partialorder %v1868_v36, 8.507059e+37 }
0x10f2   :  { %vm1884_vm5 = vcmp.eq.f32.partialorder %v1883_v57, 8.507059e+37 }
0x10f5   :  { %v2979_v19 = vpop.eup %2978 }
0x10f6   :  { %v2981_v26 = vpop.eup %2980  ;;  %v1860_v32 = vmul.f32 %v2979_v19, %v1855_v49  ;;  %vm1865_vm6 = vweird.f32 %v2979_v19  ;;  %v1673_v49 = vrot.slane %v4187_v22, 2 }
0x10f7   :  { %v1875_v20 = vmul.f32 %v2981_v26, %v1856_v9  ;;  %vm1880_vm7 = vweird.f32 %v2981_v26  ;;  %vm1866_vm10 = vmor %vm1864_vm8, %vm1865_vm6 }
0x10f8   :  { %v1861_v11 = vsub.f32 1.0, %v1860_v32  ;;  %vm1881_vm11 = vmor %vm1879_vm9, %vm1880_vm7  ;;  %vm1667_vm7 = vcmp.eq.f32.partialorder %v1666_v24, 8.507059e+37  ;;  %v1675_v9 = vadd.f32 %v1673_v49, %v4198_v53 }
0x10f9   :  { %v1876_v25 = vsub.f32 1.0, %v1875_v20  ;;  %vm1664_vm6 = vmor %vm1662_vm13, %vm1663_vm4 }
0x10fa   :  { %v1862_v40 = vmul.f32 %v2979_v19, %v1861_v11  ;;  %v1665_v27 = vsel %vm1664_vm6, %v2977_v45, %v1661_v15  ;;  %v2813_v45 = vmul.f32 -1.442695, %v1675_v9 }
0x10fb   :  { %v1877_v42 = vmul.f32 %v2981_v26, %v1876_v25  ;;  %v1670_v30 = vsel %vm1667_vm7, %v1669_v29, %v1665_v27 }
0x10fc   :  { %v1863_v55 = vadd.f32 %v2979_v19, %v1862_v40  ;;  %v1698_v4 = vmul.f32 %v1696_v3, %v1670_v30 }
0x10fd   :  { %v1878_v60 = vadd.f32 %v2981_v26, %v1877_v42  ;;  %v2414_v42 = vsub.f32 1.0, %v4200_v7 }
0x10fe   :  { %v1867_v5 = vsel %vm1866_vm10, %v2979_v19, %v1863_v55 }
0x10ff   :  { %v1882_v41 = vsel %vm1881_vm11, %v2981_v26, %v1878_v60  ;;  %v1872_v62 = vsel %vm1869_vm3, %v1871_v50, %v1867_v5  ;;  %v4223_v26 = vld [vmem:[#allocation2] sm:$0xff]  ;;  %v1701_v60 = vrot.slane %v1700_v13, 2 }
0x1100   :  { %v1887_v37 = vsel %vm1884_vm5, %v1886_v54, %v1882_v41  ;;  %v1873_v23 = vmul.f32 %v4170_v43, %v1872_v62  ;;  %v2420_v54 = vmul.f32 %v4200_v7, %v4119_v63 }
0x1101   :  { %v1888_v2 = vmul.f32 %v4173_v16, %v1887_v37 }
0x1102   :  { %1891 = vperm.xlu2 %2862, %v1873_v23  }
0x1103   :  { %1896 = vperm.xlu1 %2860, %v1888_v2  }
0x110b   :  { %1704 = vrot.lane.b32.xlu1 %v1698_v4, %s3430_s21 }
0x1118   :  { %v2410_v8 = vpop.permute.xlu0 %2409 }
0x1119   :  { %v2412_v43 = vadd.f32 %v2410_v8, %v364_v0 }
0x111b   :  { %2982 = vtanh.f32 %v2412_v43 }
0x111c   :  { %2984 = vpow2.f32 %v2813_v45 }
0x1121   :  { %v2983_v16 = vpop.eup %2982 }
0x1122   :  { %2416 = vrot.lane.b32.xlu2 %v2983_v16, %s3428_s12  ;;  %v2985_v47 = vpop.eup %2984 }
0x1123   :  { %v1679_v19 = vadd.f32 1.0, %v2985_v47 }
0x1125   :  { %2986 = vrcp.f32 %v1679_v19  ;;  %v1691_v50 = vand.u32 2147483648, %v1679_v19  ;;  %vm1685_vm8 = vweird.f32 %v1679_v19 }
0x1127   :  { %v1692_v27 = vor.u32 1.1754944e-38, %v1691_v50 }
0x112b   :  { %v2987_v61 = vpop.eup %2986 }
0x112c   :  { %v1681_v20 = vmul.f32 %v2987_v61, %v1679_v19  ;;  %vm1686_vm13 = vweird.f32 %v2987_v61 }
0x112d   :  { %vm1687_vm9 = vmor %vm1685_vm8, %vm1686_vm13 }
0x112e   :  { %v1682_v11 = vsub.f32 1.0, %v1681_v20 }
0x1130   :  { %v1683_v17 = vmul.f32 %v2987_v61, %v1682_v11 }
0x1132   :  { %v1684_v55 = vadd.f32 %v2987_v61, %v1683_v17 }
0x1134   :  { %v1688_v2 = vsel %vm1687_vm9, %v2987_v61, %v1684_v55 }
0x1135   :  { %2136 = vadd.xlane.f32.xlu1 %v2135_v48 }
0x115c   :  { %v1892_v0 = vpop.permute.xlu2 %1891 }
0x115d   :  { %v1899_v32 = vmul.f32 %v4223_v26, %v1892_v0 }
0x115f   :  { %v1901_v39 = vsel %vm305_vm2, %v1899_v32, 0.0 }
0x1160   :  { %v1902_v10 = vrot.slane %v1901_v39, 4 }
0x1162   :  { %v1903_v25 = vadd.f32 %v1902_v10, %v1901_v39 }
0x1164   :  { %v1904_v14 = vrot.slane %v1903_v25, 2 }
0x1166   :  { %v1905_v57 = vadd.f32 %v1904_v14, %v1903_v25  ;;  %v385_v14 = vsel %vm374_vm14, %v3905_v35, %v4182_v44 }
0x1168   :  { %v1906_v23 = vrot.slane %v1905_v57, 1 }
0x116a   :  { %v1907_v3 = vadd.f32 %v1906_v23, %v1905_v57 }
0x1175   :  { %v1897_v22 = vpop.permute.xlu1 %1896 }
0x1176   :  { %v1900_v53 = vmul.f32 %v4024_v59, %v1897_v22  ;;  %v1689_v59 = vand.u32 2147483647, %v1679_v19 }
0x1178   :  { %v1908_v40 = vsel %vm305_vm2, %v1900_v53, 0.0  ;;  %vm1690_vm10 = vcmp.eq.f32.partialorder %v1689_v59, 8.507059e+37 }
0x1179   :  { %v1909_v36 = vrot.slane %v1908_v40, 4  ;;  %v1693_v30 = vsel %vm1690_vm10, %v1692_v27, %v1688_v2 }
0x117a   :  { %v1709_v7 = vsub.f32 1.0, %v1693_v30  ;;  %v1711_v43 = vmul.f32 %v1693_v30, %v4139_v1 }
0x117b   :  { %v1910_v38 = vadd.f32 %v1909_v36, %v1908_v40  ;;  %v386_v36 = vrot.slane %v385_v14, 2 }
0x117c   :  { %v2417_v5 = vpop.permute.xlu2 %2416 }
0x117d   :  { %v1911_v41 = vrot.slane %v1910_v38, 2  ;;  %v1705_v62 = vpop.permute.xlu1 %1704  ;;  %v2419_v15 = vmul.f32 %v2417_v5, %v2414_v42 }
0x117e   :  { %v1707_v37 = vadd.f32 %v1705_v62, %v1701_v60 }
0x117f   :  { %v1912_v28 = vadd.f32 %v1911_v41, %v1910_v38  ;;  %v2421_v24 = vadd.f32 %v2420_v54, %v2419_v15 }
0x1180   :  { %2988 = vtanh.f32 %v1707_v37 }
0x1181   :  { %v1913_v29 = vrot.slane %v1912_v28, 1  ;;  %2423 = vst [vmem:[#allocation1] ss:$4 sm:$0xff] %v2421_v24 }
0x1183   :  { %v1914_v63 = vadd.f32 %v1913_v29, %v1912_v28 }
0x1185   :  { %v1917_v4 = vsel %vm523_vm15, %v1914_v63, %v1907_v3 }
0x1186   :  { %v2989_v13 = vpop.eup %2988  ;;  %2817 = vmatmul.msk.f32.vlgmr.msrb.gmra.mxu0 %vm305_vm2, %v1917_v4 }
0x1187   :  { %v1710_v8 = vmul.f32 %v2989_v13, %v1709_v7  ;;  %2576 = vmatpush.msrb.mxu0 %v4124_v18  ;;  %v2140_v18 = vpop.xlane.xlu0 %2139 }
0x1188   :  { %v2424_v16 = vld.sshfl [vmem:[#allocation1] sm:$0xff pattern:$0x73625140]  ;;  %v2144_v46 = vperm.slane %v2140_v18, %v3733_v33 }
0x1189   :  { %v4236_v56 = vadd.f32 %v1711_v43, %v1710_v8  ;;  %2425 = vrot.lane.b32.xlu1 %v2424_v16, %s3428_s12  ;;  %2577 = vmatpush.msrb.mxu0 %v4129_v12 }
0x118b   :  { %2818 = vmatmul.msk.f32.vlgmr.msrb.gmra.mxu1 %vm305_vm2, %v4236_v56  ;;  %2578 = vmatpush.msrb.mxu0 %v4132_v52 }
0x118c   :  { %2606 = vmatpush.msrb.mxu1 %v4144_v31 }
0x118d   :  { %2579 = vmatpush.msrb.mxu0 %v4135_v58 }
0x118e   :  { %2607 = vmatpush.msrb.mxu1 %v4147_v21 }
0x1190   :  { %2608 = vmatpush.msrb.mxu1 %v4150_v34 }
0x1192   :  { %2609 = vmatpush.msrb.mxu1 %v4153_v51 }
0x11a8   :  { %v2137_v1 = vpop.xlane.xlu1 %2136 }
0x11a9   :  { %v2143_v12 = vperm.slane %v2137_v1, %v3733_v33 }
0x11ab   :  { %v2145_v48 = vsel %vm523_vm15, %v2144_v46, %v2143_v12 }
0x11ac   :  { %v2147_v52 = vsel %vm526_vm0, %v2145_v48, -inf }
0x11ad   :  { %2148 = vmax.xlane.f32.xlu2 %v2147_v52 }
0x11fb   :  { %v2426_v31 = vpop.permute.xlu1 %2425 }
0x11fc   :  { %2830 = vmatmul.msk.f32.vlgmr.msrb.gmra.mxu3 %vm305_vm2, %v2426_v31 }
0x1203   :  { %v1937_v61 = vpop.f32.mrf.mxu0 }
0x1208   :  { %v1967_v58 = vpop.f32.mrf.mxu1 }
0x1209   :  { %v1968_v21 = vadd.f32 %v4166_v6, %v1967_v58 }
0x120b   :  { %1971 = vrot.lane.b32.xlu1 %v1968_v21, %s3428_s12 }
0x1213   :  { %2017 = vrot.lane.b32.xlu1 %v1968_v21, %s3430_s21 }
0x1220   :  { %v2149_v34 = vpop.xlane.xlu2 %2148 }
0x1221   :  { %v2151_v51 = vperm.slane %v2149_v34, 0  ;;  %v2152_v49 = vperm.slane %v2149_v34, 1 }
0x1223   :  { %v2155_v9 = vsub.f32 %v2137_v1, %v2151_v51  ;;  %v2156_v45 = vsub.f32 %v2140_v18, %v2152_v49 }
0x1225   :  { %v2157_v47 = vmul.f32 1.442695, %v2155_v9  ;;  %v2159_v19 = vmul.f32 1.442695, %v2156_v45 }
0x1227   :  { %2990 = vpow2.f32 %v2157_v47 }
0x1228   :  { %2992 = vpow2.f32 %v2159_v19 }
0x122d   :  { %v4256_v0 = vpop.eup %2990 }
0x122e   :  { %v4258_v32 = vpop.eup %2992  ;;  %2164 = vperm.xlu0 %2861, %v4256_v0  }
0x122f   :  { %2167 = vperm.xlu2 %2862, %v4258_v32  }
0x1236   :  { %1941 = vrot.lane.b32.xlu0 %v1937_v61, %s3428_s12 }
0x127d   :  { %v4273_v57 = vpop.permute.xlu1 %1971 }
0x127f   :  { %v2446_v19 = vpop.f32.mrf.mxu3 }
0x1285   :  { %v2018_v45 = vpop.permute.xlu1 %2017 }
0x1289   :  { %v2168_v39 = vpop.permute.xlu2 %2167 }
0x128a   :  { %v2170_v10 = vperm.slane %v2168_v39, %v3733_v33 }
0x12a0   :  { %v2165_v20 = vpop.permute.xlu0 %2164 }
0x12a1   :  { %v2169_v11 = vperm.slane %v2165_v20, %v3733_v33 }
0x12a3   :  { %v2171_v25 = vsel %vm523_vm15, %v2170_v10, %v2169_v11  ;;  %v4286_v11 = vld [vmem:[#allocation2 + $0x8] sm:$0xff] }
0x12a4   :  { %v2173_v22 = vsel %vm526_vm0, %v2171_v25, 0.0 }
0x12a5   :  { %2174 = vadd.xlane.f32.xlu0 %v2173_v22 }
0x12a8   :  { %v1942_v53 = vpop.permute.xlu0 %1941 }
0x12a9   :  { %v1943_v17 = vrot.slane %v1942_v53, 6 }
0x12ab   :  { %v1944_v40 = vsel %vm650_vm1, %v1943_v17, %v1942_v53 }
0x12ac   :  { %v4271_v42 = vadd.f32 %v1944_v40, %v386_v36 }
0x12ae   :  { %v1974_v38 = vadd.f32 %v4273_v57, %v4271_v42  ;;  %v1995_v17 = vrot.slane %v4271_v42, 2 }
0x12b0   :  { %v2819_v55 = vmul.f32 -1.442695, %v1974_v38  ;;  %v1997_v14 = vadd.f32 %v1995_v17, %v4273_v57 }
0x12b2   :  { %2994 = vpow2.f32 %v2819_v55  ;;  %v2820_v40 = vmul.f32 -1.442695, %v1997_v14 }
0x12b8   :  { %v2995_v60 = vpop.eup %2994 }
0x12b9   :  { %v1978_v50 = vadd.f32 1.0, %v2995_v60 }
0x12bb   :  { %2996 = vrcp.f32 %v1978_v50  ;;  %v1990_v58 = vand.u32 2147483648, %v1978_v50  ;;  %vm1984_vm9 = vweird.f32 %v1978_v50  ;;  %v1988_v34 = vand.u32 2147483647, %v1978_v50 }
0x12bd   :  { %v1991_v49 = vor.u32 1.1754944e-38, %v1990_v58 }
0x12c1   :  { %v2997_v62 = vpop.eup %2996 }
0x12c2   :  { %v1980_v59 = vmul.f32 %v2997_v62, %v1978_v50  ;;  %vm1985_vm13 = vweird.f32 %v2997_v62 }
0x12c3   :  { %vm1986_vm10 = vmor %vm1984_vm9, %vm1985_vm13 }
0x12c4   :  { %v1981_v2 = vsub.f32 1.0, %v1980_v59 }
0x12c6   :  { %v1982_v13 = vmul.f32 %v2997_v62, %v1981_v2 }
0x12c8   :  { %v1983_v48 = vadd.f32 %v2997_v62, %v1982_v13 }
0x12ca   :  { %v1987_v51 = vsel %vm1986_vm10, %v2997_v62, %v1983_v48 }
0x1318   :  { %v2175_v54 = vpop.xlane.xlu0 %2174 }
0x1319   :  { %v2177_v5 = vperm.slane %v2175_v54, 0  ;;  %v2178_v41 = vperm.slane %v2175_v54, 1 }
0x131b   :  { %2998 = vrcp.f32 %v2177_v5  ;;  %v2192_v29 = vand.u32 2147483648, %v2177_v5  ;;  %v2207_v30 = vand.u32 2147483648, %v2178_v41  ;;  %v2190_v63 = vand.u32 2147483647, %v2177_v5 }
0x131c   :  { %3000 = vrcp.f32 %v2178_v41  ;;  %v2205_v4 = vand.u32 2147483647, %v2178_v41  ;;  %vm2186_vm3 = vweird.f32 %v2177_v5  ;;  %vm2201_vm4 = vweird.f32 %v2178_v41 }
0x131d   :  { %v2193_v16 = vor.u32 1.1754944e-38, %v2192_v29  ;;  %v2208_v18 = vor.u32 1.1754944e-38, %v2207_v30  ;;  %vm2191_vm7 = vcmp.eq.f32.partialorder %v2190_v63, 8.507059e+37  ;;  %3002 = vpow2.f32 %v2820_v40 }
0x131e   :  { %vm2206_vm8 = vcmp.eq.f32.partialorder %v2205_v4, 8.507059e+37 }
0x1321   :  { %v2999_v15 = vpop.eup %2998 }
0x1322   :  { %v3001_v37 = vpop.eup %3000  ;;  %v2182_v23 = vmul.f32 %v2999_v15, %v2177_v5  ;;  %vm2187_vm14 = vweird.f32 %v2999_v15 }
0x1323   :  { %v2197_v28 = vmul.f32 %v3001_v37, %v2178_v41  ;;  %vm2202_vm11 = vweird.f32 %v3001_v37  ;;  %vm2188_vm5 = vmor %vm2186_vm3, %vm2187_vm14  ;;  %vm1989_vm14 = vcmp.eq.f32.partialorder %v1988_v34, 8.507059e+37  ;;  %v3003_v36 = vpop.eup %3002 }
0x1324   :  { %v2183_v24 = vsub.f32 1.0, %v2182_v23  ;;  %vm2203_vm6 = vmor %vm2201_vm4, %vm2202_vm11  ;;  %v1992_v9 = vsel %vm1989_vm14, %v1991_v49, %v1987_v51  ;;  %v2001_v38 = vadd.f32 1.0, %v3003_v36 }
0x1325   :  { %v2198_v27 = vsub.f32 1.0, %v2197_v28  ;;  %v2020_v47 = vmul.f32 %v2018_v45, %v1992_v9 }
0x1326   :  { %v2184_v3 = vmul.f32 %v2999_v15, %v2183_v24  ;;  %3004 = vrcp.f32 %v2001_v38  ;;  %vm2007_vm3 = vweird.f32 %v2001_v38 }
0x1327   :  { %v2199_v7 = vmul.f32 %v3001_v37, %v2198_v27 }
0x1328   :  { %v2185_v8 = vadd.f32 %v2999_v15, %v2184_v3  ;;  %v2013_v3 = vand.u32 2147483648, %v2001_v38 }
0x1329   :  { %v2200_v43 = vadd.f32 %v3001_v37, %v2199_v7  ;;  %v2011_v7 = vand.u32 2147483647, %v2001_v38 }
0x132a   :  { %v2189_v1 = vsel %vm2188_vm5, %v2999_v15, %v2185_v8 }
0x132b   :  { %v2204_v46 = vsel %vm2203_vm6, %v3001_v37, %v2200_v43  ;;  %v2194_v12 = vsel %vm2191_vm7, %v2193_v16, %v2189_v1  ;;  %vm2012_vm5 = vcmp.eq.f32.partialorder %v2011_v7, 8.507059e+37 }
0x132c   :  { %v2209_v52 = vsel %vm2206_vm8, %v2208_v18, %v2204_v46  ;;  %v2195_v31 = vmul.f32 %v4256_v0, %v2194_v12  ;;  %v3056_v0 = vld [vmem:[%s4389_s10] ss:$0 sm:$0xff]  ;;  %v3005_v50 = vpop.eup %3004  ;;  %v2014_v18 = vor.u32 1.1754944e-38, %v2013_v3 }
0x132d   :  { %v2210_v21 = vmul.f32 %v4258_v32, %v2209_v52  ;;  %v2447_v32 = vadd.f32 %v3056_v0, %v2446_v19  ;;  %v2003_v41 = vmul.f32 %v3005_v50, %v2001_v38  ;;  %vm2008_vm11 = vweird.f32 %v3005_v50 }
0x132e   :  { %2213 = vperm.xlu2 %2862, %v2195_v31   ;;  %vm2009_vm4 = vmor %vm2007_vm3, %vm2008_vm11 }
0x132f   :  { %2218 = vperm.xlu1 %2860, %v2210_v21   ;;  %v2450_v61 = vrot.slane %v2447_v32, 1  ;;  %v2451_v39 = vperm.slane %v2447_v32, 0  ;;  %v2004_v59 = vsub.f32 1.0, %v2003_v41 }
0x1331   :  { %v2452_v20 = vperm.slane %v2450_v61, 0  ;;  %v2455_v10 = vmul.f32 %v4223_v26, %v2451_v39  ;;  %v2005_v57 = vmul.f32 %v3005_v50, %v2004_v59 }
0x1333   :  { %v2456_v25 = vmul.f32 %v4286_v11, %v2452_v20  ;;  %v2457_v22 = vsel %vm305_vm2, %v2455_v10, 0.0  ;;  %v2006_v29 = vadd.f32 %v3005_v50, %v2005_v57 }
0x1335   :  { %v2460_v53 = vsel %vm305_vm2, %v2456_v25, 0.0  ;;  %v2010_v16 = vsel %vm2009_vm4, %v3005_v50, %v2006_v29 }
0x1336   :  { %2021 = vrot.lane.b32.xlu2 %v4271_v42, %s3428_s12  ;;  %v2015_v46 = vsel %vm2012_vm5, %v2014_v18, %v2010_v16 }
0x1337   :  { %2026 = vrot.lane.b32.xlu1 %v2020_v47, %s3430_s21  ;;  %v2031_v52 = vsub.f32 1.0, %v2015_v46  ;;  %v2033_v21 = vmul.f32 %v2015_v46, %v4236_v56 }
0x135f   :  { %2458 = vadd.xlane.f32.xlu2 %v2457_v22 }
0x1361   :  { %2461 = vadd.xlane.f32.xlu1 %v2460_v53 }
0x1388   :  { %v2214_v55 = vpop.permute.xlu2 %2213 }
0x1389   :  { %v2221_v60 = vmul.f32 %v4223_v26, %v2214_v55 }
0x138b   :  { %v2223_v54 = vsel %vm305_vm2, %v2221_v60, 0.0 }
0x138c   :  { %v2224_v5 = vrot.slane %v2223_v54, 4 }
0x138e   :  { %v2225_v62 = vadd.f32 %v2224_v5, %v2223_v54 }
0x1390   :  { %v2226_v37 = vrot.slane %v2225_v62, 2  ;;  %v2022_v28 = vpop.permute.xlu2 %2021 }
0x1391   :  { %v2023_v30 = vrot.slane %v2022_v28, 2 }
0x1392   :  { %v2227_v24 = vadd.f32 %v2226_v37, %v2225_v62 }
0x1394   :  { %v2228_v8 = vrot.slane %v2227_v24, 1 }
0x1396   :  { %v2229_v12 = vadd.f32 %v2228_v8, %v2227_v24 }
0x13a1   :  { %v2219_v15 = vpop.permute.xlu1 %2218 }
0x13a2   :  { %v2222_v42 = vmul.f32 %v4286_v11, %v2219_v15 }
0x13a4   :  { %v2230_v23 = vsel %vm305_vm2, %v2222_v42, 0.0 }
0x13a5   :  { %v2231_v2 = vrot.slane %v2230_v23, 4 }
0x13a7   :  { %v2232_v27 = vadd.f32 %v2231_v2, %v2230_v23 }
0x13a9   :  { %v2233_v63 = vrot.slane %v2232_v27, 2  ;;  %v2027_v4 = vpop.permute.xlu1 %2026 }
0x13aa   :  { %v2029_v13 = vadd.f32 %v2027_v4, %v2023_v30 }
0x13ab   :  { %v2234_v43 = vadd.f32 %v2233_v63, %v2232_v27 }
0x13ac   :  { %3006 = vtanh.f32 %v2029_v13 }
0x13ad   :  { %v2235_v1 = vrot.slane %v2234_v43, 1 }
0x13af   :  { %v2236_v48 = vadd.f32 %v2235_v1, %v2234_v43 }
0x13b1   :  { %v2239_v31 = vsel %vm523_vm15, %v2236_v48, %v2229_v12 }
0x13b2   :  { %v3007_v58 = vpop.eup %3006  ;;  %2824 = vmatmul.msk.f32.vlgmr.msra.gmra.mxu0 %vm305_vm2, %v2239_v31 }
0x13b3   :  { %v2032_v34 = vmul.f32 %v3007_v58, %v2031_v52 }
0x13b5   :  { %v4300_v51 = vadd.f32 %v2033_v21, %v2032_v34 }
0x13b7   :  { %2825 = vmatmul.msk.f32.vlgmr.msra.gmra.mxu1 %vm305_vm2, %v4300_v51 }
0x13d2   :  { %v2459_v49 = vpop.xlane.xlu2 %2458 }
0x13d3   :  { %v2465_v9 = vperm.slane %v2459_v49, %v3733_v33 }
0x13d4   :  { %v2462_v45 = vpop.xlane.xlu1 %2461 }
0x13d5   :  { %v2466_v47 = vperm.slane %v2462_v45, %v3733_v33 }
0x13d7   :  { %v2467_v19 = vsel %vm523_vm15, %v2466_v47, %v2465_v9 }
0x13d8   :  { %v2469_v0 = vsel %vm526_vm0, %v2467_v19, -inf }
0x13d9   :  { %2470 = vmax.xlane.f32.xlu0 %v2469_v0 }
0x142f   :  { %v2259_v32 = vpop.f32.mrf.mxu0 }
0x1430   :  { %2263 = vrot.lane.b32.xlu1 %v2259_v32, %s3428_s12 }
0x1434   :  { %v2289_v14 = vpop.f32.mrf.mxu1 }
0x1435   :  { %v2290_v40 = vadd.f32 %v4166_v6, %v2289_v14  ;;  %v387_v6 = vsel %vm377_vm12, %v3905_v35, %v4182_v44 }
0x1436   :  { %v388_v59 = vrot.slane %v387_v6, 4 }
0x144c   :  { %v2471_v56 = vpop.xlane.xlu0 %2470 }
0x144d   :  { %v2473_v61 = vperm.slane %v2471_v56, 0  ;;  %v2474_v39 = vperm.slane %v2471_v56, 1 }
0x144f   :  { %v2477_v20 = vsub.f32 %v2459_v49, %v2473_v61  ;;  %v2478_v10 = vsub.f32 %v2462_v45, %v2474_v39 }
0x1451   :  { %v2479_v25 = vmul.f32 1.442695, %v2477_v20  ;;  %v2481_v22 = vmul.f32 1.442695, %v2478_v10 }
0x1453   :  { %3008 = vpow2.f32 %v2479_v25 }
0x1454   :  { %3010 = vpow2.f32 %v2481_v22 }
0x1459   :  { %v4309_v53 = vpop.eup %3008 }
0x145a   :  { %v4311_v17 = vpop.eup %3010  ;;  %2486 = vperm.xlu0 %2861, %v4309_v53  }
0x145b   :  { %2489 = vperm.xlu2 %2862, %v4311_v17  }
0x1462   :  { %2293 = vrot.lane.b32.xlu0 %v2290_v40, %s3428_s12 }
0x1463   :  { %2339 = vrot.lane.b32.xlu2 %v2290_v40, %s3430_s21 }
0x14a2   :  { %v2264_v5 = vpop.permute.xlu1 %2263 }
0x14a3   :  { %v2265_v41 = vrot.slane %v2264_v5, 6 }
0x14a5   :  { %v2266_v62 = vsel %vm650_vm1, %v2265_v41, %v2264_v5 }
0x14a6   :  { %v4328_v42 = vadd.f32 %v2266_v62, %v388_v59 }
0x14a8   :  { %v2317_v22 = vrot.slane %v4328_v42, 2 }
0x14b5   :  { %v2490_v36 = vpop.permute.xlu2 %2489 }
0x14b6   :  { %v2492_v55 = vperm.slane %v2490_v36, %v3733_v33 }
0x14bd   :  { %v2340_v10 = vpop.permute.xlu2 %2339 }
0x14cc   :  { %v2487_v38 = vpop.permute.xlu0 %2486 }
0x14cd   :  { %v2491_v60 = vperm.slane %v2487_v38, %v3733_v33 }
0x14cf   :  { %v2493_v50 = vsel %vm523_vm15, %v2492_v55, %v2491_v60 }
0x14d0   :  { %v2495_v54 = vsel %vm526_vm0, %v2493_v50, 0.0 }
0x14d1   :  { %2496 = vadd.xlane.f32.xlu0 %v2495_v54 }
0x14d4   :  { %v4326_v15 = vpop.permute.xlu0 %2293 }
0x14d5   :  { %v2296_v33 = vadd.f32 %v4326_v15, %v4328_v42 }
0x14d7   :  { %v2826_v37 = vmul.f32 -1.442695, %v2296_v33 }
0x14d9   :  { %3012 = vpow2.f32 %v2826_v37 }
0x14df   :  { %v3013_v57 = vpop.eup %3012 }
0x14e0   :  { %v2300_v23 = vadd.f32 1.0, %v3013_v57 }
0x14e2   :  { %3014 = vrcp.f32 %v2300_v23  ;;  %v2312_v0 = vand.u32 2147483648, %v2300_v23  ;;  %vm2306_vm11 = vweird.f32 %v2300_v23  ;;  %v2310_v56 = vand.u32 2147483647, %v2300_v23 }
0x14e4   :  { %v2313_v39 = vor.u32 1.1754944e-38, %v2312_v0  ;;  %vm2311_vm4 = vcmp.eq.f32.partialorder %v2310_v56, 8.507059e+37 }
0x14e8   :  { %v3015_v27 = vpop.eup %3014 }
0x14e9   :  { %v2302_v29 = vmul.f32 %v3015_v27, %v2300_v23  ;;  %vm2307_vm10 = vweird.f32 %v3015_v27 }
0x14ea   :  { %vm2308_vm3 = vmor %vm2306_vm11, %vm2307_vm10 }
0x14eb   :  { %v2303_v4 = vsub.f32 1.0, %v2302_v29 }
0x14ed   :  { %v2304_v48 = vmul.f32 %v3015_v27, %v2303_v4 }
0x14ef   :  { %v2305_v45 = vadd.f32 %v3015_v27, %v2304_v48 }
0x14f1   :  { %v2309_v61 = vsel %vm2308_vm3, %v3015_v27, %v2305_v45  ;;  %vm2720_vm3 = vcmask 123904  }
0x14f2   :  { %v2314_v20 = vsel %vm2311_vm4, %v2313_v39, %v2309_v61 }
0x14f3   :  { %v2342_v25 = vmul.f32 %v2340_v10, %v2314_v20 }
0x1544   :  { %v2497_v28 = vpop.xlane.xlu0 %2496 }
0x1545   :  { %v2499_v2 = vperm.slane %v2497_v28, 0  ;;  %v2500_v24 = vperm.slane %v2497_v28, 1 }
0x1547   :  { %3016 = vrcp.f32 %v2499_v2  ;;  %v2514_v43 = vand.u32 2147483648, %v2499_v2  ;;  %v2529_v16 = vand.u32 2147483648, %v2500_v24  ;;  %v2512_v1 = vand.u32 2147483647, %v2499_v2 }
0x1548   :  { %3018 = vrcp.f32 %v2500_v24  ;;  %v2527_v12 = vand.u32 2147483647, %v2500_v24  ;;  %vm2508_vm6 = vweird.f32 %v2499_v2  ;;  %vm2523_vm7 = vweird.f32 %v2500_v24 }
0x1549   :  { %v2515_v58 = vor.u32 1.1754944e-38, %v2514_v43  ;;  %v2530_v21 = vor.u32 1.1754944e-38, %v2529_v16  ;;  %vm2513_vm9 = vcmp.eq.f32.partialorder %v2512_v1, 8.507059e+37 }
0x154a   :  { %vm2528_vm14 = vcmp.eq.f32.partialorder %v2527_v12, 8.507059e+37 }
0x154d   :  { %v3017_v30 = vpop.eup %3016 }
0x154e   :  { %v3019_v3 = vpop.eup %3018  ;;  %v2504_v63 = vmul.f32 %v3017_v30, %v2499_v2  ;;  %vm2509_vm0 = vweird.f32 %v3017_v30 }
0x154f   :  { %v2519_v7 = vmul.f32 %v3019_v3, %v2500_v24  ;;  %vm2524_vm12 = vweird.f32 %v3019_v3  ;;  %vm2510_vm13 = vmor %vm2508_vm6, %vm2509_vm0 }
0x1550   :  { %v2505_v13 = vsub.f32 1.0, %v2504_v63  ;;  %vm2525_vm8 = vmor %vm2523_vm7, %vm2524_vm12 }
0x1551   :  { %v2520_v8 = vsub.f32 1.0, %v2519_v7 }
0x1552   :  { %v2506_v18 = vmul.f32 %v3017_v30, %v2505_v13 }
0x1553   :  { %v2521_v46 = vmul.f32 %v3019_v3, %v2520_v8 }
0x1554   :  { %v2507_v52 = vadd.f32 %v3017_v30, %v2506_v18 }
0x1555   :  { %v2522_v31 = vadd.f32 %v3019_v3, %v2521_v46 }
0x1556   :  { %v2511_v34 = vsel %vm2510_vm13, %v3017_v30, %v2507_v52 }
0x1557   :  { %v2526_v49 = vsel %vm2525_vm8, %v3019_v3, %v2522_v31  ;;  %v2516_v9 = vsel %vm2513_vm9, %v2515_v58, %v2511_v34  ;;  %v3058_v58 = vld [vmem:[%s4392_s13] ss:$0 sm:$0xff] }
0x1558   :  { %v2531_v47 = vsel %vm2528_vm14, %v2530_v21, %v2526_v49  ;;  %v2517_v19 = vmul.f32 %v4309_v53, %v2516_v9  ;;  %v2319_v53 = vadd.f32 %v2317_v22, %v4326_v15 }
0x1559   :  { %v2532_v32 = vmul.f32 %v4311_v17, %v2531_v47 }
0x155a   :  { %2535 = vperm.xlu1 %2860, %v2517_v19   ;;  %v2827_v17 = vmul.f32 -1.442695, %v2319_v53 }
0x155b   :  { %2540 = vperm.xlu2 %2862, %v2532_v32  }
0x155c   :  { %3020 = vpow2.f32 %v2827_v17 }
0x1562   :  { %2343 = vrot.lane.b32.xlu1 %v4328_v42, %s3428_s12  ;;  %v3021_v14 = vpop.eup %3020 }
0x1563   :  { %2348 = vrot.lane.b32.xlu2 %v2342_v25, %s3430_s21  ;;  %v2323_v40 = vadd.f32 1.0, %v3021_v14 }
0x1565   :  { %3022 = vrcp.f32 %v2323_v40  ;;  %v2335_v2 = vand.u32 2147483648, %v2323_v40  ;;  %vm2329_vm0 = vweird.f32 %v2323_v40  ;;  %v2333_v3 = vand.u32 2147483647, %v2323_v40 }
0x1567   :  { %v2336_v4 = vor.u32 1.1754944e-38, %v2335_v2  ;;  %vm2334_vm6 = vcmp.eq.f32.partialorder %v2333_v3, 8.507059e+37 }
0x156b   :  { %v3023_v60 = vpop.eup %3022 }
0x156c   :  { %v2325_v54 = vmul.f32 %v3023_v60, %v2323_v40  ;;  %vm2330_vm5 = vweird.f32 %v3023_v60 }
0x156d   :  { %vm2331_vm12 = vmor %vm2329_vm0, %vm2330_vm5 }
0x156e   :  { %v2326_v41 = vsub.f32 1.0, %v2325_v54 }
0x1570   :  { %v2327_v42 = vmul.f32 %v3023_v60, %v2326_v41  ;;  %v2681_v41 = vld [vmem:[#allocation19 + $0x10] sm:$0xff] }
0x1572   :  { %v2328_v28 = vadd.f32 %v3023_v60, %v2327_v42 }
0x1574   :  { %v2332_v7 = vsel %vm2331_vm12, %v3023_v60, %v2328_v28 }
0x1575   :  { %v2337_v43 = vsel %vm2334_vm6, %v2336_v4, %v2332_v7 }
0x1576   :  { %v2353_v18 = vsub.f32 1.0, %v2337_v43  ;;  %v2355_v12 = vmul.f32 %v2337_v43, %v4300_v51 }
0x15b5   :  { %v2541_v36 = vpop.permute.xlu2 %2540 }
0x15b6   :  { %v2544_v38 = vmul.f32 %v4286_v11, %v2541_v36 }
0x15b8   :  { %v2552_v55 = vsel %vm305_vm2, %v2544_v38, 0.0 }
0x15b9   :  { %v2553_v50 = vrot.slane %v2552_v55, 4 }
0x15bb   :  { %v2554_v5 = vadd.f32 %v2553_v50, %v2552_v55 }
0x15bd   :  { %v2555_v59 = vrot.slane %v2554_v5, 2  ;;  %v2349_v29 = vpop.permute.xlu2 %2348 }
0x15bf   :  { %v2556_v37 = vadd.f32 %v2555_v59, %v2554_v5  ;;  %v2682_v5 = vld [vmem:[#allocation19 + $0x18] sm:$0xff] }
0x15c0   :  { %2702 = vmatpush.msrb.mxu2 %v2682_v5 }
0x15c1   :  { %v2557_v27 = vrot.slane %v2556_v37, 1 }
0x15c2   :  { %2703 = vmatpush.msrb.mxu2 %v2681_v41 }
0x15c3   :  { %v2558_v13 = vadd.f32 %v2557_v27, %v2556_v37 }
0x15cc   :  { %v2536_v6 = vpop.permute.xlu1 %2535 }
0x15cd   :  { %v2543_v62 = vmul.f32 %v4223_v26, %v2536_v6  ;;  %v2680_v6 = vld [vmem:[#allocation19 + $0x8] sm:$0xff] }
0x15ce   :  { %2704 = vmatpush.msrb.mxu2 %v2680_v6 }
0x15cf   :  { %v2545_v15 = vsel %vm305_vm2, %v2543_v62, 0.0  ;;  %v2679_v62 = vld [vmem:[#allocation19] sm:$0xff] }
0x15d0   :  { %v2546_v33 = vrot.slane %v2545_v15, 4  ;;  %2705 = vmatpush.msrb.mxu2 %v2679_v62 }
0x15d2   :  { %v2547_v57 = vadd.f32 %v2546_v33, %v2545_v15 }
0x15d4   :  { %v2548_v23 = vrot.slane %v2547_v57, 2  ;;  %v2344_v11 = vpop.permute.xlu1 %2343 }
0x15d5   :  { %v2345_v24 = vrot.slane %v2344_v11, 2 }
0x15d6   :  { %v2549_v30 = vadd.f32 %v2548_v23, %v2547_v57 }
0x15d7   :  { %v2351_v26 = vadd.f32 %v2349_v29, %v2345_v24 }
0x15d8   :  { %v2550_v63 = vrot.slane %v2549_v30, 1 }
0x15d9   :  { %3024 = vtanh.f32 %v2351_v26 }
0x15da   :  { %v2551_v8 = vadd.f32 %v2550_v63, %v2549_v30 }
0x15dc   :  { %v2561_v16 = vsel %vm523_vm15, %v2558_v13, %v2551_v8  ;;  %vm4406_vm15 = vcmask 1045504   ;;  %v2867_v13 = vld [vmem:[%s4394_s15] ss:$0 sm:$0xff]  ;;  %s3433_s15 = smov [#allocation23]  }
0x15dd   :  { %2831 = vmatmul.msk.f32.vlgmr.msrb.gmra.mxu0 %vm305_vm2, %v2561_v16  ;;  %v389_v51 = vsel %vm4406_vm15, %v4182_v44, %v3905_v35  ;;  %s2755_s26 = sshll.u32 %s3433_s15, 4  ;;  %s2756_s26 = int_to_ptr.vmem [resolvable:$true] %s2755_s26 }
0x15de   :  { %v390_v9 = vrot.slane %v389_v51, 6 }
0x15df   :  { %v3025_v1 = vpop.eup %3024 }
0x15e0   :  { %v2354_v46 = vmul.f32 %v3025_v1, %v2353_v18 }
0x15e2   :  { %v4346_v48 = vadd.f32 %v2355_v12, %v2354_v46  ;;  %v2710_v12 = vld [vmem:[#allocation5] sm:$0x3] }
0x15e4   :  { %2832 = vmatmul.msk.f32.vlgmr.msrb.gmra.mxu1 %vm305_vm2, %v4346_v48 }
0x165a   :  { %v2581_v52 = vpop.f32.mrf.mxu0 }
0x165b   :  { %2585 = vrot.lane.b32.xlu1 %v2581_v52, %s3428_s12 }
0x1661   :  { %v2611_v31 = vpop.f32.mrf.mxu1 }
0x1662   :  { %v2612_v21 = vadd.f32 %v3058_v58, %v2611_v31 }
0x1664   :  { %2661 = vrot.lane.b32.xlu1 %v2612_v21, %s3430_s21  ;;  %2615 = vrot.lane.b32.xlu2 %v2612_v21, %s3428_s12 }
0x16be   :  { %v2616_v19 = vpop.permute.xlu2 %2615 }
0x16cd   :  { %v2586_v34 = vpop.permute.xlu1 %2585 }
0x16ce   :  { %v2587_v49 = vrot.slane %v2586_v34, 6 }
0x16d0   :  { %v2588_v45 = vsel %vm650_vm1, %v2587_v49, %v2586_v34 }
0x16d1   :  { %v2590_v47 = vadd.f32 %v2588_v45, %v390_v9 }
0x16d3   :  { %v2618_v0 = vadd.f32 %v2616_v19, %v2590_v47  ;;  %2665 = vrot.lane.b32.xlu2 %v2590_v47, %s3428_s12  ;;  %v2639_v38 = vrot.slane %v2590_v47, 2 }
0x16d5   :  { %v2833_v32 = vmul.f32 -1.442695, %v2618_v0  ;;  %v2641_v55 = vadd.f32 %v2639_v38, %v2616_v19 }
0x16d6   :  { %v2662_v40 = vpop.permute.xlu1 %2661 }
0x16d7   :  { %3026 = vpow2.f32 %v2833_v32  ;;  %v2834_v60 = vmul.f32 -1.442695, %v2641_v55 }
0x16dd   :  { %v3027_v56 = vpop.eup %3026 }
0x16de   :  { %v2622_v61 = vadd.f32 1.0, %v3027_v56 }
0x16e0   :  { %3028 = vrcp.f32 %v2622_v61  ;;  %v2634_v25 = vand.u32 2147483648, %v2622_v61  ;;  %v2632_v44 = vand.u32 2147483647, %v2622_v61  ;;  %vm2628_vm13 = vweird.f32 %v2622_v61 }
0x16e1   :  { %3030 = vpow2.f32 %v2834_v60 }
0x16e2   :  { %v2635_v53 = vor.u32 1.1754944e-38, %v2634_v25  ;;  %vm2633_vm8 = vcmp.eq.f32.partialorder %v2632_v44, 8.507059e+37 }
0x16e6   :  { %v3029_v39 = vpop.eup %3028 }
0x16e7   :  { %v2624_v20 = vmul.f32 %v3029_v39, %v2622_v61  ;;  %vm2629_vm7 = vweird.f32 %v3029_v39  ;;  %v3031_v50 = vpop.eup %3030 }
0x16e8   :  { %vm2630_vm1 = vmor %vm2628_vm13, %vm2629_vm7  ;;  %v2645_v54 = vadd.f32 1.0, %v3031_v50 }
0x16e9   :  { %v2625_v10 = vsub.f32 1.0, %v2624_v20 }
0x16ea   :  { %3032 = vrcp.f32 %v2645_v54  ;;  %v2657_v28 = vand.u32 2147483648, %v2645_v54  ;;  %vm2651_vm10 = vweird.f32 %v2645_v54  ;;  %v2655_v11 = vand.u32 2147483647, %v2645_v54 }
0x16eb   :  { %v2626_v35 = vmul.f32 %v3029_v39, %v2625_v10 }
0x16ec   :  { %v2658_v29 = vor.u32 1.1754944e-38, %v2657_v28  ;;  %vm2656_vm11 = vcmp.eq.f32.partialorder %v2655_v11, 8.507059e+37 }
0x16ed   :  { %v2627_v22 = vadd.f32 %v3029_v39, %v2626_v35 }
0x16ef   :  { %v2631_v17 = vsel %vm2630_vm1, %v3029_v39, %v2627_v22 }
0x16f0   :  { %v2636_v14 = vsel %vm2633_vm8, %v2635_v53, %v2631_v17  ;;  %v3033_v59 = vpop.eup %3032 }
0x16f1   :  { %v2664_v36 = vmul.f32 %v2662_v40, %v2636_v14  ;;  %v2647_v15 = vmul.f32 %v3033_v59, %v2645_v54  ;;  %vm2652_vm9 = vweird.f32 %v3033_v59 }
0x16f2   :  { %vm2653_vm14 = vmor %vm2651_vm10, %vm2652_vm9 }
0x16f3   :  { %2670 = vrot.lane.b32.xlu0 %v2664_v36, %s3430_s21  ;;  %v2648_v42 = vsub.f32 1.0, %v2647_v15 }
0x16f5   :  { %v2649_v33 = vmul.f32 %v3033_v59, %v2648_v42 }
0x16f7   :  { %v2650_v57 = vadd.f32 %v3033_v59, %v2649_v33 }
0x16f9   :  { %v2654_v27 = vsel %vm2653_vm14, %v3033_v59, %v2650_v57 }
0x16fa   :  { %v2659_v30 = vsel %vm2656_vm11, %v2658_v29, %v2654_v27 }
0x16fb   :  { %v2675_v3 = vsub.f32 1.0, %v2659_v30  ;;  %v2677_v63 = vmul.f32 %v2659_v30, %v4346_v48 }
0x172d   :  { %v2666_v37 = vpop.permute.xlu2 %2665 }
0x172e   :  { %v2667_v23 = vrot.slane %v2666_v37, 2 }
0x1765   :  { %v2671_v2 = vpop.permute.xlu0 %2670 }
0x1766   :  { %v2673_v24 = vadd.f32 %v2671_v2, %v2667_v23 }
0x1768   :  { %3034 = vtanh.f32 %v2673_v24 }
0x176e   :  { %v3035_v26 = vpop.eup %3034 }
0x176f   :  { %v2676_v7 = vmul.f32 %v3035_v26, %v2675_v3 }
0x1771   :  { %v2678_v4 = vadd.f32 %v2677_v63, %v2676_v7 }
0x1773   :  { %2835 = vmatmul.msk.f32.vlgmr.msrb.gmra.mxu2 %vm305_vm2, %v2678_v4 }
0x17f6   :  { %v2707_v8 = vpop.f32.mrf.mxu2 }
0x17f7   :  { %v2708_v43 = vadd.f32 %v2867_v13, %v2707_v8 }
0x17f9   :  { %v2711_v16 = vmul.f32 0.5, %v2708_v43  ;;  %2724 = vrot.lane.b32.xlu2 %v2708_v43, %s3431_s19  ;;  %2722 = vst.msk [vmem:[#allocation21] sm:$0x3] %vm2720_vm3, %v2708_v43 }
0x17fa   :  { %2749 = dma.vmem_to_hbm [thread:$0]  %s2745_s14, 32, %s2747_s24, [#allocation22]  }
0x17fb   :  { %v2712_v18 = vmul.f32 1.442695, %v2711_v16 }
0x17fd   :  { %3036 = vpow2.f32 %v2712_v18 }
0x1803   :  { %v3037_v1 = vpop.eup %3036 }
0x1804   :  { %2715 = vrot.lane.b32.xlu1 %v3037_v1, %s3431_s19 }
0x1853   :  { %v2725_v46 = vpop.permute.xlu2 %2724 }
0x1854   :  { %2727 = vst.msk [vmem:[#allocation23] sm:$0x3] %vm2720_vm3, %v2725_v46 }
0x1855   :  { %2760 = dma.vmem_to_hbm [thread:$0]  %s2756_s26, 32, %s2758_s3, [#allocation22]  }
0x1876   :  { %v2716_v48 = vpop.permute.xlu1 %2715 }
0x1877   :  { %v2718_v52 = vmul.f32 %v2716_v48, %v2710_v12 }
0x1879   :  { %v2719_v31 = vadd.f32 %v2718_v52, %v2708_v43 }
0x187b   :  { %2721 = vst.msk [vmem:[#allocation20] sm:$0x3] %vm2720_vm3, %v2719_v31 }
0x187c   :  { %2738 = dma.vmem_to_hbm [thread:$0]  %s2734_s2, 32, %s2736_s25, [#allocation4]  }
0x187d   :  { %3407 = dma.done.wait [#allocation4], 32  }
0x187e   :  { %3408 = vsyncadd [#allocation4], 4294967264 }
0x187f   :  { %3409 = dma.done.wait [#allocation22], 64  }
0x1880   :  { %3410 = vsyncadd [#allocation22], 4294967232 }
0x1881   :  { %2773 = vsyncpa [#allocation3], 1 }
0x1882   :  { %2774 = vsyncpa [#allocation6], 1 }
0x1883   :  { %2775 = vsyncpa [#allocation9], 1 }
0x1884   :  { %2776 = vsyncpa [#allocation12], 1 }
0x1885   :  { %2777 = vsyncpa [#allocation15], 1 }
0x1886   :  { %2778 = vsyncpa [#allocation18], 1 }
0x1887   :  { %2779 = vsyncpa [#allocation4], 1 }
0x1888   :  { %2780 = vsyncpa [#allocation22], 1 }

</bundles_post_ra>
